<compile_context>
chip_gen: v7x
topology: tpu7x:2x2x1
jax: 0.10.0
libtpu: 0.0.40
codegen_flags: <defaults>
</compile_context>

<pallas_src>
import jax
import jax.numpy as jnp
from jax.experimental import pallas as pl
from jax.experimental.pallas import tpu as pltpu

# ----- small proxy config consistent with the PointSAM forward -----
B = 2
N_PTS = 128          # number of points (stand-in for N_raw=2048, lane-dense)
EMB = 32             # emb_dim (stand-in for 512)
HEADS = 4            # num_heads
HEAD_DIM = EMB // HEADS
N_GROUPS = 8         # text length (stand-in for n_groups=40)
N_SAMPLE = 4         # n_sample (stand-in for 20)
TEXT_HIDDEN = 64     # text-encoder hidden size (stand-in for 768)
FFN_DIM = 2 * EMB
L_Q = N_SAMPLE + N_GROUPS
NEG_INF = -1e9

_WEIGHT_ORDER = (
    "pe1_w", "pe1_b", "pe2_w", "pe2_b",
    "tr_w", "tr_b", "tr_g", "tr_beta",
    "view_q", "pos3d",
    "smp_wq", "smp_bq", "smp_wkv", "smp_bkv", "smp_wo", "smp_bo",
    "sa_wqk", "sa_bqk", "sa_wv", "sa_bv", "sa_wo", "sa_bo",
    "ca_wq", "ca_bq", "ca_wkv", "ca_bkv", "ca_wo", "ca_bo",
    "ffn1_w", "ffn1_b", "ffn2_w", "ffn2_b",
    "n1_g", "n1_b", "n2_g", "n2_b", "n3_g", "n3_b", "nf_g", "nf_b",
)


# --------------------------- in-kernel helpers (pure values) -----------------

def _layer_norm(x, g, b, eps):
    mu = jnp.mean(x, axis=-1, keepdims=True)
    var = jnp.mean(jnp.square(x - mu), axis=-1, keepdims=True)
    return (x - mu) * jax.lax.rsqrt(var + eps) * g + b


def _attend(q, k, v, w_o, b_o, neg):
    """Multi-head attention on already-projected q [Lq,C], k/v [Lk,C] (f32).

    w_o [C,C] (bf16 at rest), b_o [1,C] f32, neg: None or [1,Lk] f32 additive
    key mask.  Heads are unrolled statically; per-head output projections are
    accumulated so no concat / lane shuffle is needed.  Dot inputs are bf16
    with f32 accumulation; softmax stats stay in f32 (EUP reciprocal).
    """
    bf16 = jnp.bfloat16
    f32 = jnp.float32
    scale = 1.0 / float(HEAD_DIM) ** 0.5
    acc = None
    for h in range(HEADS):
        lo, hi = h * HEAD_DIM, (h + 1) * HEAD_DIM
        s = jax.lax.dot_general(
            q[:, lo:hi].astype(bf16), k[:, lo:hi].astype(bf16),
            (((1,), (1,)), ((), ())), preferred_element_type=f32) * scale
        if neg is not None:
            s = s + neg                                   # f32 masking
        s = s - jnp.max(s, axis=-1, keepdims=True)
        p = jnp.exp(s)
        p = p * pl.reciprocal(jnp.sum(p, axis=-1, keepdims=True), approx=True)
        ctx = jnp.dot(p.astype(bf16), v[:, lo:hi].astype(bf16),
                      preferred_element_type=f32)          # [Lq, Dh]
        part = jnp.dot(ctx.astype(bf16), w_o[lo:hi, :].astype(bf16),
                       preferred_element_type=f32)         # [Lq, C]
        acc = part if acc is None else acc + part
    return acc + b_o


# --------------------------- the fused kernel --------------------------------

def _pointsam_kernel(
    # per-batch data (leading block dim of 1, indexed by the grid)
    xyz_ref,        # [1, N_PTS, 3]              f32
    text_ref,       # [1, N_GROUPS, TEXT_HIDDEN] f32
    qmrow_ref,      # [1, 1, L_Q]                f32 (1 = valid query token)
    qmcol_ref,      # [1, L_Q, 1]                f32
    # shared parameters (constant block index across the grid)
    pe1_w_ref, pe1_b_ref, pe2_w_ref, pe2_b_ref,
    tr_w_ref, tr_b_ref, tr_g_ref, tr_beta_ref,
    vq_ref, pos_ref,
    smp_wq_ref, smp_bq_ref, smp_wkv_ref, smp_bkv_ref, smp_wo_ref, smp_bo_ref,
    sa_wqk_ref, sa_bqk_ref, sa_wv_ref, sa_bv_ref, sa_wo_ref, sa_bo_ref,
    ca_wq_ref, ca_bq_ref, ca_wkv_ref, ca_bkv_ref, ca_wo_ref, ca_bo_ref,
    ffn1_w_ref, ffn1_b_ref, ffn2_w_ref, ffn2_b_ref,
    n1_g_ref, n1_b_ref, n2_g_ref, n2_b_ref,
    n3_g_ref, n3_b_ref, nf_g_ref, nf_b_ref,
    # output
    out_ref,        # [1, 1, N_PTS] f32
    # scratch
    q_buf,          # VMEM [L_Q, EMB] f32  (concat slab for [sampled ; text])
):
    f32, bf16 = jnp.float32, jnp.bfloat16

    # ---- point encoder (per-point MLP) ----
    # TODO(synk): PointUni3d definition not provided; approximated by a
    # per-point MLP.  K=3 contraction done as VPU FMAs (MXU would be ~2% used).
    pts = xyz_ref[0]                                            # [N, 3]
    pe1_w = pe1_w_ref[...]                                      # [3, EMB] f32
    h = (pts[:, 0:1] * pe1_w[0:1, :]
         + pts[:, 1:2] * pe1_w[1:2, :]
         + pts[:, 2:3] * pe1_w[2:3, :]
         + pe1_b_ref[...])
    h = jnp.maximum(h, 0.0)
    pfeat = (jnp.dot(h.astype(bf16), pe2_w_ref[...],
                     preferred_element_type=f32) + pe2_b_ref[...])  # [N, EMB]

    # ---- text resizer: Linear + LayerNorm(eps=1e-12) ----
    # TODO(synk): RoBERTa encoder/tokenizer have no Pallas equivalent; text_ref
    # stands in for the encoder output, attention mask assumed all-valid.
    t = (jnp.dot(text_ref[0].astype(bf16), tr_w_ref[...],
                 preferred_element_type=f32) + tr_b_ref[...])
    t = _layer_norm(t, tr_g_ref[...], tr_beta_ref[...], 1e-12)      # [Lg, EMB]

    # ---- view sampler: learned queries cross-attend to point features ----
    # TODO(synk): ViewDistanceSampler definition not provided; approximated.
    sq = (jnp.dot(vq_ref[...].astype(bf16), smp_wq_ref[...],
                  preferred_element_type=f32) + smp_bq_ref[...])     # [Ns, EMB]
    skv = (jnp.dot(pfeat.astype(bf16), smp_wkv_ref[...],              # fused K/V
                   preferred_element_type=f32) + smp_bkv_ref[...])   # [N, 2E]
    sampled = _attend(sq, skv[:, :EMB], skv[:, EMB:],
                      smp_wo_ref[...], smp_bo_ref[...], neg=None)    # [Ns, EMB]

    # query = concat([sampled, text], axis=0), built in a VMEM slab
    q_buf[0:N_SAMPLE, :] = sampled
    q_buf[N_SAMPLE:L_Q, :] = t
    query = q_buf[...]                                               # [L_Q, EMB]

    pos = pos_ref[...]                                               # [L_Q, EMB]
    mrow = qmrow_ref[0]                                              # [1, L_Q]
    neg_sa = (1.0 - mrow) * NEG_INF                                  # f32 mask

    # ---- transformer decoder layer (post-norm, DETR style) + final norm ----
    # TODO(synk): TransformerDecoderLayer definition not provided; standard
    # self-attn -> cross-attn -> FFN post-norm layer used (dropout=0).
    qp = query + pos
    qk = (jnp.dot(qp.astype(bf16), sa_wqk_ref[...],                  # fused Q/K
                  preferred_element_type=f32) + sa_bqk_ref[...])     # [L_Q, 2E]
    vv = (jnp.dot(query.astype(bf16), sa_wv_ref[...],                # V w/o pos
                  preferred_element_type=f32) + sa_bv_ref[...])
    sa = _attend(qk[:, :EMB], qk[:, EMB:], vv,
                 sa_wo_ref[...], sa_bo_ref[...], neg=neg_sa)
    tgt = _layer_norm(query + sa, n1_g_ref[...], n1_b_ref[...], 1e-5)

    cq = (jnp.dot((tgt + pos).astype(bf16), ca_wq_ref[...],
                  preferred_element_type=f32) + ca_bq_ref[...])
    ckv = (jnp.dot(pfeat.astype(bf16), ca_wkv_ref[...],              # fused K/V
                   preferred_element_type=f32) + ca_bkv_ref[...])    # [N, 2E]
    ca = _attend(cq, ckv[:, :EMB], ckv[:, EMB:],
                 ca_wo_ref[...], ca_bo_ref[...], neg=None)
    tgt = _layer_norm(tgt + ca, n2_g_ref[...], n2_b_ref[...], 1e-5)

    f1 = jnp.maximum(jnp.dot(tgt.astype(bf16), ffn1_w_ref[...],
                             preferred_element_type=f32) + ffn1_b_ref[...], 0.0)
    f2 = (jnp.dot(f1.astype(bf16), ffn2_w_ref[...],
                  preferred_element_type=f32) + ffn2_b_ref[...])
    tgt = _layer_norm(tgt + f2, n3_g_ref[...], n3_b_ref[...], 1e-5)
    qfin = _layer_norm(tgt, nf_g_ref[...], nf_b_ref[...], 1e-5)      # [L_Q, EMB]

    # ---- affordance head (reduce over queries first, then one matvec) ----
    #   aff_n = sigmoid( sum_l mask_l * <q_l, pfeat_n> / sum_l mask_l )
    # division is applied on the [1,EMB] query-sum (cheaper than on [1,N]).
    mcol = qmcol_ref[0]                                              # [L_Q, 1]
    qsum = jnp.sum(qfin * mcol, axis=0, keepdims=True)               # [1, EMB]
    den = jnp.maximum(jnp.sum(mrow, axis=1, keepdims=True), 1.0)     # [1, 1]
    qsum = qsum / den                                                # [1, EMB]
    aff = jax.lax.dot_general(qsum.astype(bf16), pfeat.astype(bf16),
                              (((1,), (1,)), ((), ())),
                              preferred_element_type=f32)            # [1, N]
    out_ref[0] = jax.nn.sigmoid(aff)


# --------------------------- parameters --------------------------------------

def init_params(key):
    it = iter(jax.random.split(key, 24))

    def w(shape, scale=0.02, dtype=jnp.bfloat16):
        return (jax.random.normal(next(it), shape, jnp.float32) * scale).astype(dtype)

    def zeros(n):
        return jnp.zeros((1, n), jnp.float32)

    def ones(n):
        return jnp.ones((1, n), jnp.float32)

    p = {}
    # point encoder (per-point MLP stand-in)
    p["pe1_w"] = w((3, EMB), dtype=jnp.float32)   # used on the VPU, keep f32
    p["pe1_b"] = zeros(EMB)
    p["pe2_w"] = w((EMB, EMB))
    p["pe2_b"] = zeros(EMB)
    # text resizer (Linear + LayerNorm)
    p["tr_w"] = w((TEXT_HIDDEN, EMB))
    p["tr_b"] = zeros(EMB)
    p["tr_g"] = ones(EMB)
    p["tr_beta"] = zeros(EMB)
    # view sampler
    p["view_q"] = jax.random.normal(next(it), (N_SAMPLE, EMB), jnp.float32) * 0.2
    p["pos3d"] = jax.random.normal(next(it), (L_Q, EMB), jnp.float32) * 0.2
    p["smp_wq"] = w((EMB, EMB));      p["smp_bq"] = zeros(EMB)
    p["smp_wkv"] = w((EMB, 2 * EMB)); p["smp_bkv"] = zeros(2 * EMB)
    p["smp_wo"] = w((EMB, EMB));      p["smp_bo"] = zeros(EMB)     # bf16 at rest
    # decoder self-attention (fused Q/K; V projected without pos)
    p["sa_wqk"] = w((EMB, 2 * EMB));  p["sa_bqk"] = zeros(2 * EMB)
    p["sa_wv"] = w((EMB, EMB));       p["sa_bv"] = zeros(EMB)
    p["sa_wo"] = w((EMB, EMB));       p["sa_bo"] = zeros(EMB)      # bf16 at rest
    # decoder cross-attention (fused K/V)
    p["ca_wq"] = w((EMB, EMB));       p["ca_bq"] = zeros(EMB)
    p["ca_wkv"] = w((EMB, 2 * EMB));  p["ca_bkv"] = zeros(2 * EMB)
    p["ca_wo"] = w((EMB, EMB));       p["ca_bo"] = zeros(EMB)      # bf16 at rest
    # FFN
    p["ffn1_w"] = w((EMB, FFN_DIM));  p["ffn1_b"] = zeros(FFN_DIM)
    p["ffn2_w"] = w((FFN_DIM, EMB));  p["ffn2_b"] = zeros(EMB)
    # LayerNorms
    for n in ("n1", "n2", "n3", "nf"):
        p[n + "_g"] = ones(EMB)
        p[n + "_b"] = zeros(EMB)
    return p


# --------------------------- forward ------------------------------------------

def point_sam_forward(params, text_emb, xyz, view_mask):
    """
    text_emb:  [B, n_groups, TEXT_HIDDEN]  (stand-in for RoBERTa last_hidden_state)
    xyz:       [B, 3, N_PTS]
    view_mask: [B, N_SAMPLE] float (1 = valid sampled view)
    returns    [B, N_PTS] sigmoid affordance
    """
    Bc = xyz.shape[0]
    xyz_nc = jnp.transpose(xyz, (0, 2, 1))                    # [B, N, 3] (glue)
    t_mask = jnp.ones((Bc, N_GROUPS), jnp.float32)
    qmask = jnp.concatenate([view_mask.astype(jnp.float32), t_mask], axis=1)
    qmask_row = qmask[:, None, :]                             # [B, 1, L_Q]
    qmask_col = qmask[:, :, None]                             # [B, L_Q, 1]

    data_specs = [
        pl.BlockSpec((1, N_PTS, 3), lambda b: (b, 0, 0)),
        pl.BlockSpec((1, N_GROUPS, TEXT_HIDDEN), lambda b: (b, 0, 0)),
        pl.BlockSpec((1, 1, L_Q), lambda b: (b, 0, 0)),
        pl.BlockSpec((1, L_Q, 1), lambda b: (b, 0, 0)),
    ]
    weights = [params[name] for name in _WEIGHT_ORDER]        # all 2-D
    # constant block index -> each weight is DMA'd to VMEM once for the grid
    weight_specs = [pl.BlockSpec(w.shape, lambda b: (0, 0)) for w in weights]

    out = pl.pallas_call(
        _pointsam_kernel,
        grid=(Bc,),
        in_specs=data_specs + weight_specs,
        out_specs=pl.BlockSpec((1, 1, N_PTS), lambda b: (b, 0, 0)),
        out_shape=jax.ShapeDtypeStruct((Bc, 1, N_PTS), jnp.float32),
        scratch_shapes=[pltpu.VMEM((L_Q, EMB), jnp.float32)],
        compiler_params=pltpu.CompilerParams(
            dimension_semantics=("parallel",)),
    )(xyz_nc, text_emb, qmask_row, qmask_col, *weights)
    return out.reshape(Bc, N_PTS)


# --------------------------- main ------------------------------------------------

if __name__ == "__main__":
    key = jax.random.PRNGKey(0)
    kp, kt, kx = jax.random.split(key, 3)
    params = init_params(kp)
    text_emb = jax.random.normal(kt, (B, N_GROUPS, TEXT_HIDDEN), jnp.float32)
    xyz = jax.random.normal(kx, (B, 3, N_PTS), jnp.float32)
    view_mask = jnp.array([[1.0, 1.0, 1.0, 0.0],
                           [1.0, 1.0, 0.0, 0.0]], jnp.float32)   # [B, N_SAMPLE]

    out = jax.jit(point_sam_forward)(params, text_emb, xyz, view_mask)
    out = jax.block_until_ready(out)
    assert out.shape == (B, N_PTS)
    assert bool(jnp.all(jnp.isfinite(out)))
    print("KERNEL_OK")
</pallas_src>

<mosaic_0001>
module attributes {stable_mosaic.version = 11 : i64} {
  func.func @_pointsam_kernel(%arg0: i32, %arg1: memref<1x128x3xf32, #tpu.memory_space<vmem>>, %arg2: memref<1x8x64xf32, #tpu.memory_space<vmem>>, %arg3: memref<1x1x12xf32, #tpu.memory_space<vmem>>, %arg4: memref<1x12x1xf32, #tpu.memory_space<vmem>>, %arg5: memref<3x32xf32, #tpu.memory_space<vmem>>, %arg6: memref<1x32xf32, #tpu.memory_space<vmem>>, %arg7: memref<32x32xbf16, #tpu.memory_space<vmem>>, %arg8: memref<1x32xf32, #tpu.memory_space<vmem>>, %arg9: memref<64x32xbf16, #tpu.memory_space<vmem>>, %arg10: memref<1x32xf32, #tpu.memory_space<vmem>>, %arg11: memref<1x32xf32, #tpu.memory_space<vmem>>, %arg12: memref<1x32xf32, #tpu.memory_space<vmem>>, %arg13: memref<4x32xf32, #tpu.memory_space<vmem>>, %arg14: memref<12x32xf32, #tpu.memory_space<vmem>>, %arg15: memref<32x32xbf16, #tpu.memory_space<vmem>>, %arg16: memref<1x32xf32, #tpu.memory_space<vmem>>, %arg17: memref<32x64xbf16, #tpu.memory_space<vmem>>, %arg18: memref<1x64xf32, #tpu.memory_space<vmem>>, %arg19: memref<32x32xbf16, #tpu.memory_space<vmem>>, %arg20: memref<1x32xf32, #tpu.memory_space<vmem>>, %arg21: memref<32x64xbf16, #tpu.memory_space<vmem>>, %arg22: memref<1x64xf32, #tpu.memory_space<vmem>>, %arg23: memref<32x32xbf16, #tpu.memory_space<vmem>>, %arg24: memref<1x32xf32, #tpu.memory_space<vmem>>, %arg25: memref<32x32xbf16, #tpu.memory_space<vmem>>, %arg26: memref<1x32xf32, #tpu.memory_space<vmem>>, %arg27: memref<32x32xbf16, #tpu.memory_space<vmem>>, %arg28: memref<1x32xf32, #tpu.memory_space<vmem>>, %arg29: memref<32x64xbf16, #tpu.memory_space<vmem>>, %arg30: memref<1x64xf32, #tpu.memory_space<vmem>>, %arg31: memref<32x32xbf16, #tpu.memory_space<vmem>>, %arg32: memref<1x32xf32, #tpu.memory_space<vmem>>, %arg33: memref<32x64xbf16, #tpu.memory_space<vmem>>, %arg34: memref<1x64xf32, #tpu.memory_space<vmem>>, %arg35: memref<64x32xbf16, #tpu.memory_space<vmem>>, %arg36: memref<1x32xf32, #tpu.memory_space<vmem>>, %arg37: memref<1x32xf32, #tpu.memory_space<vmem>>, %arg38: memref<1x32xf32, #tpu.memory_space<vmem>>, %arg39: memref<1x32xf32, #tpu.memory_space<vmem>>, %arg40: memref<1x32xf32, #tpu.memory_space<vmem>>, %arg41: memref<1x32xf32, #tpu.memory_space<vmem>>, %arg42: memref<1x32xf32, #tpu.memory_space<vmem>>, %arg43: memref<1x32xf32, #tpu.memory_space<vmem>>, %arg44: memref<1x32xf32, #tpu.memory_space<vmem>>, %arg45: memref<1x1x128xf32, #tpu.memory_space<vmem>>, %arg46: memref<12x32xf32, #tpu.memory_space<vmem>>) attributes {dimension_semantics = [#tpu.dimension_semantics<parallel>], iteration_bounds = array<i64: 2>, scalar_prefetch = 0 : i64, scratch_operands = 1 : i64, tpu.core_type = #tpu.core_type<tc>, window_params = [{transform_indices = @transform_0, window_bounds = array<i64: 1, 128, 3>}, {transform_indices = @transform_1, window_bounds = array<i64: 1, 8, 64>}, {transform_indices = @transform_2, window_bounds = array<i64: 1, 1, 12>}, {transform_indices = @transform_3, window_bounds = array<i64: 1, 12, 1>}, {pipeline_mode = #tpu.pipeline_mode<synchronous>, transform_indices = @transform_4, window_bounds = array<i64: 3, 32>}, {pipeline_mode = #tpu.pipeline_mode<synchronous>, transform_indices = @transform_5, window_bounds = array<i64: 1, 32>}, {pipeline_mode = #tpu.pipeline_mode<synchronous>, transform_indices = @transform_6, window_bounds = array<i64: 32, 32>}, {pipeline_mode = #tpu.pipeline_mode<synchronous>, transform_indices = @transform_7, window_bounds = array<i64: 1, 32>}, {pipeline_mode = #tpu.pipeline_mode<synchronous>, transform_indices = @transform_8, window_bounds = array<i64: 64, 32>}, {pipeline_mode = #tpu.pipeline_mode<synchronous>, transform_indices = @transform_9, window_bounds = array<i64: 1, 32>}, {pipeline_mode = #tpu.pipeline_mode<synchronous>, transform_indices = @transform_10, window_bounds = array<i64: 1, 32>}, {pipeline_mode = #tpu.pipeline_mode<synchronous>, transform_indices = @transform_11, window_bounds = array<i64: 1, 32>}, {pipeline_mode = #tpu.pipeline_mode<synchronous>, transform_indices = @transform_12, window_bounds = array<i64: 4, 32>}, {pipeline_mode = #tpu.pipeline_mode<synchronous>, transform_indices = @transform_13, window_bounds = array<i64: 12, 32>}, {pipeline_mode = #tpu.pipeline_mode<synchronous>, transform_indices = @transform_14, window_bounds = array<i64: 32, 32>}, {pipeline_mode = #tpu.pipeline_mode<synchronous>, transform_indices = @transform_15, window_bounds = array<i64: 1, 32>}, {pipeline_mode = #tpu.pipeline_mode<synchronous>, transform_indices = @transform_16, window_bounds = array<i64: 32, 64>}, {pipeline_mode = #tpu.pipeline_mode<synchronous>, transform_indices = @transform_17, window_bounds = array<i64: 1, 64>}, {pipeline_mode = #tpu.pipeline_mode<synchronous>, transform_indices = @transform_18, window_bounds = array<i64: 32, 32>}, {pipeline_mode = #tpu.pipeline_mode<synchronous>, transform_indices = @transform_19, window_bounds = array<i64: 1, 32>}, {pipeline_mode = #tpu.pipeline_mode<synchronous>, transform_indices = @transform_20, window_bounds = array<i64: 32, 64>}, {pipeline_mode = #tpu.pipeline_mode<synchronous>, transform_indices = @transform_21, window_bounds = array<i64: 1, 64>}, {pipeline_mode = #tpu.pipeline_mode<synchronous>, transform_indices = @transform_22, window_bounds = array<i64: 32, 32>}, {pipeline_mode = #tpu.pipeline_mode<synchronous>, transform_indices = @transform_23, window_bounds = array<i64: 1, 32>}, {pipeline_mode = #tpu.pipeline_mode<synchronous>, transform_indices = @transform_24, window_bounds = array<i64: 32, 32>}, {pipeline_mode = #tpu.pipeline_mode<synchronous>, transform_indices = @transform_25, window_bounds = array<i64: 1, 32>}, {pipeline_mode = #tpu.pipeline_mode<synchronous>, transform_indices = @transform_26, window_bounds = array<i64: 32, 32>}, {pipeline_mode = #tpu.pipeline_mode<synchronous>, transform_indices = @transform_27, window_bounds = array<i64: 1, 32>}, {pipeline_mode = #tpu.pipeline_mode<synchronous>, transform_indices = @transform_28, window_bounds = array<i64: 32, 64>}, {pipeline_mode = #tpu.pipeline_mode<synchronous>, transform_indices = @transform_29, window_bounds = array<i64: 1, 64>}, {pipeline_mode = #tpu.pipeline_mode<synchronous>, transform_indices = @transform_30, window_bounds = array<i64: 32, 32>}, {pipeline_mode = #tpu.pipeline_mode<synchronous>, transform_indices = @transform_31, window_bounds = array<i64: 1, 32>}, {pipeline_mode = #tpu.pipeline_mode<synchronous>, transform_indices = @transform_32, window_bounds = array<i64: 32, 64>}, {pipeline_mode = #tpu.pipeline_mode<synchronous>, transform_indices = @transform_33, window_bounds = array<i64: 1, 64>}, {pipeline_mode = #tpu.pipeline_mode<synchronous>, transform_indices = @transform_34, window_bounds = array<i64: 64, 32>}, {pipeline_mode = #tpu.pipeline_mode<synchronous>, transform_indices = @transform_35, window_bounds = array<i64: 1, 32>}, {pipeline_mode = #tpu.pipeline_mode<synchronous>, transform_indices = @transform_36, window_bounds = array<i64: 1, 32>}, {pipeline_mode = #tpu.pipeline_mode<synchronous>, transform_indices = @transform_37, window_bounds = array<i64: 1, 32>}, {pipeline_mode = #tpu.pipeline_mode<synchronous>, transform_indices = @transform_38, window_bounds = array<i64: 1, 32>}, {pipeline_mode = #tpu.pipeline_mode<synchronous>, transform_indices = @transform_39, window_bounds = array<i64: 1, 32>}, {pipeline_mode = #tpu.pipeline_mode<synchronous>, transform_indices = @transform_40, window_bounds = array<i64: 1, 32>}, {pipeline_mode = #tpu.pipeline_mode<synchronous>, transform_indices = @transform_41, window_bounds = array<i64: 1, 32>}, {pipeline_mode = #tpu.pipeline_mode<synchronous>, transform_indices = @transform_42, window_bounds = array<i64: 1, 32>}, {pipeline_mode = #tpu.pipeline_mode<synchronous>, transform_indices = @transform_43, window_bounds = array<i64: 1, 32>}, {transform_indices = @transform_44, window_bounds = array<i64: 1, 1, 128>}]} {
    %c0 = arith.constant 0 : index
    %c0_0 = arith.constant 0 : index
    %c0_1 = arith.constant 0 : index
    %0 = vector.load %arg1[%c0, %c0_0, %c0_1] : memref<1x128x3xf32, #tpu.memory_space<vmem>>, vector<1x128x3xf32>
    %1 = vector.shape_cast %0 : vector<1x128x3xf32> to vector<128x3xf32>
    %c0_2 = arith.constant 0 : index
    %c0_3 = arith.constant 0 : index
    %2 = vector.load %arg5[%c0_2, %c0_3] : memref<3x32xf32, #tpu.memory_space<vmem>>, vector<3x32xf32>
    %3 = vector.extract_strided_slice %1 {offsets = [0, 0], sizes = [128, 1], strides = [1, 1]} : vector<128x3xf32> to vector<128x1xf32>
    %4 = vector.extract_strided_slice %2 {offsets = [0, 0], sizes = [1, 32], strides = [1, 1]} : vector<3x32xf32> to vector<1x32xf32>
    %5 = vector.broadcast %3 : vector<128x1xf32> to vector<128x32xf32>
    %6 = vector.broadcast %4 : vector<1x32xf32> to vector<128x32xf32>
    %7 = arith.mulf %5, %6 : vector<128x32xf32>
    %8 = vector.extract_strided_slice %1 {offsets = [0, 1], sizes = [128, 1], strides = [1, 1]} : vector<128x3xf32> to vector<128x1xf32>
    %9 = vector.extract_strided_slice %2 {offsets = [1, 0], sizes = [1, 32], strides = [1, 1]} : vector<3x32xf32> to vector<1x32xf32>
    %10 = vector.broadcast %8 : vector<128x1xf32> to vector<128x32xf32>
    %11 = vector.broadcast %9 : vector<1x32xf32> to vector<128x32xf32>
    %12 = arith.mulf %10, %11 : vector<128x32xf32>
    %13 = arith.addf %7, %12 : vector<128x32xf32>
    %14 = vector.extract_strided_slice %1 {offsets = [0, 2], sizes = [128, 1], strides = [1, 1]} : vector<128x3xf32> to vector<128x1xf32>
    %15 = vector.extract_strided_slice %2 {offsets = [2, 0], sizes = [1, 32], strides = [1, 1]} : vector<3x32xf32> to vector<1x32xf32>
    %16 = vector.broadcast %14 : vector<128x1xf32> to vector<128x32xf32>
    %17 = vector.broadcast %15 : vector<1x32xf32> to vector<128x32xf32>
    %18 = arith.mulf %16, %17 : vector<128x32xf32>
    %19 = arith.addf %13, %18 : vector<128x32xf32>
    %c0_4 = arith.constant 0 : index
    %c0_5 = arith.constant 0 : index
    %20 = vector.load %arg6[%c0_4, %c0_5] : memref<1x32xf32, #tpu.memory_space<vmem>>, vector<1x32xf32>
    %21 = vector.broadcast %20 : vector<1x32xf32> to vector<128x32xf32>
    %22 = arith.addf %19, %21 : vector<128x32xf32>
    %cst = arith.constant 0.000000e+00 : f32
    %23 = vector.broadcast %cst : f32 to vector<128x32xf32>
    %24 = arith.maximumf %22, %23 : vector<128x32xf32>
    %25 = arith.truncf %24 : vector<128x32xf32> to vector<128x32xbf16>
    %c0_6 = arith.constant 0 : index
    %c0_7 = arith.constant 0 : index
    %26 = vector.load %arg7[%c0_6, %c0_7] : memref<32x32xbf16, #tpu.memory_space<vmem>>, vector<32x32xbf16>
    %cst_8 = arith.constant dense<0.000000e+00> : vector<128x32xf32>
    %27 = tpu.matmul %25, %26, %cst_8 {dimension_numbers = #tpu.dot_dimension_numbers<[1], [0], [0], [1], [0, 0, 1, 1], [], []>} : vector<128x32xbf16>, vector<32x32xbf16>, vector<128x32xf32> -> vector<128x32xf32>
    %c0_9 = arith.constant 0 : index
    %c0_10 = arith.constant 0 : index
    %28 = vector.load %arg8[%c0_9, %c0_10] : memref<1x32xf32, #tpu.memory_space<vmem>>, vector<1x32xf32>
    %29 = vector.broadcast %28 : vector<1x32xf32> to vector<128x32xf32>
    %30 = arith.addf %27, %29 : vector<128x32xf32>
    %c0_11 = arith.constant 0 : index
    %c0_12 = arith.constant 0 : index
    %c0_13 = arith.constant 0 : index
    %31 = vector.load %arg2[%c0_11, %c0_12, %c0_13] : memref<1x8x64xf32, #tpu.memory_space<vmem>>, vector<1x8x64xf32>
    %32 = vector.shape_cast %31 : vector<1x8x64xf32> to vector<8x64xf32>
    %33 = arith.truncf %32 : vector<8x64xf32> to vector<8x64xbf16>
    %c0_14 = arith.constant 0 : index
    %c0_15 = arith.constant 0 : index
    %34 = vector.load %arg9[%c0_14, %c0_15] : memref<64x32xbf16, #tpu.memory_space<vmem>>, vector<64x32xbf16>
    %cst_16 = arith.constant dense<0.000000e+00> : vector<8x32xf32>
    %35 = tpu.matmul %33, %34, %cst_16 {dimension_numbers = #tpu.dot_dimension_numbers<[1], [0], [0], [1], [0, 0, 1, 1], [], []>} : vector<8x64xbf16>, vector<64x32xbf16>, vector<8x32xf32> -> vector<8x32xf32>
    %c0_17 = arith.constant 0 : index
    %c0_18 = arith.constant 0 : index
    %36 = vector.load %arg10[%c0_17, %c0_18] : memref<1x32xf32, #tpu.memory_space<vmem>>, vector<1x32xf32>
    %37 = vector.broadcast %36 : vector<1x32xf32> to vector<8x32xf32>
    %38 = arith.addf %35, %37 : vector<8x32xf32>
    %c0_19 = arith.constant 0 : index
    %c0_20 = arith.constant 0 : index
    %39 = vector.load %arg11[%c0_19, %c0_20] : memref<1x32xf32, #tpu.memory_space<vmem>>, vector<1x32xf32>
    %c0_21 = arith.constant 0 : index
    %c0_22 = arith.constant 0 : index
    %40 = vector.load %arg12[%c0_21, %c0_22] : memref<1x32xf32, #tpu.memory_space<vmem>>, vector<1x32xf32>
    %cst_23 = arith.constant dense<0.000000e+00> : vector<8xf32>
    %41 = vector.multi_reduction <add>, %38, %cst_23 [1] : vector<8x32xf32> to vector<8xf32>
    %42 = vector.shape_cast %41 : vector<8xf32> to vector<8x1xf32>
    %cst_24 = arith.constant 3.200000e+01 : f32
    %43 = vector.broadcast %cst_24 : f32 to vector<8x1xf32>
    %44 = arith.divf %42, %43 : vector<8x1xf32>
    %45 = vector.broadcast %44 : vector<8x1xf32> to vector<8x32xf32>
    %46 = arith.subf %38, %45 : vector<8x32xf32>
    %47 = arith.mulf %46, %46 : vector<8x32xf32>
    %cst_25 = arith.constant dense<0.000000e+00> : vector<8xf32>
    %48 = vector.multi_reduction <add>, %47, %cst_25 [1] : vector<8x32xf32> to vector<8xf32>
    %49 = vector.shape_cast %48 : vector<8xf32> to vector<8x1xf32>
    %cst_26 = arith.constant 3.200000e+01 : f32
    %50 = vector.broadcast %cst_26 : f32 to vector<8x1xf32>
    %51 = arith.divf %49, %50 : vector<8x1xf32>
    %52 = vector.broadcast %44 : vector<8x1xf32> to vector<8x32xf32>
    %53 = arith.subf %38, %52 : vector<8x32xf32>
    %cst_27 = arith.constant 9.99999996E-13 : f32
    %54 = vector.broadcast %cst_27 : f32 to vector<8x1xf32>
    %55 = arith.addf %51, %54 : vector<8x1xf32>
    %56 = math.rsqrt %55 : vector<8x1xf32>
    %57 = vector.broadcast %56 : vector<8x1xf32> to vector<8x32xf32>
    %58 = arith.mulf %53, %57 : vector<8x32xf32>
    %59 = vector.broadcast %39 : vector<1x32xf32> to vector<8x32xf32>
    %60 = arith.mulf %58, %59 : vector<8x32xf32>
    %61 = vector.broadcast %40 : vector<1x32xf32> to vector<8x32xf32>
    %62 = arith.addf %60, %61 : vector<8x32xf32>
    %c0_28 = arith.constant 0 : index
    %c0_29 = arith.constant 0 : index
    %63 = vector.load %arg13[%c0_28, %c0_29] : memref<4x32xf32, #tpu.memory_space<vmem>>, vector<4x32xf32>
    %64 = arith.truncf %63 : vector<4x32xf32> to vector<4x32xbf16>
    %c0_30 = arith.constant 0 : index
    %c0_31 = arith.constant 0 : index
    %65 = vector.load %arg15[%c0_30, %c0_31] : memref<32x32xbf16, #tpu.memory_space<vmem>>, vector<32x32xbf16>
    %cst_32 = arith.constant dense<0.000000e+00> : vector<4x32xf32>
    %66 = tpu.matmul %64, %65, %cst_32 {dimension_numbers = #tpu.dot_dimension_numbers<[1], [0], [0], [1], [0, 0, 1, 1], [], []>} : vector<4x32xbf16>, vector<32x32xbf16>, vector<4x32xf32> -> vector<4x32xf32>
    %c0_33 = arith.constant 0 : index
    %c0_34 = arith.constant 0 : index
    %67 = vector.load %arg16[%c0_33, %c0_34] : memref<1x32xf32, #tpu.memory_space<vmem>>, vector<1x32xf32>
    %68 = vector.broadcast %67 : vector<1x32xf32> to vector<4x32xf32>
    %69 = arith.addf %66, %68 : vector<4x32xf32>
    %70 = arith.truncf %30 : vector<128x32xf32> to vector<128x32xbf16>
    %c0_35 = arith.constant 0 : index
    %c0_36 = arith.constant 0 : index
    %71 = vector.load %arg17[%c0_35, %c0_36] : memref<32x64xbf16, #tpu.memory_space<vmem>>, vector<32x64xbf16>
    %cst_37 = arith.constant dense<0.000000e+00> : vector<128x64xf32>
    %72 = tpu.matmul %70, %71, %cst_37 {dimension_numbers = #tpu.dot_dimension_numbers<[1], [0], [0], [1], [0, 0, 1, 1], [], []>} : vector<128x32xbf16>, vector<32x64xbf16>, vector<128x64xf32> -> vector<128x64xf32>
    %c0_38 = arith.constant 0 : index
    %c0_39 = arith.constant 0 : index
    %73 = vector.load %arg18[%c0_38, %c0_39] : memref<1x64xf32, #tpu.memory_space<vmem>>, vector<1x64xf32>
    %74 = vector.broadcast %73 : vector<1x64xf32> to vector<128x64xf32>
    %75 = arith.addf %72, %74 : vector<128x64xf32>
    %76 = vector.extract_strided_slice %75 {offsets = [0, 0], sizes = [128, 32], strides = [1, 1]} : vector<128x64xf32> to vector<128x32xf32>
    %77 = vector.extract_strided_slice %75 {offsets = [0, 32], sizes = [128, 32], strides = [1, 1]} : vector<128x64xf32> to vector<128x32xf32>
    %c0_40 = arith.constant 0 : index
    %c0_41 = arith.constant 0 : index
    %78 = vector.load %arg19[%c0_40, %c0_41] : memref<32x32xbf16, #tpu.memory_space<vmem>>, vector<32x32xbf16>
    %c0_42 = arith.constant 0 : index
    %c0_43 = arith.constant 0 : index
    %79 = vector.load %arg20[%c0_42, %c0_43] : memref<1x32xf32, #tpu.memory_space<vmem>>, vector<1x32xf32>
    %80 = vector.extract_strided_slice %69 {offsets = [0, 0], sizes = [4, 8], strides = [1, 1]} : vector<4x32xf32> to vector<4x8xf32>
    %81 = arith.truncf %80 : vector<4x8xf32> to vector<4x8xbf16>
    %82 = vector.extract_strided_slice %76 {offsets = [0, 0], sizes = [128, 8], strides = [1, 1]} : vector<128x32xf32> to vector<128x8xf32>
    %83 = arith.truncf %82 : vector<128x8xf32> to vector<128x8xbf16>
    %cst_44 = arith.constant dense<0.000000e+00> : vector<4x128xf32>
    %84 = tpu.matmul %81, %83, %cst_44 {dimension_numbers = #tpu.dot_dimension_numbers<[1], [1], [0], [0], [0, 0, 1, 0], [], []>} : vector<4x8xbf16>, vector<128x8xbf16>, vector<4x128xf32> -> vector<4x128xf32>
    %cst_45 = arith.constant 0.353553385 : f32
    %85 = vector.broadcast %cst_45 : f32 to vector<4x128xf32>
    %86 = arith.mulf %84, %85 : vector<4x128xf32>
    %cst_46 = arith.constant dense<0xFF800000> : vector<4xf32>
    %87 = vector.multi_reduction <maximumf>, %86, %cst_46 [1] : vector<4x128xf32> to vector<4xf32>
    %88 = vector.shape_cast %87 : vector<4xf32> to vector<4x1xf32>
    %89 = vector.broadcast %88 : vector<4x1xf32> to vector<4x128xf32>
    %90 = arith.subf %86, %89 : vector<4x128xf32>
    %91 = math.exp %90 : vector<4x128xf32>
    %cst_47 = arith.constant dense<0.000000e+00> : vector<4xf32>
    %92 = vector.multi_reduction <add>, %91, %cst_47 [1] : vector<4x128xf32> to vector<4xf32>
    %93 = vector.shape_cast %92 : vector<4xf32> to vector<4x1xf32>
    %94 = tpu.reciprocal %93 {approx = true} : vector<4x1xf32> -> vector<4x1xf32>
    %95 = vector.broadcast %94 : vector<4x1xf32> to vector<4x128xf32>
    %96 = arith.mulf %91, %95 : vector<4x128xf32>
    %97 = arith.truncf %96 : vector<4x128xf32> to vector<4x128xbf16>
    %98 = vector.extract_strided_slice %77 {offsets = [0, 0], sizes = [128, 8], strides = [1, 1]} : vector<128x32xf32> to vector<128x8xf32>
    %99 = arith.truncf %98 : vector<128x8xf32> to vector<128x8xbf16>
    %cst_48 = arith.constant dense<0.000000e+00> : vector<4x8xf32>
    %100 = tpu.matmul %97, %99, %cst_48 {dimension_numbers = #tpu.dot_dimension_numbers<[1], [0], [0], [1], [0, 0, 1, 1], [], []>} : vector<4x128xbf16>, vector<128x8xbf16>, vector<4x8xf32> -> vector<4x8xf32>
    %101 = arith.truncf %100 : vector<4x8xf32> to vector<4x8xbf16>
    %102 = vector.extract_strided_slice %78 {offsets = [0, 0], sizes = [8, 32], strides = [1, 1]} : vector<32x32xbf16> to vector<8x32xbf16>
    %cst_49 = arith.constant dense<0.000000e+00> : vector<4x32xf32>
    %103 = tpu.matmul %101, %102, %cst_49 {dimension_numbers = #tpu.dot_dimension_numbers<[1], [0], [0], [1], [0, 0, 1, 1], [], []>} : vector<4x8xbf16>, vector<8x32xbf16>, vector<4x32xf32> -> vector<4x32xf32>
    %104 = vector.extract_strided_slice %69 {offsets = [0, 8], sizes = [4, 8], strides = [1, 1]} : vector<4x32xf32> to vector<4x8xf32>
    %105 = arith.truncf %104 : vector<4x8xf32> to vector<4x8xbf16>
    %106 = vector.extract_strided_slice %76 {offsets = [0, 8], sizes = [128, 8], strides = [1, 1]} : vector<128x32xf32> to vector<128x8xf32>
    %107 = arith.truncf %106 : vector<128x8xf32> to vector<128x8xbf16>
    %cst_50 = arith.constant dense<0.000000e+00> : vector<4x128xf32>
    %108 = tpu.matmul %105, %107, %cst_50 {dimension_numbers = #tpu.dot_dimension_numbers<[1], [1], [0], [0], [0, 0, 1, 0], [], []>} : vector<4x8xbf16>, vector<128x8xbf16>, vector<4x128xf32> -> vector<4x128xf32>
    %cst_51 = arith.constant 0.353553385 : f32
    %109 = vector.broadcast %cst_51 : f32 to vector<4x128xf32>
    %110 = arith.mulf %108, %109 : vector<4x128xf32>
    %cst_52 = arith.constant dense<0xFF800000> : vector<4xf32>
    %111 = vector.multi_reduction <maximumf>, %110, %cst_52 [1] : vector<4x128xf32> to vector<4xf32>
    %112 = vector.shape_cast %111 : vector<4xf32> to vector<4x1xf32>
    %113 = vector.broadcast %112 : vector<4x1xf32> to vector<4x128xf32>
    %114 = arith.subf %110, %113 : vector<4x128xf32>
    %115 = math.exp %114 : vector<4x128xf32>
    %cst_53 = arith.constant dense<0.000000e+00> : vector<4xf32>
    %116 = vector.multi_reduction <add>, %115, %cst_53 [1] : vector<4x128xf32> to vector<4xf32>
    %117 = vector.shape_cast %116 : vector<4xf32> to vector<4x1xf32>
    %118 = tpu.reciprocal %117 {approx = true} : vector<4x1xf32> -> vector<4x1xf32>
    %119 = vector.broadcast %118 : vector<4x1xf32> to vector<4x128xf32>
    %120 = arith.mulf %115, %119 : vector<4x128xf32>
    %121 = arith.truncf %120 : vector<4x128xf32> to vector<4x128xbf16>
    %122 = vector.extract_strided_slice %77 {offsets = [0, 8], sizes = [128, 8], strides = [1, 1]} : vector<128x32xf32> to vector<128x8xf32>
    %123 = arith.truncf %122 : vector<128x8xf32> to vector<128x8xbf16>
    %cst_54 = arith.constant dense<0.000000e+00> : vector<4x8xf32>
    %124 = tpu.matmul %121, %123, %cst_54 {dimension_numbers = #tpu.dot_dimension_numbers<[1], [0], [0], [1], [0, 0, 1, 1], [], []>} : vector<4x128xbf16>, vector<128x8xbf16>, vector<4x8xf32> -> vector<4x8xf32>
    %125 = arith.truncf %124 : vector<4x8xf32> to vector<4x8xbf16>
    %126 = vector.extract_strided_slice %78 {offsets = [8, 0], sizes = [8, 32], strides = [1, 1]} : vector<32x32xbf16> to vector<8x32xbf16>
    %cst_55 = arith.constant dense<0.000000e+00> : vector<4x32xf32>
    %127 = tpu.matmul %125, %126, %cst_55 {dimension_numbers = #tpu.dot_dimension_numbers<[1], [0], [0], [1], [0, 0, 1, 1], [], []>} : vector<4x8xbf16>, vector<8x32xbf16>, vector<4x32xf32> -> vector<4x32xf32>
    %128 = arith.addf %103, %127 : vector<4x32xf32>
    %129 = vector.extract_strided_slice %69 {offsets = [0, 16], sizes = [4, 8], strides = [1, 1]} : vector<4x32xf32> to vector<4x8xf32>
    %130 = arith.truncf %129 : vector<4x8xf32> to vector<4x8xbf16>
    %131 = vector.extract_strided_slice %76 {offsets = [0, 16], sizes = [128, 8], strides = [1, 1]} : vector<128x32xf32> to vector<128x8xf32>
    %132 = arith.truncf %131 : vector<128x8xf32> to vector<128x8xbf16>
    %cst_56 = arith.constant dense<0.000000e+00> : vector<4x128xf32>
    %133 = tpu.matmul %130, %132, %cst_56 {dimension_numbers = #tpu.dot_dimension_numbers<[1], [1], [0], [0], [0, 0, 1, 0], [], []>} : vector<4x8xbf16>, vector<128x8xbf16>, vector<4x128xf32> -> vector<4x128xf32>
    %cst_57 = arith.constant 0.353553385 : f32
    %134 = vector.broadcast %cst_57 : f32 to vector<4x128xf32>
    %135 = arith.mulf %133, %134 : vector<4x128xf32>
    %cst_58 = arith.constant dense<0xFF800000> : vector<4xf32>
    %136 = vector.multi_reduction <maximumf>, %135, %cst_58 [1] : vector<4x128xf32> to vector<4xf32>
    %137 = vector.shape_cast %136 : vector<4xf32> to vector<4x1xf32>
    %138 = vector.broadcast %137 : vector<4x1xf32> to vector<4x128xf32>
    %139 = arith.subf %135, %138 : vector<4x128xf32>
    %140 = math.exp %139 : vector<4x128xf32>
    %cst_59 = arith.constant dense<0.000000e+00> : vector<4xf32>
    %141 = vector.multi_reduction <add>, %140, %cst_59 [1] : vector<4x128xf32> to vector<4xf32>
    %142 = vector.shape_cast %141 : vector<4xf32> to vector<4x1xf32>
    %143 = tpu.reciprocal %142 {approx = true} : vector<4x1xf32> -> vector<4x1xf32>
    %144 = vector.broadcast %143 : vector<4x1xf32> to vector<4x128xf32>
    %145 = arith.mulf %140, %144 : vector<4x128xf32>
    %146 = arith.truncf %145 : vector<4x128xf32> to vector<4x128xbf16>
    %147 = vector.extract_strided_slice %77 {offsets = [0, 16], sizes = [128, 8], strides = [1, 1]} : vector<128x32xf32> to vector<128x8xf32>
    %148 = arith.truncf %147 : vector<128x8xf32> to vector<128x8xbf16>
    %cst_60 = arith.constant dense<0.000000e+00> : vector<4x8xf32>
    %149 = tpu.matmul %146, %148, %cst_60 {dimension_numbers = #tpu.dot_dimension_numbers<[1], [0], [0], [1], [0, 0, 1, 1], [], []>} : vector<4x128xbf16>, vector<128x8xbf16>, vector<4x8xf32> -> vector<4x8xf32>
    %150 = arith.truncf %149 : vector<4x8xf32> to vector<4x8xbf16>
    %151 = vector.extract_strided_slice %78 {offsets = [16, 0], sizes = [8, 32], strides = [1, 1]} : vector<32x32xbf16> to vector<8x32xbf16>
    %cst_61 = arith.constant dense<0.000000e+00> : vector<4x32xf32>
    %152 = tpu.matmul %150, %151, %cst_61 {dimension_numbers = #tpu.dot_dimension_numbers<[1], [0], [0], [1], [0, 0, 1, 1], [], []>} : vector<4x8xbf16>, vector<8x32xbf16>, vector<4x32xf32> -> vector<4x32xf32>
    %153 = arith.addf %128, %152 : vector<4x32xf32>
    %154 = vector.extract_strided_slice %69 {offsets = [0, 24], sizes = [4, 8], strides = [1, 1]} : vector<4x32xf32> to vector<4x8xf32>
    %155 = arith.truncf %154 : vector<4x8xf32> to vector<4x8xbf16>
    %156 = vector.extract_strided_slice %76 {offsets = [0, 24], sizes = [128, 8], strides = [1, 1]} : vector<128x32xf32> to vector<128x8xf32>
    %157 = arith.truncf %156 : vector<128x8xf32> to vector<128x8xbf16>
    %cst_62 = arith.constant dense<0.000000e+00> : vector<4x128xf32>
    %158 = tpu.matmul %155, %157, %cst_62 {dimension_numbers = #tpu.dot_dimension_numbers<[1], [1], [0], [0], [0, 0, 1, 0], [], []>} : vector<4x8xbf16>, vector<128x8xbf16>, vector<4x128xf32> -> vector<4x128xf32>
    %cst_63 = arith.constant 0.353553385 : f32
    %159 = vector.broadcast %cst_63 : f32 to vector<4x128xf32>
    %160 = arith.mulf %158, %159 : vector<4x128xf32>
    %cst_64 = arith.constant dense<0xFF800000> : vector<4xf32>
    %161 = vector.multi_reduction <maximumf>, %160, %cst_64 [1] : vector<4x128xf32> to vector<4xf32>
    %162 = vector.shape_cast %161 : vector<4xf32> to vector<4x1xf32>
    %163 = vector.broadcast %162 : vector<4x1xf32> to vector<4x128xf32>
    %164 = arith.subf %160, %163 : vector<4x128xf32>
    %165 = math.exp %164 : vector<4x128xf32>
    %cst_65 = arith.constant dense<0.000000e+00> : vector<4xf32>
    %166 = vector.multi_reduction <add>, %165, %cst_65 [1] : vector<4x128xf32> to vector<4xf32>
    %167 = vector.shape_cast %166 : vector<4xf32> to vector<4x1xf32>
    %168 = tpu.reciprocal %167 {approx = true} : vector<4x1xf32> -> vector<4x1xf32>
    %169 = vector.broadcast %168 : vector<4x1xf32> to vector<4x128xf32>
    %170 = arith.mulf %165, %169 : vector<4x128xf32>
    %171 = arith.truncf %170 : vector<4x128xf32> to vector<4x128xbf16>
    %172 = vector.extract_strided_slice %77 {offsets = [0, 24], sizes = [128, 8], strides = [1, 1]} : vector<128x32xf32> to vector<128x8xf32>
    %173 = arith.truncf %172 : vector<128x8xf32> to vector<128x8xbf16>
    %cst_66 = arith.constant dense<0.000000e+00> : vector<4x8xf32>
    %174 = tpu.matmul %171, %173, %cst_66 {dimension_numbers = #tpu.dot_dimension_numbers<[1], [0], [0], [1], [0, 0, 1, 1], [], []>} : vector<4x128xbf16>, vector<128x8xbf16>, vector<4x8xf32> -> vector<4x8xf32>
    %175 = arith.truncf %174 : vector<4x8xf32> to vector<4x8xbf16>
    %176 = vector.extract_strided_slice %78 {offsets = [24, 0], sizes = [8, 32], strides = [1, 1]} : vector<32x32xbf16> to vector<8x32xbf16>
    %cst_67 = arith.constant dense<0.000000e+00> : vector<4x32xf32>
    %177 = tpu.matmul %175, %176, %cst_67 {dimension_numbers = #tpu.dot_dimension_numbers<[1], [0], [0], [1], [0, 0, 1, 1], [], []>} : vector<4x8xbf16>, vector<8x32xbf16>, vector<4x32xf32> -> vector<4x32xf32>
    %178 = arith.addf %153, %177 : vector<4x32xf32>
    %179 = vector.broadcast %79 : vector<1x32xf32> to vector<4x32xf32>
    %180 = arith.addf %178, %179 : vector<4x32xf32>
    %c0_68 = arith.constant 0 : index
    %c0_69 = arith.constant 0 : index
    %181 = vector.load %arg46[%c0_68, %c0_69] : memref<12x32xf32, #tpu.memory_space<vmem>>, vector<4x32xf32>
    tpu.vector_store %arg46[%c0_68, %c0_69], %180 {strides = array<i32>} : memref<12x32xf32, #tpu.memory_space<vmem>>, vector<4x32xf32>,
    %c4 = arith.constant 4 : index
    %c0_70 = arith.constant 0 : index
    %182 = vector.load %arg46[%c4, %c0_70] : memref<12x32xf32, #tpu.memory_space<vmem>>, vector<8x32xf32>
    tpu.vector_store %arg46[%c4, %c0_70], %62 {strides = array<i32>} : memref<12x32xf32, #tpu.memory_space<vmem>>, vector<8x32xf32>,
    %c0_71 = arith.constant 0 : index
    %c0_72 = arith.constant 0 : index
    %183 = vector.load %arg46[%c0_71, %c0_72] : memref<12x32xf32, #tpu.memory_space<vmem>>, vector<12x32xf32>
    %c0_73 = arith.constant 0 : index
    %c0_74 = arith.constant 0 : index
    %184 = vector.load %arg14[%c0_73, %c0_74] : memref<12x32xf32, #tpu.memory_space<vmem>>, vector<12x32xf32>
    %c0_75 = arith.constant 0 : index
    %c0_76 = arith.constant 0 : index
    %c0_77 = arith.constant 0 : index
    %185 = vector.load %arg3[%c0_75, %c0_76, %c0_77] : memref<1x1x12xf32, #tpu.memory_space<vmem>>, vector<1x1x12xf32>
    %186 = vector.shape_cast %185 : vector<1x1x12xf32> to vector<1x12xf32>
    %cst_78 = arith.constant 1.000000e+00 : f32
    %187 = vector.broadcast %cst_78 : f32 to vector<1x12xf32>
    %188 = arith.subf %187, %186 : vector<1x12xf32>
    %cst_79 = arith.constant -1.000000e+09 : f32
    %189 = vector.broadcast %cst_79 : f32 to vector<1x12xf32>
    %190 = arith.mulf %188, %189 : vector<1x12xf32>
    %191 = arith.addf %183, %184 : vector<12x32xf32>
    %192 = arith.truncf %191 : vector<12x32xf32> to vector<12x32xbf16>
    %c0_80 = arith.constant 0 : index
    %c0_81 = arith.constant 0 : index
    %193 = vector.load %arg21[%c0_80, %c0_81] : memref<32x64xbf16, #tpu.memory_space<vmem>>, vector<32x64xbf16>
    %cst_82 = arith.constant dense<0.000000e+00> : vector<12x64xf32>
    %194 = tpu.matmul %192, %193, %cst_82 {dimension_numbers = #tpu.dot_dimension_numbers<[1], [0], [0], [1], [0, 0, 1, 1], [], []>} : vector<12x32xbf16>, vector<32x64xbf16>, vector<12x64xf32> -> vector<12x64xf32>
    %c0_83 = arith.constant 0 : index
    %c0_84 = arith.constant 0 : index
    %195 = vector.load %arg22[%c0_83, %c0_84] : memref<1x64xf32, #tpu.memory_space<vmem>>, vector<1x64xf32>
    %196 = vector.broadcast %195 : vector<1x64xf32> to vector<12x64xf32>
    %197 = arith.addf %194, %196 : vector<12x64xf32>
    %198 = arith.truncf %183 : vector<12x32xf32> to vector<12x32xbf16>
    %c0_85 = arith.constant 0 : index
    %c0_86 = arith.constant 0 : index
    %199 = vector.load %arg23[%c0_85, %c0_86] : memref<32x32xbf16, #tpu.memory_space<vmem>>, vector<32x32xbf16>
    %cst_87 = arith.constant dense<0.000000e+00> : vector<12x32xf32>
    %200 = tpu.matmul %198, %199, %cst_87 {dimension_numbers = #tpu.dot_dimension_numbers<[1], [0], [0], [1], [0, 0, 1, 1], [], []>} : vector<12x32xbf16>, vector<32x32xbf16>, vector<12x32xf32> -> vector<12x32xf32>
    %c0_88 = arith.constant 0 : index
    %c0_89 = arith.constant 0 : index
    %201 = vector.load %arg24[%c0_88, %c0_89] : memref<1x32xf32, #tpu.memory_space<vmem>>, vector<1x32xf32>
    %202 = vector.broadcast %201 : vector<1x32xf32> to vector<12x32xf32>
    %203 = arith.addf %200, %202 : vector<12x32xf32>
    %204 = vector.extract_strided_slice %197 {offsets = [0, 0], sizes = [12, 32], strides = [1, 1]} : vector<12x64xf32> to vector<12x32xf32>
    %205 = vector.extract_strided_slice %197 {offsets = [0, 32], sizes = [12, 32], strides = [1, 1]} : vector<12x64xf32> to vector<12x32xf32>
    %c0_90 = arith.constant 0 : index
    %c0_91 = arith.constant 0 : index
    %206 = vector.load %arg25[%c0_90, %c0_91] : memref<32x32xbf16, #tpu.memory_space<vmem>>, vector<32x32xbf16>
    %c0_92 = arith.constant 0 : index
    %c0_93 = arith.constant 0 : index
    %207 = vector.load %arg26[%c0_92, %c0_93] : memref<1x32xf32, #tpu.memory_space<vmem>>, vector<1x32xf32>
    %208 = vector.extract_strided_slice %204 {offsets = [0, 0], sizes = [12, 8], strides = [1, 1]} : vector<12x32xf32> to vector<12x8xf32>
    %209 = arith.truncf %208 : vector<12x8xf32> to vector<12x8xbf16>
    %210 = vector.extract_strided_slice %205 {offsets = [0, 0], sizes = [12, 8], strides = [1, 1]} : vector<12x32xf32> to vector<12x8xf32>
    %211 = arith.truncf %210 : vector<12x8xf32> to vector<12x8xbf16>
    %cst_94 = arith.constant dense<0.000000e+00> : vector<12x12xf32>
    %212 = tpu.matmul %209, %211, %cst_94 {dimension_numbers = #tpu.dot_dimension_numbers<[1], [1], [0], [0], [0, 0, 1, 0], [], []>} : vector<12x8xbf16>, vector<12x8xbf16>, vector<12x12xf32> -> vector<12x12xf32>
    %cst_95 = arith.constant 0.353553385 : f32
    %213 = vector.broadcast %cst_95 : f32 to vector<12x12xf32>
    %214 = arith.mulf %212, %213 : vector<12x12xf32>
    %215 = vector.broadcast %190 : vector<1x12xf32> to vector<12x12xf32>
    %216 = arith.addf %214, %215 : vector<12x12xf32>
    %cst_96 = arith.constant dense<0xFF800000> : vector<12xf32>
    %217 = vector.multi_reduction <maximumf>, %216, %cst_96 [1] : vector<12x12xf32> to vector<12xf32>
    %218 = vector.shape_cast %217 : vector<12xf32> to vector<12x1xf32>
    %219 = vector.broadcast %218 : vector<12x1xf32> to vector<12x12xf32>
    %220 = arith.subf %216, %219 : vector<12x12xf32>
    %221 = math.exp %220 : vector<12x12xf32>
    %cst_97 = arith.constant dense<0.000000e+00> : vector<12xf32>
    %222 = vector.multi_reduction <add>, %221, %cst_97 [1] : vector<12x12xf32> to vector<12xf32>
    %223 = vector.shape_cast %222 : vector<12xf32> to vector<12x1xf32>
    %224 = tpu.reciprocal %223 {approx = true} : vector<12x1xf32> -> vector<12x1xf32>
    %225 = vector.broadcast %224 : vector<12x1xf32> to vector<12x12xf32>
    %226 = arith.mulf %221, %225 : vector<12x12xf32>
    %227 = arith.truncf %226 : vector<12x12xf32> to vector<12x12xbf16>
    %228 = vector.extract_strided_slice %203 {offsets = [0, 0], sizes = [12, 8], strides = [1, 1]} : vector<12x32xf32> to vector<12x8xf32>
    %229 = arith.truncf %228 : vector<12x8xf32> to vector<12x8xbf16>
    %cst_98 = arith.constant dense<0.000000e+00> : vector<12x8xf32>
    %230 = tpu.matmul %227, %229, %cst_98 {dimension_numbers = #tpu.dot_dimension_numbers<[1], [0], [0], [1], [0, 0, 1, 1], [], []>} : vector<12x12xbf16>, vector<12x8xbf16>, vector<12x8xf32> -> vector<12x8xf32>
    %231 = arith.truncf %230 : vector<12x8xf32> to vector<12x8xbf16>
    %232 = vector.extract_strided_slice %206 {offsets = [0, 0], sizes = [8, 32], strides = [1, 1]} : vector<32x32xbf16> to vector<8x32xbf16>
    %cst_99 = arith.constant dense<0.000000e+00> : vector<12x32xf32>
    %233 = tpu.matmul %231, %232, %cst_99 {dimension_numbers = #tpu.dot_dimension_numbers<[1], [0], [0], [1], [0, 0, 1, 1], [], []>} : vector<12x8xbf16>, vector<8x32xbf16>, vector<12x32xf32> -> vector<12x32xf32>
    %234 = vector.extract_strided_slice %204 {offsets = [0, 8], sizes = [12, 8], strides = [1, 1]} : vector<12x32xf32> to vector<12x8xf32>
    %235 = arith.truncf %234 : vector<12x8xf32> to vector<12x8xbf16>
    %236 = vector.extract_strided_slice %205 {offsets = [0, 8], sizes = [12, 8], strides = [1, 1]} : vector<12x32xf32> to vector<12x8xf32>
    %237 = arith.truncf %236 : vector<12x8xf32> to vector<12x8xbf16>
    %cst_100 = arith.constant dense<0.000000e+00> : vector<12x12xf32>
    %238 = tpu.matmul %235, %237, %cst_100 {dimension_numbers = #tpu.dot_dimension_numbers<[1], [1], [0], [0], [0, 0, 1, 0], [], []>} : vector<12x8xbf16>, vector<12x8xbf16>, vector<12x12xf32> -> vector<12x12xf32>
    %cst_101 = arith.constant 0.353553385 : f32
    %239 = vector.broadcast %cst_101 : f32 to vector<12x12xf32>
    %240 = arith.mulf %238, %239 : vector<12x12xf32>
    %241 = vector.broadcast %190 : vector<1x12xf32> to vector<12x12xf32>
    %242 = arith.addf %240, %241 : vector<12x12xf32>
    %cst_102 = arith.constant dense<0xFF800000> : vector<12xf32>
    %243 = vector.multi_reduction <maximumf>, %242, %cst_102 [1] : vector<12x12xf32> to vector<12xf32>
    %244 = vector.shape_cast %243 : vector<12xf32> to vector<12x1xf32>
    %245 = vector.broadcast %244 : vector<12x1xf32> to vector<12x12xf32>
    %246 = arith.subf %242, %245 : vector<12x12xf32>
    %247 = math.exp %246 : vector<12x12xf32>
    %cst_103 = arith.constant dense<0.000000e+00> : vector<12xf32>
    %248 = vector.multi_reduction <add>, %247, %cst_103 [1] : vector<12x12xf32> to vector<12xf32>
    %249 = vector.shape_cast %248 : vector<12xf32> to vector<12x1xf32>
    %250 = tpu.reciprocal %249 {approx = true} : vector<12x1xf32> -> vector<12x1xf32>
    %251 = vector.broadcast %250 : vector<12x1xf32> to vector<12x12xf32>
    %252 = arith.mulf %247, %251 : vector<12x12xf32>
    %253 = arith.truncf %252 : vector<12x12xf32> to vector<12x12xbf16>
    %254 = vector.extract_strided_slice %203 {offsets = [0, 8], sizes = [12, 8], strides = [1, 1]} : vector<12x32xf32> to vector<12x8xf32>
    %255 = arith.truncf %254 : vector<12x8xf32> to vector<12x8xbf16>
    %cst_104 = arith.constant dense<0.000000e+00> : vector<12x8xf32>
    %256 = tpu.matmul %253, %255, %cst_104 {dimension_numbers = #tpu.dot_dimension_numbers<[1], [0], [0], [1], [0, 0, 1, 1], [], []>} : vector<12x12xbf16>, vector<12x8xbf16>, vector<12x8xf32> -> vector<12x8xf32>
    %257 = arith.truncf %256 : vector<12x8xf32> to vector<12x8xbf16>
    %258 = vector.extract_strided_slice %206 {offsets = [8, 0], sizes = [8, 32], strides = [1, 1]} : vector<32x32xbf16> to vector<8x32xbf16>
    %cst_105 = arith.constant dense<0.000000e+00> : vector<12x32xf32>
    %259 = tpu.matmul %257, %258, %cst_105 {dimension_numbers = #tpu.dot_dimension_numbers<[1], [0], [0], [1], [0, 0, 1, 1], [], []>} : vector<12x8xbf16>, vector<8x32xbf16>, vector<12x32xf32> -> vector<12x32xf32>
    %260 = arith.addf %233, %259 : vector<12x32xf32>
    %261 = vector.extract_strided_slice %204 {offsets = [0, 16], sizes = [12, 8], strides = [1, 1]} : vector<12x32xf32> to vector<12x8xf32>
    %262 = arith.truncf %261 : vector<12x8xf32> to vector<12x8xbf16>
    %263 = vector.extract_strided_slice %205 {offsets = [0, 16], sizes = [12, 8], strides = [1, 1]} : vector<12x32xf32> to vector<12x8xf32>
    %264 = arith.truncf %263 : vector<12x8xf32> to vector<12x8xbf16>
    %cst_106 = arith.constant dense<0.000000e+00> : vector<12x12xf32>
    %265 = tpu.matmul %262, %264, %cst_106 {dimension_numbers = #tpu.dot_dimension_numbers<[1], [1], [0], [0], [0, 0, 1, 0], [], []>} : vector<12x8xbf16>, vector<12x8xbf16>, vector<12x12xf32> -> vector<12x12xf32>
    %cst_107 = arith.constant 0.353553385 : f32
    %266 = vector.broadcast %cst_107 : f32 to vector<12x12xf32>
    %267 = arith.mulf %265, %266 : vector<12x12xf32>
    %268 = vector.broadcast %190 : vector<1x12xf32> to vector<12x12xf32>
    %269 = arith.addf %267, %268 : vector<12x12xf32>
    %cst_108 = arith.constant dense<0xFF800000> : vector<12xf32>
    %270 = vector.multi_reduction <maximumf>, %269, %cst_108 [1] : vector<12x12xf32> to vector<12xf32>
    %271 = vector.shape_cast %270 : vector<12xf32> to vector<12x1xf32>
    %272 = vector.broadcast %271 : vector<12x1xf32> to vector<12x12xf32>
    %273 = arith.subf %269, %272 : vector<12x12xf32>
    %274 = math.exp %273 : vector<12x12xf32>
    %cst_109 = arith.constant dense<0.000000e+00> : vector<12xf32>
    %275 = vector.multi_reduction <add>, %274, %cst_109 [1] : vector<12x12xf32> to vector<12xf32>
    %276 = vector.shape_cast %275 : vector<12xf32> to vector<12x1xf32>
    %277 = tpu.reciprocal %276 {approx = true} : vector<12x1xf32> -> vector<12x1xf32>
    %278 = vector.broadcast %277 : vector<12x1xf32> to vector<12x12xf32>
    %279 = arith.mulf %274, %278 : vector<12x12xf32>
    %280 = arith.truncf %279 : vector<12x12xf32> to vector<12x12xbf16>
    %281 = vector.extract_strided_slice %203 {offsets = [0, 16], sizes = [12, 8], strides = [1, 1]} : vector<12x32xf32> to vector<12x8xf32>
    %282 = arith.truncf %281 : vector<12x8xf32> to vector<12x8xbf16>
    %cst_110 = arith.constant dense<0.000000e+00> : vector<12x8xf32>
    %283 = tpu.matmul %280, %282, %cst_110 {dimension_numbers = #tpu.dot_dimension_numbers<[1], [0], [0], [1], [0, 0, 1, 1], [], []>} : vector<12x12xbf16>, vector<12x8xbf16>, vector<12x8xf32> -> vector<12x8xf32>
    %284 = arith.truncf %283 : vector<12x8xf32> to vector<12x8xbf16>
    %285 = vector.extract_strided_slice %206 {offsets = [16, 0], sizes = [8, 32], strides = [1, 1]} : vector<32x32xbf16> to vector<8x32xbf16>
    %cst_111 = arith.constant dense<0.000000e+00> : vector<12x32xf32>
    %286 = tpu.matmul %284, %285, %cst_111 {dimension_numbers = #tpu.dot_dimension_numbers<[1], [0], [0], [1], [0, 0, 1, 1], [], []>} : vector<12x8xbf16>, vector<8x32xbf16>, vector<12x32xf32> -> vector<12x32xf32>
    %287 = arith.addf %260, %286 : vector<12x32xf32>
    %288 = vector.extract_strided_slice %204 {offsets = [0, 24], sizes = [12, 8], strides = [1, 1]} : vector<12x32xf32> to vector<12x8xf32>
    %289 = arith.truncf %288 : vector<12x8xf32> to vector<12x8xbf16>
    %290 = vector.extract_strided_slice %205 {offsets = [0, 24], sizes = [12, 8], strides = [1, 1]} : vector<12x32xf32> to vector<12x8xf32>
    %291 = arith.truncf %290 : vector<12x8xf32> to vector<12x8xbf16>
    %cst_112 = arith.constant dense<0.000000e+00> : vector<12x12xf32>
    %292 = tpu.matmul %289, %291, %cst_112 {dimension_numbers = #tpu.dot_dimension_numbers<[1], [1], [0], [0], [0, 0, 1, 0], [], []>} : vector<12x8xbf16>, vector<12x8xbf16>, vector<12x12xf32> -> vector<12x12xf32>
    %cst_113 = arith.constant 0.353553385 : f32
    %293 = vector.broadcast %cst_113 : f32 to vector<12x12xf32>
    %294 = arith.mulf %292, %293 : vector<12x12xf32>
    %295 = vector.broadcast %190 : vector<1x12xf32> to vector<12x12xf32>
    %296 = arith.addf %294, %295 : vector<12x12xf32>
    %cst_114 = arith.constant dense<0xFF800000> : vector<12xf32>
    %297 = vector.multi_reduction <maximumf>, %296, %cst_114 [1] : vector<12x12xf32> to vector<12xf32>
    %298 = vector.shape_cast %297 : vector<12xf32> to vector<12x1xf32>
    %299 = vector.broadcast %298 : vector<12x1xf32> to vector<12x12xf32>
    %300 = arith.subf %296, %299 : vector<12x12xf32>
    %301 = math.exp %300 : vector<12x12xf32>
    %cst_115 = arith.constant dense<0.000000e+00> : vector<12xf32>
    %302 = vector.multi_reduction <add>, %301, %cst_115 [1] : vector<12x12xf32> to vector<12xf32>
    %303 = vector.shape_cast %302 : vector<12xf32> to vector<12x1xf32>
    %304 = tpu.reciprocal %303 {approx = true} : vector<12x1xf32> -> vector<12x1xf32>
    %305 = vector.broadcast %304 : vector<12x1xf32> to vector<12x12xf32>
    %306 = arith.mulf %301, %305 : vector<12x12xf32>
    %307 = arith.truncf %306 : vector<12x12xf32> to vector<12x12xbf16>
    %308 = vector.extract_strided_slice %203 {offsets = [0, 24], sizes = [12, 8], strides = [1, 1]} : vector<12x32xf32> to vector<12x8xf32>
    %309 = arith.truncf %308 : vector<12x8xf32> to vector<12x8xbf16>
    %cst_116 = arith.constant dense<0.000000e+00> : vector<12x8xf32>
    %310 = tpu.matmul %307, %309, %cst_116 {dimension_numbers = #tpu.dot_dimension_numbers<[1], [0], [0], [1], [0, 0, 1, 1], [], []>} : vector<12x12xbf16>, vector<12x8xbf16>, vector<12x8xf32> -> vector<12x8xf32>
    %311 = arith.truncf %310 : vector<12x8xf32> to vector<12x8xbf16>
    %312 = vector.extract_strided_slice %206 {offsets = [24, 0], sizes = [8, 32], strides = [1, 1]} : vector<32x32xbf16> to vector<8x32xbf16>
    %cst_117 = arith.constant dense<0.000000e+00> : vector<12x32xf32>
    %313 = tpu.matmul %311, %312, %cst_117 {dimension_numbers = #tpu.dot_dimension_numbers<[1], [0], [0], [1], [0, 0, 1, 1], [], []>} : vector<12x8xbf16>, vector<8x32xbf16>, vector<12x32xf32> -> vector<12x32xf32>
    %314 = arith.addf %287, %313 : vector<12x32xf32>
    %315 = vector.broadcast %207 : vector<1x32xf32> to vector<12x32xf32>
    %316 = arith.addf %314, %315 : vector<12x32xf32>
    %317 = arith.addf %183, %316 : vector<12x32xf32>
    %c0_118 = arith.constant 0 : index
    %c0_119 = arith.constant 0 : index
    %318 = vector.load %arg37[%c0_118, %c0_119] : memref<1x32xf32, #tpu.memory_space<vmem>>, vector<1x32xf32>
    %c0_120 = arith.constant 0 : index
    %c0_121 = arith.constant 0 : index
    %319 = vector.load %arg38[%c0_120, %c0_121] : memref<1x32xf32, #tpu.memory_space<vmem>>, vector<1x32xf32>
    %cst_122 = arith.constant dense<0.000000e+00> : vector<12xf32>
    %320 = vector.multi_reduction <add>, %317, %cst_122 [1] : vector<12x32xf32> to vector<12xf32>
    %321 = vector.shape_cast %320 : vector<12xf32> to vector<12x1xf32>
    %cst_123 = arith.constant 3.200000e+01 : f32
    %322 = vector.broadcast %cst_123 : f32 to vector<12x1xf32>
    %323 = arith.divf %321, %322 : vector<12x1xf32>
    %324 = vector.broadcast %323 : vector<12x1xf32> to vector<12x32xf32>
    %325 = arith.subf %317, %324 : vector<12x32xf32>
    %326 = arith.mulf %325, %325 : vector<12x32xf32>
    %cst_124 = arith.constant dense<0.000000e+00> : vector<12xf32>
    %327 = vector.multi_reduction <add>, %326, %cst_124 [1] : vector<12x32xf32> to vector<12xf32>
    %328 = vector.shape_cast %327 : vector<12xf32> to vector<12x1xf32>
    %cst_125 = arith.constant 3.200000e+01 : f32
    %329 = vector.broadcast %cst_125 : f32 to vector<12x1xf32>
    %330 = arith.divf %328, %329 : vector<12x1xf32>
    %331 = vector.broadcast %323 : vector<12x1xf32> to vector<12x32xf32>
    %332 = arith.subf %317, %331 : vector<12x32xf32>
    %cst_126 = arith.constant 9.99999974E-6 : f32
    %333 = vector.broadcast %cst_126 : f32 to vector<12x1xf32>
    %334 = arith.addf %330, %333 : vector<12x1xf32>
    %335 = math.rsqrt %334 : vector<12x1xf32>
    %336 = vector.broadcast %335 : vector<12x1xf32> to vector<12x32xf32>
    %337 = arith.mulf %332, %336 : vector<12x32xf32>
    %338 = vector.broadcast %318 : vector<1x32xf32> to vector<12x32xf32>
    %339 = arith.mulf %337, %338 : vector<12x32xf32>
    %340 = vector.broadcast %319 : vector<1x32xf32> to vector<12x32xf32>
    %341 = arith.addf %339, %340 : vector<12x32xf32>
    %342 = arith.addf %341, %184 : vector<12x32xf32>
    %343 = arith.truncf %342 : vector<12x32xf32> to vector<12x32xbf16>
    %c0_127 = arith.constant 0 : index
    %c0_128 = arith.constant 0 : index
    %344 = vector.load %arg27[%c0_127, %c0_128] : memref<32x32xbf16, #tpu.memory_space<vmem>>, vector<32x32xbf16>
    %cst_129 = arith.constant dense<0.000000e+00> : vector<12x32xf32>
    %345 = tpu.matmul %343, %344, %cst_129 {dimension_numbers = #tpu.dot_dimension_numbers<[1], [0], [0], [1], [0, 0, 1, 1], [], []>} : vector<12x32xbf16>, vector<32x32xbf16>, vector<12x32xf32> -> vector<12x32xf32>
    %c0_130 = arith.constant 0 : index
    %c0_131 = arith.constant 0 : index
    %346 = vector.load %arg28[%c0_130, %c0_131] : memref<1x32xf32, #tpu.memory_space<vmem>>, vector<1x32xf32>
    %347 = vector.broadcast %346 : vector<1x32xf32> to vector<12x32xf32>
    %348 = arith.addf %345, %347 : vector<12x32xf32>
    %349 = arith.truncf %30 : vector<128x32xf32> to vector<128x32xbf16>
    %c0_132 = arith.constant 0 : index
    %c0_133 = arith.constant 0 : index
    %350 = vector.load %arg29[%c0_132, %c0_133] : memref<32x64xbf16, #tpu.memory_space<vmem>>, vector<32x64xbf16>
    %cst_134 = arith.constant dense<0.000000e+00> : vector<128x64xf32>
    %351 = tpu.matmul %349, %350, %cst_134 {dimension_numbers = #tpu.dot_dimension_numbers<[1], [0], [0], [1], [0, 0, 1, 1], [], []>} : vector<128x32xbf16>, vector<32x64xbf16>, vector<128x64xf32> -> vector<128x64xf32>
    %c0_135 = arith.constant 0 : index
    %c0_136 = arith.constant 0 : index
    %352 = vector.load %arg30[%c0_135, %c0_136] : memref<1x64xf32, #tpu.memory_space<vmem>>, vector<1x64xf32>
    %353 = vector.broadcast %352 : vector<1x64xf32> to vector<128x64xf32>
    %354 = arith.addf %351, %353 : vector<128x64xf32>
    %355 = vector.extract_strided_slice %354 {offsets = [0, 0], sizes = [128, 32], strides = [1, 1]} : vector<128x64xf32> to vector<128x32xf32>
    %356 = vector.extract_strided_slice %354 {offsets = [0, 32], sizes = [128, 32], strides = [1, 1]} : vector<128x64xf32> to vector<128x32xf32>
    %c0_137 = arith.constant 0 : index
    %c0_138 = arith.constant 0 : index
    %357 = vector.load %arg31[%c0_137, %c0_138] : memref<32x32xbf16, #tpu.memory_space<vmem>>, vector<32x32xbf16>
    %c0_139 = arith.constant 0 : index
    %c0_140 = arith.constant 0 : index
    %358 = vector.load %arg32[%c0_139, %c0_140] : memref<1x32xf32, #tpu.memory_space<vmem>>, vector<1x32xf32>
    %359 = vector.extract_strided_slice %348 {offsets = [0, 0], sizes = [12, 8], strides = [1, 1]} : vector<12x32xf32> to vector<12x8xf32>
    %360 = arith.truncf %359 : vector<12x8xf32> to vector<12x8xbf16>
    %361 = vector.extract_strided_slice %355 {offsets = [0, 0], sizes = [128, 8], strides = [1, 1]} : vector<128x32xf32> to vector<128x8xf32>
    %362 = arith.truncf %361 : vector<128x8xf32> to vector<128x8xbf16>
    %cst_141 = arith.constant dense<0.000000e+00> : vector<12x128xf32>
    %363 = tpu.matmul %360, %362, %cst_141 {dimension_numbers = #tpu.dot_dimension_numbers<[1], [1], [0], [0], [0, 0, 1, 0], [], []>} : vector<12x8xbf16>, vector<128x8xbf16>, vector<12x128xf32> -> vector<12x128xf32>
    %cst_142 = arith.constant 0.353553385 : f32
    %364 = vector.broadcast %cst_142 : f32 to vector<12x128xf32>
    %365 = arith.mulf %363, %364 : vector<12x128xf32>
    %cst_143 = arith.constant dense<0xFF800000> : vector<12xf32>
    %366 = vector.multi_reduction <maximumf>, %365, %cst_143 [1] : vector<12x128xf32> to vector<12xf32>
    %367 = vector.shape_cast %366 : vector<12xf32> to vector<12x1xf32>
    %368 = vector.broadcast %367 : vector<12x1xf32> to vector<12x128xf32>
    %369 = arith.subf %365, %368 : vector<12x128xf32>
    %370 = math.exp %369 : vector<12x128xf32>
    %cst_144 = arith.constant dense<0.000000e+00> : vector<12xf32>
    %371 = vector.multi_reduction <add>, %370, %cst_144 [1] : vector<12x128xf32> to vector<12xf32>
    %372 = vector.shape_cast %371 : vector<12xf32> to vector<12x1xf32>
    %373 = tpu.reciprocal %372 {approx = true} : vector<12x1xf32> -> vector<12x1xf32>
    %374 = vector.broadcast %373 : vector<12x1xf32> to vector<12x128xf32>
    %375 = arith.mulf %370, %374 : vector<12x128xf32>
    %376 = arith.truncf %375 : vector<12x128xf32> to vector<12x128xbf16>
    %377 = vector.extract_strided_slice %356 {offsets = [0, 0], sizes = [128, 8], strides = [1, 1]} : vector<128x32xf32> to vector<128x8xf32>
    %378 = arith.truncf %377 : vector<128x8xf32> to vector<128x8xbf16>
    %cst_145 = arith.constant dense<0.000000e+00> : vector<12x8xf32>
    %379 = tpu.matmul %376, %378, %cst_145 {dimension_numbers = #tpu.dot_dimension_numbers<[1], [0], [0], [1], [0, 0, 1, 1], [], []>} : vector<12x128xbf16>, vector<128x8xbf16>, vector<12x8xf32> -> vector<12x8xf32>
    %380 = arith.truncf %379 : vector<12x8xf32> to vector<12x8xbf16>
    %381 = vector.extract_strided_slice %357 {offsets = [0, 0], sizes = [8, 32], strides = [1, 1]} : vector<32x32xbf16> to vector<8x32xbf16>
    %cst_146 = arith.constant dense<0.000000e+00> : vector<12x32xf32>
    %382 = tpu.matmul %380, %381, %cst_146 {dimension_numbers = #tpu.dot_dimension_numbers<[1], [0], [0], [1], [0, 0, 1, 1], [], []>} : vector<12x8xbf16>, vector<8x32xbf16>, vector<12x32xf32> -> vector<12x32xf32>
    %383 = vector.extract_strided_slice %348 {offsets = [0, 8], sizes = [12, 8], strides = [1, 1]} : vector<12x32xf32> to vector<12x8xf32>
    %384 = arith.truncf %383 : vector<12x8xf32> to vector<12x8xbf16>
    %385 = vector.extract_strided_slice %355 {offsets = [0, 8], sizes = [128, 8], strides = [1, 1]} : vector<128x32xf32> to vector<128x8xf32>
    %386 = arith.truncf %385 : vector<128x8xf32> to vector<128x8xbf16>
    %cst_147 = arith.constant dense<0.000000e+00> : vector<12x128xf32>
    %387 = tpu.matmul %384, %386, %cst_147 {dimension_numbers = #tpu.dot_dimension_numbers<[1], [1], [0], [0], [0, 0, 1, 0], [], []>} : vector<12x8xbf16>, vector<128x8xbf16>, vector<12x128xf32> -> vector<12x128xf32>
    %cst_148 = arith.constant 0.353553385 : f32
    %388 = vector.broadcast %cst_148 : f32 to vector<12x128xf32>
    %389 = arith.mulf %387, %388 : vector<12x128xf32>
    %cst_149 = arith.constant dense<0xFF800000> : vector<12xf32>
    %390 = vector.multi_reduction <maximumf>, %389, %cst_149 [1] : vector<12x128xf32> to vector<12xf32>
    %391 = vector.shape_cast %390 : vector<12xf32> to vector<12x1xf32>
    %392 = vector.broadcast %391 : vector<12x1xf32> to vector<12x128xf32>
    %393 = arith.subf %389, %392 : vector<12x128xf32>
    %394 = math.exp %393 : vector<12x128xf32>
    %cst_150 = arith.constant dense<0.000000e+00> : vector<12xf32>
    %395 = vector.multi_reduction <add>, %394, %cst_150 [1] : vector<12x128xf32> to vector<12xf32>
    %396 = vector.shape_cast %395 : vector<12xf32> to vector<12x1xf32>
    %397 = tpu.reciprocal %396 {approx = true} : vector<12x1xf32> -> vector<12x1xf32>
    %398 = vector.broadcast %397 : vector<12x1xf32> to vector<12x128xf32>
    %399 = arith.mulf %394, %398 : vector<12x128xf32>
    %400 = arith.truncf %399 : vector<12x128xf32> to vector<12x128xbf16>
    %401 = vector.extract_strided_slice %356 {offsets = [0, 8], sizes = [128, 8], strides = [1, 1]} : vector<128x32xf32> to vector<128x8xf32>
    %402 = arith.truncf %401 : vector<128x8xf32> to vector<128x8xbf16>
    %cst_151 = arith.constant dense<0.000000e+00> : vector<12x8xf32>
    %403 = tpu.matmul %400, %402, %cst_151 {dimension_numbers = #tpu.dot_dimension_numbers<[1], [0], [0], [1], [0, 0, 1, 1], [], []>} : vector<12x128xbf16>, vector<128x8xbf16>, vector<12x8xf32> -> vector<12x8xf32>
    %404 = arith.truncf %403 : vector<12x8xf32> to vector<12x8xbf16>
    %405 = vector.extract_strided_slice %357 {offsets = [8, 0], sizes = [8, 32], strides = [1, 1]} : vector<32x32xbf16> to vector<8x32xbf16>
    %cst_152 = arith.constant dense<0.000000e+00> : vector<12x32xf32>
    %406 = tpu.matmul %404, %405, %cst_152 {dimension_numbers = #tpu.dot_dimension_numbers<[1], [0], [0], [1], [0, 0, 1, 1], [], []>} : vector<12x8xbf16>, vector<8x32xbf16>, vector<12x32xf32> -> vector<12x32xf32>
    %407 = arith.addf %382, %406 : vector<12x32xf32>
    %408 = vector.extract_strided_slice %348 {offsets = [0, 16], sizes = [12, 8], strides = [1, 1]} : vector<12x32xf32> to vector<12x8xf32>
    %409 = arith.truncf %408 : vector<12x8xf32> to vector<12x8xbf16>
    %410 = vector.extract_strided_slice %355 {offsets = [0, 16], sizes = [128, 8], strides = [1, 1]} : vector<128x32xf32> to vector<128x8xf32>
    %411 = arith.truncf %410 : vector<128x8xf32> to vector<128x8xbf16>
    %cst_153 = arith.constant dense<0.000000e+00> : vector<12x128xf32>
    %412 = tpu.matmul %409, %411, %cst_153 {dimension_numbers = #tpu.dot_dimension_numbers<[1], [1], [0], [0], [0, 0, 1, 0], [], []>} : vector<12x8xbf16>, vector<128x8xbf16>, vector<12x128xf32> -> vector<12x128xf32>
    %cst_154 = arith.constant 0.353553385 : f32
    %413 = vector.broadcast %cst_154 : f32 to vector<12x128xf32>
    %414 = arith.mulf %412, %413 : vector<12x128xf32>
    %cst_155 = arith.constant dense<0xFF800000> : vector<12xf32>
    %415 = vector.multi_reduction <maximumf>, %414, %cst_155 [1] : vector<12x128xf32> to vector<12xf32>
    %416 = vector.shape_cast %415 : vector<12xf32> to vector<12x1xf32>
    %417 = vector.broadcast %416 : vector<12x1xf32> to vector<12x128xf32>
    %418 = arith.subf %414, %417 : vector<12x128xf32>
    %419 = math.exp %418 : vector<12x128xf32>
    %cst_156 = arith.constant dense<0.000000e+00> : vector<12xf32>
    %420 = vector.multi_reduction <add>, %419, %cst_156 [1] : vector<12x128xf32> to vector<12xf32>
    %421 = vector.shape_cast %420 : vector<12xf32> to vector<12x1xf32>
    %422 = tpu.reciprocal %421 {approx = true} : vector<12x1xf32> -> vector<12x1xf32>
    %423 = vector.broadcast %422 : vector<12x1xf32> to vector<12x128xf32>
    %424 = arith.mulf %419, %423 : vector<12x128xf32>
    %425 = arith.truncf %424 : vector<12x128xf32> to vector<12x128xbf16>
    %426 = vector.extract_strided_slice %356 {offsets = [0, 16], sizes = [128, 8], strides = [1, 1]} : vector<128x32xf32> to vector<128x8xf32>
    %427 = arith.truncf %426 : vector<128x8xf32> to vector<128x8xbf16>
    %cst_157 = arith.constant dense<0.000000e+00> : vector<12x8xf32>
    %428 = tpu.matmul %425, %427, %cst_157 {dimension_numbers = #tpu.dot_dimension_numbers<[1], [0], [0], [1], [0, 0, 1, 1], [], []>} : vector<12x128xbf16>, vector<128x8xbf16>, vector<12x8xf32> -> vector<12x8xf32>
    %429 = arith.truncf %428 : vector<12x8xf32> to vector<12x8xbf16>
    %430 = vector.extract_strided_slice %357 {offsets = [16, 0], sizes = [8, 32], strides = [1, 1]} : vector<32x32xbf16> to vector<8x32xbf16>
    %cst_158 = arith.constant dense<0.000000e+00> : vector<12x32xf32>
    %431 = tpu.matmul %429, %430, %cst_158 {dimension_numbers = #tpu.dot_dimension_numbers<[1], [0], [0], [1], [0, 0, 1, 1], [], []>} : vector<12x8xbf16>, vector<8x32xbf16>, vector<12x32xf32> -> vector<12x32xf32>
    %432 = arith.addf %407, %431 : vector<12x32xf32>
    %433 = vector.extract_strided_slice %348 {offsets = [0, 24], sizes = [12, 8], strides = [1, 1]} : vector<12x32xf32> to vector<12x8xf32>
    %434 = arith.truncf %433 : vector<12x8xf32> to vector<12x8xbf16>
    %435 = vector.extract_strided_slice %355 {offsets = [0, 24], sizes = [128, 8], strides = [1, 1]} : vector<128x32xf32> to vector<128x8xf32>
    %436 = arith.truncf %435 : vector<128x8xf32> to vector<128x8xbf16>
    %cst_159 = arith.constant dense<0.000000e+00> : vector<12x128xf32>
    %437 = tpu.matmul %434, %436, %cst_159 {dimension_numbers = #tpu.dot_dimension_numbers<[1], [1], [0], [0], [0, 0, 1, 0], [], []>} : vector<12x8xbf16>, vector<128x8xbf16>, vector<12x128xf32> -> vector<12x128xf32>
    %cst_160 = arith.constant 0.353553385 : f32
    %438 = vector.broadcast %cst_160 : f32 to vector<12x128xf32>
    %439 = arith.mulf %437, %438 : vector<12x128xf32>
    %cst_161 = arith.constant dense<0xFF800000> : vector<12xf32>
    %440 = vector.multi_reduction <maximumf>, %439, %cst_161 [1] : vector<12x128xf32> to vector<12xf32>
    %441 = vector.shape_cast %440 : vector<12xf32> to vector<12x1xf32>
    %442 = vector.broadcast %441 : vector<12x1xf32> to vector<12x128xf32>
    %443 = arith.subf %439, %442 : vector<12x128xf32>
    %444 = math.exp %443 : vector<12x128xf32>
    %cst_162 = arith.constant dense<0.000000e+00> : vector<12xf32>
    %445 = vector.multi_reduction <add>, %444, %cst_162 [1] : vector<12x128xf32> to vector<12xf32>
    %446 = vector.shape_cast %445 : vector<12xf32> to vector<12x1xf32>
    %447 = tpu.reciprocal %446 {approx = true} : vector<12x1xf32> -> vector<12x1xf32>
    %448 = vector.broadcast %447 : vector<12x1xf32> to vector<12x128xf32>
    %449 = arith.mulf %444, %448 : vector<12x128xf32>
    %450 = arith.truncf %449 : vector<12x128xf32> to vector<12x128xbf16>
    %451 = vector.extract_strided_slice %356 {offsets = [0, 24], sizes = [128, 8], strides = [1, 1]} : vector<128x32xf32> to vector<128x8xf32>
    %452 = arith.truncf %451 : vector<128x8xf32> to vector<128x8xbf16>
    %cst_163 = arith.constant dense<0.000000e+00> : vector<12x8xf32>
    %453 = tpu.matmul %450, %452, %cst_163 {dimension_numbers = #tpu.dot_dimension_numbers<[1], [0], [0], [1], [0, 0, 1, 1], [], []>} : vector<12x128xbf16>, vector<128x8xbf16>, vector<12x8xf32> -> vector<12x8xf32>
    %454 = arith.truncf %453 : vector<12x8xf32> to vector<12x8xbf16>
    %455 = vector.extract_strided_slice %357 {offsets = [24, 0], sizes = [8, 32], strides = [1, 1]} : vector<32x32xbf16> to vector<8x32xbf16>
    %cst_164 = arith.constant dense<0.000000e+00> : vector<12x32xf32>
    %456 = tpu.matmul %454, %455, %cst_164 {dimension_numbers = #tpu.dot_dimension_numbers<[1], [0], [0], [1], [0, 0, 1, 1], [], []>} : vector<12x8xbf16>, vector<8x32xbf16>, vector<12x32xf32> -> vector<12x32xf32>
    %457 = arith.addf %432, %456 : vector<12x32xf32>
    %458 = vector.broadcast %358 : vector<1x32xf32> to vector<12x32xf32>
    %459 = arith.addf %457, %458 : vector<12x32xf32>
    %460 = arith.addf %341, %459 : vector<12x32xf32>
    %c0_165 = arith.constant 0 : index
    %c0_166 = arith.constant 0 : index
    %461 = vector.load %arg39[%c0_165, %c0_166] : memref<1x32xf32, #tpu.memory_space<vmem>>, vector<1x32xf32>
    %c0_167 = arith.constant 0 : index
    %c0_168 = arith.constant 0 : index
    %462 = vector.load %arg40[%c0_167, %c0_168] : memref<1x32xf32, #tpu.memory_space<vmem>>, vector<1x32xf32>
    %cst_169 = arith.constant dense<0.000000e+00> : vector<12xf32>
    %463 = vector.multi_reduction <add>, %460, %cst_169 [1] : vector<12x32xf32> to vector<12xf32>
    %464 = vector.shape_cast %463 : vector<12xf32> to vector<12x1xf32>
    %cst_170 = arith.constant 3.200000e+01 : f32
    %465 = vector.broadcast %cst_170 : f32 to vector<12x1xf32>
    %466 = arith.divf %464, %465 : vector<12x1xf32>
    %467 = vector.broadcast %466 : vector<12x1xf32> to vector<12x32xf32>
    %468 = arith.subf %460, %467 : vector<12x32xf32>
    %469 = arith.mulf %468, %468 : vector<12x32xf32>
    %cst_171 = arith.constant dense<0.000000e+00> : vector<12xf32>
    %470 = vector.multi_reduction <add>, %469, %cst_171 [1] : vector<12x32xf32> to vector<12xf32>
    %471 = vector.shape_cast %470 : vector<12xf32> to vector<12x1xf32>
    %cst_172 = arith.constant 3.200000e+01 : f32
    %472 = vector.broadcast %cst_172 : f32 to vector<12x1xf32>
    %473 = arith.divf %471, %472 : vector<12x1xf32>
    %474 = vector.broadcast %466 : vector<12x1xf32> to vector<12x32xf32>
    %475 = arith.subf %460, %474 : vector<12x32xf32>
    %cst_173 = arith.constant 9.99999974E-6 : f32
    %476 = vector.broadcast %cst_173 : f32 to vector<12x1xf32>
    %477 = arith.addf %473, %476 : vector<12x1xf32>
    %478 = math.rsqrt %477 : vector<12x1xf32>
    %479 = vector.broadcast %478 : vector<12x1xf32> to vector<12x32xf32>
    %480 = arith.mulf %475, %479 : vector<12x32xf32>
    %481 = vector.broadcast %461 : vector<1x32xf32> to vector<12x32xf32>
    %482 = arith.mulf %480, %481 : vector<12x32xf32>
    %483 = vector.broadcast %462 : vector<1x32xf32> to vector<12x32xf32>
    %484 = arith.addf %482, %483 : vector<12x32xf32>
    %485 = arith.truncf %484 : vector<12x32xf32> to vector<12x32xbf16>
    %c0_174 = arith.constant 0 : index
    %c0_175 = arith.constant 0 : index
    %486 = vector.load %arg33[%c0_174, %c0_175] : memref<32x64xbf16, #tpu.memory_space<vmem>>, vector<32x64xbf16>
    %cst_176 = arith.constant dense<0.000000e+00> : vector<12x64xf32>
    %487 = tpu.matmul %485, %486, %cst_176 {dimension_numbers = #tpu.dot_dimension_numbers<[1], [0], [0], [1], [0, 0, 1, 1], [], []>} : vector<12x32xbf16>, vector<32x64xbf16>, vector<12x64xf32> -> vector<12x64xf32>
    %c0_177 = arith.constant 0 : index
    %c0_178 = arith.constant 0 : index
    %488 = vector.load %arg34[%c0_177, %c0_178] : memref<1x64xf32, #tpu.memory_space<vmem>>, vector<1x64xf32>
    %489 = vector.broadcast %488 : vector<1x64xf32> to vector<12x64xf32>
    %490 = arith.addf %487, %489 : vector<12x64xf32>
    %cst_179 = arith.constant 0.000000e+00 : f32
    %491 = vector.broadcast %cst_179 : f32 to vector<12x64xf32>
    %492 = arith.maximumf %490, %491 : vector<12x64xf32>
    %493 = arith.truncf %492 : vector<12x64xf32> to vector<12x64xbf16>
    %c0_180 = arith.constant 0 : index
    %c0_181 = arith.constant 0 : index
    %494 = vector.load %arg35[%c0_180, %c0_181] : memref<64x32xbf16, #tpu.memory_space<vmem>>, vector<64x32xbf16>
    %cst_182 = arith.constant dense<0.000000e+00> : vector<12x32xf32>
    %495 = tpu.matmul %493, %494, %cst_182 {dimension_numbers = #tpu.dot_dimension_numbers<[1], [0], [0], [1], [0, 0, 1, 1], [], []>} : vector<12x64xbf16>, vector<64x32xbf16>, vector<12x32xf32> -> vector<12x32xf32>
    %c0_183 = arith.constant 0 : index
    %c0_184 = arith.constant 0 : index
    %496 = vector.load %arg36[%c0_183, %c0_184] : memref<1x32xf32, #tpu.memory_space<vmem>>, vector<1x32xf32>
    %497 = vector.broadcast %496 : vector<1x32xf32> to vector<12x32xf32>
    %498 = arith.addf %495, %497 : vector<12x32xf32>
    %499 = arith.addf %484, %498 : vector<12x32xf32>
    %c0_185 = arith.constant 0 : index
    %c0_186 = arith.constant 0 : index
    %500 = vector.load %arg41[%c0_185, %c0_186] : memref<1x32xf32, #tpu.memory_space<vmem>>, vector<1x32xf32>
    %c0_187 = arith.constant 0 : index
    %c0_188 = arith.constant 0 : index
    %501 = vector.load %arg42[%c0_187, %c0_188] : memref<1x32xf32, #tpu.memory_space<vmem>>, vector<1x32xf32>
    %cst_189 = arith.constant dense<0.000000e+00> : vector<12xf32>
    %502 = vector.multi_reduction <add>, %499, %cst_189 [1] : vector<12x32xf32> to vector<12xf32>
    %503 = vector.shape_cast %502 : vector<12xf32> to vector<12x1xf32>
    %cst_190 = arith.constant 3.200000e+01 : f32
    %504 = vector.broadcast %cst_190 : f32 to vector<12x1xf32>
    %505 = arith.divf %503, %504 : vector<12x1xf32>
    %506 = vector.broadcast %505 : vector<12x1xf32> to vector<12x32xf32>
    %507 = arith.subf %499, %506 : vector<12x32xf32>
    %508 = arith.mulf %507, %507 : vector<12x32xf32>
    %cst_191 = arith.constant dense<0.000000e+00> : vector<12xf32>
    %509 = vector.multi_reduction <add>, %508, %cst_191 [1] : vector<12x32xf32> to vector<12xf32>
    %510 = vector.shape_cast %509 : vector<12xf32> to vector<12x1xf32>
    %cst_192 = arith.constant 3.200000e+01 : f32
    %511 = vector.broadcast %cst_192 : f32 to vector<12x1xf32>
    %512 = arith.divf %510, %511 : vector<12x1xf32>
    %513 = vector.broadcast %505 : vector<12x1xf32> to vector<12x32xf32>
    %514 = arith.subf %499, %513 : vector<12x32xf32>
    %cst_193 = arith.constant 9.99999974E-6 : f32
    %515 = vector.broadcast %cst_193 : f32 to vector<12x1xf32>
    %516 = arith.addf %512, %515 : vector<12x1xf32>
    %517 = math.rsqrt %516 : vector<12x1xf32>
    %518 = vector.broadcast %517 : vector<12x1xf32> to vector<12x32xf32>
    %519 = arith.mulf %514, %518 : vector<12x32xf32>
    %520 = vector.broadcast %500 : vector<1x32xf32> to vector<12x32xf32>
    %521 = arith.mulf %519, %520 : vector<12x32xf32>
    %522 = vector.broadcast %501 : vector<1x32xf32> to vector<12x32xf32>
    %523 = arith.addf %521, %522 : vector<12x32xf32>
    %c0_194 = arith.constant 0 : index
    %c0_195 = arith.constant 0 : index
    %524 = vector.load %arg43[%c0_194, %c0_195] : memref<1x32xf32, #tpu.memory_space<vmem>>, vector<1x32xf32>
    %c0_196 = arith.constant 0 : index
    %c0_197 = arith.constant 0 : index
    %525 = vector.load %arg44[%c0_196, %c0_197] : memref<1x32xf32, #tpu.memory_space<vmem>>, vector<1x32xf32>
    %cst_198 = arith.constant dense<0.000000e+00> : vector<12xf32>
    %526 = vector.multi_reduction <add>, %523, %cst_198 [1] : vector<12x32xf32> to vector<12xf32>
    %527 = vector.shape_cast %526 : vector<12xf32> to vector<12x1xf32>
    %cst_199 = arith.constant 3.200000e+01 : f32
    %528 = vector.broadcast %cst_199 : f32 to vector<12x1xf32>
    %529 = arith.divf %527, %528 : vector<12x1xf32>
    %530 = vector.broadcast %529 : vector<12x1xf32> to vector<12x32xf32>
    %531 = arith.subf %523, %530 : vector<12x32xf32>
    %532 = arith.mulf %531, %531 : vector<12x32xf32>
    %cst_200 = arith.constant dense<0.000000e+00> : vector<12xf32>
    %533 = vector.multi_reduction <add>, %532, %cst_200 [1] : vector<12x32xf32> to vector<12xf32>
    %534 = vector.shape_cast %533 : vector<12xf32> to vector<12x1xf32>
    %cst_201 = arith.constant 3.200000e+01 : f32
    %535 = vector.broadcast %cst_201 : f32 to vector<12x1xf32>
    %536 = arith.divf %534, %535 : vector<12x1xf32>
    %537 = vector.broadcast %529 : vector<12x1xf32> to vector<12x32xf32>
    %538 = arith.subf %523, %537 : vector<12x32xf32>
    %cst_202 = arith.constant 9.99999974E-6 : f32
    %539 = vector.broadcast %cst_202 : f32 to vector<12x1xf32>
    %540 = arith.addf %536, %539 : vector<12x1xf32>
    %541 = math.rsqrt %540 : vector<12x1xf32>
    %542 = vector.broadcast %541 : vector<12x1xf32> to vector<12x32xf32>
    %543 = arith.mulf %538, %542 : vector<12x32xf32>
    %544 = vector.broadcast %524 : vector<1x32xf32> to vector<12x32xf32>
    %545 = arith.mulf %543, %544 : vector<12x32xf32>
    %546 = vector.broadcast %525 : vector<1x32xf32> to vector<12x32xf32>
    %547 = arith.addf %545, %546 : vector<12x32xf32>
    %c0_203 = arith.constant 0 : index
    %c0_204 = arith.constant 0 : index
    %c0_205 = arith.constant 0 : index
    %548 = vector.load %arg4[%c0_203, %c0_204, %c0_205] : memref<1x12x1xf32, #tpu.memory_space<vmem>>, vector<1x12x1xf32>
    %549 = vector.shape_cast %548 : vector<1x12x1xf32> to vector<12x1xf32>
    %550 = vector.broadcast %549 : vector<12x1xf32> to vector<12x32xf32>
    %551 = arith.mulf %547, %550 : vector<12x32xf32>
    %cst_206 = arith.constant dense<0.000000e+00> : vector<32xf32>
    %552 = vector.multi_reduction <add>, %551, %cst_206 [0] : vector<12x32xf32> to vector<32xf32>
    %553 = vector.shape_cast %552 : vector<32xf32> to vector<1x32xf32>
    %cst_207 = arith.constant dense<0.000000e+00> : vector<1xf32>
    %554 = vector.multi_reduction <add>, %186, %cst_207 [1] : vector<1x12xf32> to vector<1xf32>
    %555 = vector.shape_cast %554 : vector<1xf32> to vector<1x1xf32>
    %cst_208 = arith.constant 1.000000e+00 : f32
    %556 = vector.broadcast %cst_208 : f32 to vector<1x1xf32>
    %557 = arith.maximumf %555, %556 : vector<1x1xf32>
    %558 = vector.broadcast %557 : vector<1x1xf32> to vector<1x32xf32>
    %559 = arith.divf %553, %558 : vector<1x32xf32>
    %560 = arith.truncf %559 : vector<1x32xf32> to vector<1x32xbf16>
    %561 = arith.truncf %30 : vector<128x32xf32> to vector<128x32xbf16>
    %cst_209 = arith.constant dense<0.000000e+00> : vector<1x128xf32>
    %562 = tpu.matmul %560, %561, %cst_209 {dimension_numbers = #tpu.dot_dimension_numbers<[1], [1], [0], [0], [0, 0, 1, 0], [], []>} : vector<1x32xbf16>, vector<128x32xbf16>, vector<1x128xf32> -> vector<1x128xf32>
    %563 = arith.negf %562 : vector<1x128xf32>
    %564 = math.exp %563 : vector<1x128xf32>
    %cst_210 = arith.constant 1.000000e+00 : f32
    %565 = vector.broadcast %cst_210 : f32 to vector<1x128xf32>
    %566 = arith.addf %565, %564 : vector<1x128xf32>
    %567 = arith.divf %565, %566 : vector<1x128xf32>
    %c0_211 = arith.constant 0 : index
    %c0_212 = arith.constant 0 : index
    %c0_213 = arith.constant 0 : index
    %568 = vector.load %arg45[%c0_211, %c0_212, %c0_213] : memref<1x1x128xf32, #tpu.memory_space<vmem>>, vector<1x1x128xf32>
    %569 = vector.shape_cast %568 : vector<1x1x128xf32> to vector<1x128xf32>
    %570 = vector.shape_cast %567 : vector<1x128xf32> to vector<1x1x128xf32>
    tpu.vector_store %arg45[%c0_211, %c0_212, %c0_213], %570 {strides = array<i32>} : memref<1x1x128xf32, #tpu.memory_space<vmem>>, vector<1x1x128xf32>,
    return
  }
  func.func @transform_0(%arg0: i32) -> (i32, i32, i32) {
    %c0_i32 = arith.constant 0 : i32
    %c0_i32_0 = arith.constant 0 : i32
    %c0_i32_1 = arith.constant 0 : i32
    return %arg0, %c0_i32, %c0_i32_0 : i32, i32, i32
  }
  func.func @transform_1(%arg0: i32) -> (i32, i32, i32) {
    %c0_i32 = arith.constant 0 : i32
    %c0_i32_0 = arith.constant 0 : i32
    %c0_i32_1 = arith.constant 0 : i32
    return %arg0, %c0_i32, %c0_i32_0 : i32, i32, i32
  }
  func.func @transform_2(%arg0: i32) -> (i32, i32, i32) {
    %c0_i32 = arith.constant 0 : i32
    %c0_i32_0 = arith.constant 0 : i32
    %c0_i32_1 = arith.constant 0 : i32
    return %arg0, %c0_i32, %c0_i32_0 : i32, i32, i32
  }
  func.func @transform_3(%arg0: i32) -> (i32, i32, i32) {
    %c0_i32 = arith.constant 0 : i32
    %c0_i32_0 = arith.constant 0 : i32
    %c0_i32_1 = arith.constant 0 : i32
    return %arg0, %c0_i32, %c0_i32_0 : i32, i32, i32
  }
  func.func @transform_4(%arg0: i32) -> (i32, i32) {
    %c0_i32 = arith.constant 0 : i32
    %c0_i32_0 = arith.constant 0 : i32
    %c0_i32_1 = arith.constant 0 : i32
    return %c0_i32, %c0_i32_0 : i32, i32
  }
  func.func @transform_5(%arg0: i32) -> (i32, i32) {
    %c0_i32 = arith.constant 0 : i32
    %c0_i32_0 = arith.constant 0 : i32
    %c0_i32_1 = arith.constant 0 : i32
    return %c0_i32, %c0_i32_0 : i32, i32
  }
  func.func @transform_6(%arg0: i32) -> (i32, i32) {
    %c0_i32 = arith.constant 0 : i32
    %c0_i32_0 = arith.constant 0 : i32
    %c0_i32_1 = arith.constant 0 : i32
    return %c0_i32, %c0_i32_0 : i32, i32
  }
  func.func @transform_7(%arg0: i32) -> (i32, i32) {
    %c0_i32 = arith.constant 0 : i32
    %c0_i32_0 = arith.constant 0 : i32
    %c0_i32_1 = arith.constant 0 : i32
    return %c0_i32, %c0_i32_0 : i32, i32
  }
  func.func @transform_8(%arg0: i32) -> (i32, i32) {
    %c0_i32 = arith.constant 0 : i32
    %c0_i32_0 = arith.constant 0 : i32
    %c0_i32_1 = arith.constant 0 : i32
    return %c0_i32, %c0_i32_0 : i32, i32
  }
  func.func @transform_9(%arg0: i32) -> (i32, i32) {
    %c0_i32 = arith.constant 0 : i32
    %c0_i32_0 = arith.constant 0 : i32
    %c0_i32_1 = arith.constant 0 : i32
    return %c0_i32, %c0_i32_0 : i32, i32
  }
  func.func @transform_10(%arg0: i32) -> (i32, i32) {
    %c0_i32 = arith.constant 0 : i32
    %c0_i32_0 = arith.constant 0 : i32
    %c0_i32_1 = arith.constant 0 : i32
    return %c0_i32, %c0_i32_0 : i32, i32
  }
  func.func @transform_11(%arg0: i32) -> (i32, i32) {
    %c0_i32 = arith.constant 0 : i32
    %c0_i32_0 = arith.constant 0 : i32
    %c0_i32_1 = arith.constant 0 : i32
    return %c0_i32, %c0_i32_0 : i32, i32
  }
  func.func @transform_12(%arg0: i32) -> (i32, i32) {
    %c0_i32 = arith.constant 0 : i32
    %c0_i32_0 = arith.constant 0 : i32
    %c0_i32_1 = arith.constant 0 : i32
    return %c0_i32, %c0_i32_0 : i32, i32
  }
  func.func @transform_13(%arg0: i32) -> (i32, i32) {
    %c0_i32 = arith.constant 0 : i32
    %c0_i32_0 = arith.constant 0 : i32
    %c0_i32_1 = arith.constant 0 : i32
    return %c0_i32, %c0_i32_0 : i32, i32
  }
  func.func @transform_14(%arg0: i32) -> (i32, i32) {
    %c0_i32 = arith.constant 0 : i32
    %c0_i32_0 = arith.constant 0 : i32
    %c0_i32_1 = arith.constant 0 : i32
    return %c0_i32, %c0_i32_0 : i32, i32
  }
  func.func @transform_15(%arg0: i32) -> (i32, i32) {
    %c0_i32 = arith.constant 0 : i32
    %c0_i32_0 = arith.constant 0 : i32
    %c0_i32_1 = arith.constant 0 : i32
    return %c0_i32, %c0_i32_0 : i32, i32
  }
  func.func @transform_16(%arg0: i32) -> (i32, i32) {
    %c0_i32 = arith.constant 0 : i32
    %c0_i32_0 = arith.constant 0 : i32
    %c0_i32_1 = arith.constant 0 : i32
    return %c0_i32, %c0_i32_0 : i32, i32
  }
  func.func @transform_17(%arg0: i32) -> (i32, i32) {
    %c0_i32 = arith.constant 0 : i32
    %c0_i32_0 = arith.constant 0 : i32
    %c0_i32_1 = arith.constant 0 : i32
    return %c0_i32, %c0_i32_0 : i32, i32
  }
  func.func @transform_18(%arg0: i32) -> (i32, i32) {
    %c0_i32 = arith.constant 0 : i32
    %c0_i32_0 = arith.constant 0 : i32
    %c0_i32_1 = arith.constant 0 : i32
    return %c0_i32, %c0_i32_0 : i32, i32
  }
  func.func @transform_19(%arg0: i32) -> (i32, i32) {
    %c0_i32 = arith.constant 0 : i32
    %c0_i32_0 = arith.constant 0 : i32
    %c0_i32_1 = arith.constant 0 : i32
    return %c0_i32, %c0_i32_0 : i32, i32
  }
  func.func @transform_20(%arg0: i32) -> (i32, i32) {
    %c0_i32 = arith.constant 0 : i32
    %c0_i32_0 = arith.constant 0 : i32
    %c0_i32_1 = arith.constant 0 : i32
    return %c0_i32, %c0_i32_0 : i32, i32
  }
  func.func @transform_21(%arg0: i32) -> (i32, i32) {
    %c0_i32 = arith.constant 0 : i32
    %c0_i32_0 = arith.constant 0 : i32
    %c0_i32_1 = arith.constant 0 : i32
    return %c0_i32, %c0_i32_0 : i32, i32
  }
  func.func @transform_22(%arg0: i32) -> (i32, i32) {
    %c0_i32 = arith.constant 0 : i32
    %c0_i32_0 = arith.constant 0 : i32
    %c0_i32_1 = arith.constant 0 : i32
    return %c0_i32, %c0_i32_0 : i32, i32
  }
  func.func @transform_23(%arg0: i32) -> (i32, i32) {
    %c0_i32 = arith.constant 0 : i32
    %c0_i32_0 = arith.constant 0 : i32
    %c0_i32_1 = arith.constant 0 : i32
    return %c0_i32, %c0_i32_0 : i32, i32
  }
  func.func @transform_24(%arg0: i32) -> (i32, i32) {
    %c0_i32 = arith.constant 0 : i32
    %c0_i32_0 = arith.constant 0 : i32
    %c0_i32_1 = arith.constant 0 : i32
    return %c0_i32, %c0_i32_0 : i32, i32
  }
  func.func @transform_25(%arg0: i32) -> (i32, i32) {
    %c0_i32 = arith.constant 0 : i32
    %c0_i32_0 = arith.constant 0 : i32
    %c0_i32_1 = arith.constant 0 : i32
    return %c0_i32, %c0_i32_0 : i32, i32
  }
  func.func @transform_26(%arg0: i32) -> (i32, i32) {
    %c0_i32 = arith.constant 0 : i32
    %c0_i32_0 = arith.constant 0 : i32
    %c0_i32_1 = arith.constant 0 : i32
    return %c0_i32, %c0_i32_0 : i32, i32
  }
  func.func @transform_27(%arg0: i32) -> (i32, i32) {
    %c0_i32 = arith.constant 0 : i32
    %c0_i32_0 = arith.constant 0 : i32
    %c0_i32_1 = arith.constant 0 : i32
    return %c0_i32, %c0_i32_0 : i32, i32
  }
  func.func @transform_28(%arg0: i32) -> (i32, i32) {
    %c0_i32 = arith.constant 0 : i32
    %c0_i32_0 = arith.constant 0 : i32
    %c0_i32_1 = arith.constant 0 : i32
    return %c0_i32, %c0_i32_0 : i32, i32
  }
  func.func @transform_29(%arg0: i32) -> (i32, i32) {
    %c0_i32 = arith.constant 0 : i32
    %c0_i32_0 = arith.constant 0 : i32
    %c0_i32_1 = arith.constant 0 : i32
    return %c0_i32, %c0_i32_0 : i32, i32
  }
  func.func @transform_30(%arg0: i32) -> (i32, i32) {
    %c0_i32 = arith.constant 0 : i32
    %c0_i32_0 = arith.constant 0 : i32
    %c0_i32_1 = arith.constant 0 : i32
    return %c0_i32, %c0_i32_0 : i32, i32
  }
  func.func @transform_31(%arg0: i32) -> (i32, i32) {
    %c0_i32 = arith.constant 0 : i32
    %c0_i32_0 = arith.constant 0 : i32
    %c0_i32_1 = arith.constant 0 : i32
    return %c0_i32, %c0_i32_0 : i32, i32
  }
  func.func @transform_32(%arg0: i32) -> (i32, i32) {
    %c0_i32 = arith.constant 0 : i32
    %c0_i32_0 = arith.constant 0 : i32
    %c0_i32_1 = arith.constant 0 : i32
    return %c0_i32, %c0_i32_0 : i32, i32
  }
  func.func @transform_33(%arg0: i32) -> (i32, i32) {
    %c0_i32 = arith.constant 0 : i32
    %c0_i32_0 = arith.constant 0 : i32
    %c0_i32_1 = arith.constant 0 : i32
    return %c0_i32, %c0_i32_0 : i32, i32
  }
  func.func @transform_34(%arg0: i32) -> (i32, i32) {
    %c0_i32 = arith.constant 0 : i32
    %c0_i32_0 = arith.constant 0 : i32
    %c0_i32_1 = arith.constant 0 : i32
    return %c0_i32, %c0_i32_0 : i32, i32
  }
  func.func @transform_35(%arg0: i32) -> (i32, i32) {
    %c0_i32 = arith.constant 0 : i32
    %c0_i32_0 = arith.constant 0 : i32
    %c0_i32_1 = arith.constant 0 : i32
    return %c0_i32, %c0_i32_0 : i32, i32
  }
  func.func @transform_36(%arg0: i32) -> (i32, i32) {
    %c0_i32 = arith.constant 0 : i32
    %c0_i32_0 = arith.constant 0 : i32
    %c0_i32_1 = arith.constant 0 : i32
    return %c0_i32, %c0_i32_0 : i32, i32
  }
  func.func @transform_37(%arg0: i32) -> (i32, i32) {
    %c0_i32 = arith.constant 0 : i32
    %c0_i32_0 = arith.constant 0 : i32
    %c0_i32_1 = arith.constant 0 : i32
    return %c0_i32, %c0_i32_0 : i32, i32
  }
  func.func @transform_38(%arg0: i32) -> (i32, i32) {
    %c0_i32 = arith.constant 0 : i32
    %c0_i32_0 = arith.constant 0 : i32
    %c0_i32_1 = arith.constant 0 : i32
    return %c0_i32, %c0_i32_0 : i32, i32
  }
  func.func @transform_39(%arg0: i32) -> (i32, i32) {
    %c0_i32 = arith.constant 0 : i32
    %c0_i32_0 = arith.constant 0 : i32
    %c0_i32_1 = arith.constant 0 : i32
    return %c0_i32, %c0_i32_0 : i32, i32
  }
  func.func @transform_40(%arg0: i32) -> (i32, i32) {
    %c0_i32 = arith.constant 0 : i32
    %c0_i32_0 = arith.constant 0 : i32
    %c0_i32_1 = arith.constant 0 : i32
    return %c0_i32, %c0_i32_0 : i32, i32
  }
  func.func @transform_41(%arg0: i32) -> (i32, i32) {
    %c0_i32 = arith.constant 0 : i32
    %c0_i32_0 = arith.constant 0 : i32
    %c0_i32_1 = arith.constant 0 : i32
    return %c0_i32, %c0_i32_0 : i32, i32
  }
  func.func @transform_42(%arg0: i32) -> (i32, i32) {
    %c0_i32 = arith.constant 0 : i32
    %c0_i32_0 = arith.constant 0 : i32
    %c0_i32_1 = arith.constant 0 : i32
    return %c0_i32, %c0_i32_0 : i32, i32
  }
  func.func @transform_43(%arg0: i32) -> (i32, i32) {
    %c0_i32 = arith.constant 0 : i32
    %c0_i32_0 = arith.constant 0 : i32
    %c0_i32_1 = arith.constant 0 : i32
    return %c0_i32, %c0_i32_0 : i32, i32
  }
  func.func @transform_44(%arg0: i32) -> (i32, i32, i32) {
    %c0_i32 = arith.constant 0 : i32
    %c0_i32_0 = arith.constant 0 : i32
    %c0_i32_1 = arith.constant 0 : i32
    return %arg0, %c0_i32, %c0_i32_0 : i32, i32, i32
  }
}

</mosaic_0001>

<bundles_post_ra>
// kernel: point_sam_forward.1
= control target key start
LH: loop header
LB: loop body
LE: loop exit
PB: predicated region body
PF: predicated region fallthrough
CT: control target
= control target key end

     0   :  { %s6939_s6 = smov 1   ;;  %s6940_s10 = smov 2   ;;  %s8469_s0 = inlined_call_operand.smem [shape: u32[45], index: -1, kind: input, shape index: {}] }
   0x1   :  { %s7005_s5 = sld [smem:[%s8469_s0]]   ;;  %s6941_s14 = smov 3  }
   0x2   :  { %s7010_s9 = sld [smem:[%s8469_s0 + %s6939_s6]]   ;;  %s6942_s18 = smov 4  }
   0x3   :  { %s7015_s13 = sld [smem:[%s8469_s0 + %s6940_s10]]   ;;  %s6943_s22 = smov 5  }
   0x4   :  { %s7020_s17 = sld [smem:[%s8469_s0 + %s6941_s14]]   ;;  %s6944_s26 = smov 6  }
   0x5   :  { %s7025_s21 = sld [smem:[%s8469_s0 + %s6942_s18]]   ;;  %s6945_s30 = smov 7  }
   0x6   :  { %s7030_s25 = sld [smem:[%s8469_s0 + %s6943_s22]]   ;;  %s6946_s4 = smov 8  }
   0x7   :  { %8504 = sst [smem:[#allocation9_spill]] %s7005_s5  ;;  %s6947_s10 = smov 9  }
   0x8   :  { %8505 = sst [smem:[#allocation10_spill]] %s7010_s9  ;;  %s6948_s15 = smov 10  }
   0x9   :  { %8506 = sst [smem:[#allocation11_spill]] %s7015_s13  ;;  %s6949_s20 = smov 11  }
   0xa   :  { %8507 = sst [smem:[#allocation12_spill]] %s7020_s17  ;;  %s6951_s1 = smov 13  }
   0xb   :  { %s7035_s29 = sld [smem:[%s8469_s0 + %s6944_s26]]   ;;  %s6950_s26 = smov 12  }
   0xc   :  { %s7040_s3 = sld [smem:[%s8469_s0 + %s6945_s30]]   ;;  %s6952_s7 = smov 14  }
   0xd   :  { %s7045_s8 = sld [smem:[%s8469_s0 + %s6946_s4]]   ;;  %s6954_s22 = smov 16  }
   0xe   :  { %s7050_s14 = sld [smem:[%s8469_s0 + %s6947_s10]]   ;;  %s6955_s28 = smov 17  }
   0xf   :  { %s7055_s19 = sld [smem:[%s8469_s0 + %s6948_s15]]   ;;  %s6953_s15 = smov 15  }
  0x10   :  { %s7060_s24 = sld [smem:[%s8469_s0 + %s6949_s20]]  }
  0x11   :  { %s7065_s30 = sld [smem:[%s8469_s0 + %s6950_s26]]  }
  0x12   :  { %8508 = sst [smem:[#allocation13_spill]] %s7040_s3 }
  0x13   :  { %8509 = sst [smem:[#allocation14_spill]] %s7045_s8 }
  0x14   :  { %8510 = sst [smem:[#allocation15_spill]] %s7050_s14 }
  0x15   :  { %8511 = sst [smem:[#allocation16_spill]] %s7055_s19 }
  0x16   :  { %8512 = sst [smem:[#allocation17_spill]] %s7060_s24 }
  0x17   :  { %s7070_s6 = sld [smem:[%s8469_s0 + %s6951_s1]]  }
  0x18   :  { %s7075_s12 = sld [smem:[%s8469_s0 + %s6952_s7]]   ;;  %s6956_s7 = smov 18  }
  0x19   :  { %s7080_s20 = sld [smem:[%s8469_s0 + %s6953_s15]]   ;;  %s6957_s15 = smov 19  }
  0x1a   :  { %s7085_s27 = sld [smem:[%s8469_s0 + %s6954_s22]]   ;;  %s6958_s22 = smov 20  }
  0x1b   :  { %s7090_s4 = sld [smem:[%s8469_s0 + %s6955_s28]]   ;;  %s6959_s28 = smov 21  }
  0x1c   :  { %s7095_s17 = sld [smem:[%s8469_s0 + %s6956_s7]]   ;;  %s6960_s7 = smov 22  }
  0x1d   :  { %8513 = sst [smem:[#allocation18_spill]] %s7070_s6 }
  0x1e   :  { %8514 = sst [smem:[#allocation19_spill]] %s7075_s12 }
  0x1f   :  { %s7100_s13 = sld [smem:[%s8469_s0 + %s6957_s15]]   ;;  %s6961_s15 = smov 23  }
  0x20   :  { %s7105_s6 = sld [smem:[%s8469_s0 + %s6958_s22]]   ;;  %s6962_s22 = smov 24  }
  0x21   :  { %8515 = sst [smem:[#allocation20_spill]] %s7090_s4 }
  0x22   :  { %s7110_s24 = sld [smem:[%s8469_s0 + %s6959_s28]]   ;;  %s6963_s28 = smov 25  }
  0x23   :  { %s7115_s19 = sld [smem:[%s8469_s0 + %s6960_s7]]   ;;  %s6964_s7 = smov 26  }
  0x25   :  { %8516 = sst [smem:[#allocation21_spill]] %s7100_s13 }
  0x26   :  { %8517 = sst [smem:[#allocation22_spill]] %s7105_s6 }
  0x27   :  { %s7120_s13 = sld [smem:[%s8469_s0 + %s6961_s15]]   ;;  %s6965_s15 = smov 27  }
  0x28   :  { %8518 = sst [smem:[#allocation23_spill]] %s7110_s24 }
  0x29   :  { %8519 = sst [smem:[#allocation24_spill]] %s7115_s19 }
  0x2a   :  { %s7125_s6 = sld [smem:[%s8469_s0 + %s6962_s22]]   ;;  %s6966_s22 = smov 28  }
  0x2b   :  { %s7130_s24 = sld [smem:[%s8469_s0 + %s6963_s28]]   ;;  %s6967_s28 = smov 29  }
  0x2c   :  { %s7135_s19 = sld [smem:[%s8469_s0 + %s6964_s7]]   ;;  %s6968_s7 = smov 30  }
  0x2d   :  { %8520 = sst [smem:[#allocation25_spill]] %s7120_s13 }
  0x2e   :  { %s7140_s13 = sld [smem:[%s8469_s0 + %s6965_s15]]   ;;  %s6969_s15 = smov 31  }
  0x30   :  { %8521 = sst [smem:[#allocation26_spill]] %s7125_s6 }
  0x31   :  { %8522 = sst [smem:[#allocation27_spill]] %s7130_s24 }
  0x32   :  { %8523 = sst [smem:[#allocation28_spill]] %s7135_s19 }
  0x33   :  { %s7145_s6 = sld [smem:[%s8469_s0 + %s6966_s22]]   ;;  %s6970_s22 = smov 32  }
  0x34   :  { %8524 = sst [smem:[#allocation29_spill]] %s7140_s13 }
  0x35   :  { %s7150_s24 = sld [smem:[%s8469_s0 + %s6967_s28]]   ;;  %s6971_s28 = smov 33  }
  0x36   :  { %s7155_s19 = sld [smem:[%s8469_s0 + %s6968_s7]]   ;;  %s6972_s7 = smov 34  }
  0x37   :  { %s7160_s13 = sld [smem:[%s8469_s0 + %s6969_s15]]   ;;  %s6973_s15 = smov 35  }
  0x39   :  { %8525 = sst [smem:[#allocation30_spill]] %s7145_s6 }
  0x3a   :  { %s7165_s6 = sld [smem:[%s8469_s0 + %s6970_s22]]   ;;  %s6974_s22 = smov 36  }
  0x3b   :  { %8526 = sst [smem:[#allocation31_spill]] %s7150_s24 }
  0x3c   :  { %8527 = sst [smem:[#allocation32_spill]] %s7155_s19 }
  0x3d   :  { %8528 = sst [smem:[#allocation33_spill]] %s7160_s13 }
  0x3e   :  { %s7170_s24 = sld [smem:[%s8469_s0 + %s6971_s28]]   ;;  %s6975_s28 = smov 37  }
  0x3f   :  { %s7175_s19 = sld [smem:[%s8469_s0 + %s6972_s7]]   ;;  %s6976_s7 = smov 38  }
  0x40   :  { %8529 = sst [smem:[#allocation34_spill]] %s7165_s6 }
  0x41   :  { %s7180_s13 = sld [smem:[%s8469_s0 + %s6973_s15]]   ;;  %s6977_s15 = smov 39  }
  0x42   :  { %s7185_s6 = sld [smem:[%s8469_s0 + %s6974_s22]]   ;;  %s6978_s22 = smov 40  }
  0x44   :  { %8530 = sst [smem:[#allocation35_spill]] %s7170_s24 }
  0x45   :  { %8531 = sst [smem:[#allocation36_spill]] %s7175_s19 }
  0x46   :  { %s7190_s24 = sld [smem:[%s8469_s0 + %s6975_s28]]   ;;  %s6979_s28 = smov 41  }
  0x47   :  { %8532 = sst [smem:[#allocation37_spill]] %s7180_s13 }
  0x48   :  { %8533 = sst [smem:[#allocation38_spill]] %s7185_s6 }
  0x49   :  { %s7195_s19 = sld [smem:[%s8469_s0 + %s6976_s7]]   ;;  %s6980_s7 = smov 42  }
  0x4a   :  { %s7200_s13 = sld [smem:[%s8469_s0 + %s6977_s15]]   ;;  %s6981_s15 = smov 43  }
  0x4b   :  { %s7205_s6 = sld [smem:[%s8469_s0 + %s6978_s22]]   ;;  %s6982_s22 = smov 44  }
  0x4c   :  { %8534 = sst [smem:[#allocation39_spill]] %s7190_s24 }
  0x4d   :  { %s7210_s24 = sld [smem:[%s8469_s0 + %s6979_s28]]  }
  0x4f   :  { %8535 = sst [smem:[#allocation40_spill]] %s7195_s19 }
  0x50   :  { %8536 = sst [smem:[#allocation41_spill]] %s7200_s13 }
  0x51   :  { %8537 = sst [smem:[#allocation42_spill]] %s7205_s6 }
  0x52   :  { %s7215_s19 = sld [smem:[%s8469_s0 + %s6980_s7]]  }
  0x53   :  { %s7220_s13 = sld [smem:[%s8469_s0 + %s6981_s15]]  }
  0x54   :  { %s7225_s6 = sld [smem:[%s8469_s0 + %s6982_s22]]  }
  0x59   :  { %8538 = sst [smem:[#allocation43_spill]] %s7220_s13 }
  0x5a   :  { %94 = vsyncpa [#allocation4], 0 }
  0x5b   :  { %95 = vsyncpa [#allocation5], 0 }
  0x5c   :  { %97 = vsyncpa [#allocation5 + $0x1], 0  ;;  %s7227_s28 = smov 0   ;;  %s7229_s1 = smov 0  }
  0x5d   :  { %s7231_s2 = smov 0   ;;  %s7233_s7 = smov 0  }
  0x5e LB: > { %s8539_s13 = sld [smem:[#allocation43_spill]]  ;;  %s8541_s8 = sld [smem:[#allocation14_spill]]  ;;  %s6933_s2 = sphi %s7231_s2, %s8593_s2   ;;  %s6929_s1 = sphi %s7229_s1, %s8595_s1   ;;  %s6925_s28 = sphi %s7227_s28, %s8594_s28   ;;  %s6937_s7 = sphi %s7233_s7, %s8596_s7  }
  0x5f   : > { %s8540_s12 = sld [smem:[#allocation19_spill]]  ;;  %8542 = sst [smem:[#allocation44_spill]] %s6933_s2 }
  0x60   : > { %s7248_s0 = sadd.s32 4294967295, %s6937_s7   ;;  %s5624_s10 = sadd.s32 4294967294, %s6937_s7  }
  0x61   : > { %s7252_s11 = sadd.s32 1, %s6937_s7   ;;  %s1054_s15 = sadd.s32 1, %s6933_s2 }
  0x62   : > { %s1051_s16 = ssub.s32 %s6937_s7, %s7252_s11  ;;  %p1064_p0 = scmp.ne.s32.totalorder %s6933_s2, %s6929_s1 }
  0x63   : > { %p1052_p1 = scmp.eq.s32.totalorder %s1051_s16, 0  ;;  %p1065_p2 = scmp.eq.s32.totalorder %s7248_s0, 1 }
  0x64   : > { %p1070_p3 = scmp.ne.s32.totalorder %s6929_s1, %s6925_s28  ;;  %p1071_p4 = scmp.eq.s32.totalorder %s5624_s10, 1 }
  0x65   : > { %s7263_s18 = scalar_select %p1052_p1, %s6933_s2, %s1054_s15  }
  0x66   : > { %p7265_p5 = por %p1065_p2, %p1064_p0  ;;  %p7269_p6 = por %p1071_p4, %p1070_p3 }
  0x67   : > { %8543 = sst [smem:[#allocation45_spill]] %s7263_s18  ;;  %p5625_p7 = scmp.ge.s32.totalorder %s6937_s7, 1 }
  0x68   : > { %s8544_s22 = scalar_select %p7265_p5, 1, 0 }
  0x69   : > { %s8545_s23 = scalar_select %p7269_p6, 1, 0 }
  0x6a   : > { %p1078_p8 = scmp.lt.s32.totalorder %s6937_s7, 3  ;;  %p8481_p9 = scmp.eq.s32.totalorder %s7248_s0, 0 }
  0x6b   : > { %s6983_s10 = smov [#allocation3]   ;;  %s6843_s18 = scalar_lea.hbm %s8539_s13, 16 }
  0x6c   : > { %p7276_p10 = pnand %p5625_p7, %p1078_p8  ;;  %s1208_s15 = sshll.u32 %s6983_s10, 4  ;;  %s1209_s15 = int_to_ptr.vmem [resolvable:$true] %s1208_s15 }
  0x6d   : > { %p6844_p13 = scmp.ne.s32.totalorder %s8539_s13, %s6843_s18  ;;  %p6850_p3 = scmp.lt.u32.totalorder %s6843_s18, %s8539_s13 }
  0x6e   : > { %s8546_s26 = scalar_select %p7276_p10, 1, 0 }
  0x6f   : > { %p6587_p11 = pneg %p7276_p10 }
  0x71   : > { %p7284_p12 = pnand %p8481_p9, %p6587_p11 }
  0x73   : > { %p6845_p0 = pneg %p7284_p12 }
  0x75   : > { %p6846_p1 = pnand %p6845_p0, %p6844_p13 }
  0x77   : > { %p6847_p2 = pneg %p6846_p1 }
  0x79   : > { %p6852_p4 = pnand %p6850_p3, %p6847_p2 }
  0x7b   : > { %6855 = shalt.err (!%p6852_p4)
}
  0x7c   : > { %s6856_s2 = scalar_lea.vmem %s1209_s15, 16  ;;  %s6863_s10 = scalar_lea.vmem %s1209_s15, 32 }
  0x7d   : > { %p6857_p7 = scmp.ne.s32.totalorder %s1209_s15, %s6856_s2  ;;  %p6864_p5 = scmp.lt.s32.totalorder %s1209_s15, %s1209_s15 }
  0x7e   : > { %p6865_p11 = scmp.lt.s32.totalorder %s6863_s10, %s6856_s2 }
  0x7f   : > { %p6859_p8 = pnand %p6857_p7, %p6845_p0 }
  0x80   : > { %p6866_p9 = por %p6865_p11, %p6864_p5 }
  0x81   : > { %p6860_p6 = pneg %p6859_p8 }
  0x83   : > { %p6867_p10 = pnand %p6866_p9, %p6860_p6 }
  0x85   : > { %6870 = shalt.err (!%p6867_p10)
}
  0x86   : > { %6590 = dma.hbm_to_vmem [thread:$0]  (!%p7284_p12), %s8539_s13, 16, %s1209_s15, [#allocation4]  }
  0x87   : > { %p8548_p13 = scmp.ne.s32.totalorder %s8546_s26, 0 }
  0x88   : > { %p8549_p1 = scmp.eq.s32.totalorder (!%p8548_p13), %s7248_s0, 0 }
  0x89   : > { %1250 = sbr.rel (%p8548_p13) target bundleno = 12068 (0x2f24), region = 196 }
  0x90   : > { %6916 = dma.done.wait (%p8549_p1), [#allocation4], 16   ;;  %p8550_p2 = pmov %p8549_p1 }
  0x91   : > { %s8551_s5 = sld [smem:[#allocation9_spill]]  ;;  %p1367_p0 = scmp.lt.s32.totalorder %s7248_s0, 1  ;;  %v6984_v0 = vmov 1   ;;  %v6985_v1 = vmov 0   ;;  %v6986_v8 = vmov 2   ;;  %v6714_v10 = vld [vmem:[%s7035_s29] sm:$0xff]   ;;  %v1482_v23 = vlaneseq }
  0x92   : > { %6918 = vsyncadd (%p8550_p2), [#allocation4], 4294967280  ;;  %6688 = vset.pattern.permute.xlu1 %v6984_v0  ;;  %6687 = vset.pattern.permute.xlu0 %v6985_v1  ;;  %v6715_v12 = vld [vmem:[%s7035_s29 + $0x8] sm:$0xff]   ;;  %v1401_v31 = vld [vmem:[%s7025_s21] sm:$0x7]  ;;  %v6987_v36 = vmov 0.0  }
  0x93   : > { %s7306_s2 = scalar_select %p1367_p0, %s7248_s0, 1  ;;  %5997 = vmatprep.subr.bf16.mxu0 %v6714_v10  ;;  %v7354_v26 = vshrl.u32 %v1482_v23, 7  ;;  %v6716_v34 = vld [vmem:[%s8540_s12] sm:$0xff]   ;;  %6029 = vmatprep.subr.bf16.mxu1 %v6987_v36  ;;  %v6717_v39 = vld [vmem:[%s8540_s12 + $0x8] sm:$0xff]   ;;  %vm1772_vm0 = vcmask 261120   ;;  %vm6988_vm1 = vmmov 0  }
  0x94   : > { %5998 = vmatpush3.bf16.msra.mxu0 %v6714_v10  ;;  %6030 = vmatpush3.bf16.msra.mxu1 %v6716_v34  ;;  %v7385_v58 = vld [vmem:[%s7030_s25] ss:$0 sm:$0xff]  ;;  %s8552_s3 = sld [smem:[#allocation13_spill]]  ;;  %s8553_s9 = sld [smem:[#allocation10_spill]]  ;;  %vm1935_vm2 = vcmask 523264   ;;  %vm2243_vm3 = vcmask 64512  }
  0x95   : > { %s5747_s18 = sshll.u32 %s7306_s2, 7  ;;  %5999 = vmatprep.subr.bf16.mxu0 %v6715_v12  ;;  %v1568_v29 = vsub.s32 1, %v7354_v26  ;;  %v1484_v30 = vsub.s32 0, %v7354_v26  ;;  %v1668_v33 = vsub.s32 2, %v7354_v26  ;;  %6031 = vmatprep.subr.bf16.mxu1 %v6987_v36  ;;  %s5632_s15 = sshll.u32 %s7306_s2, 3  ;;  %vm2312_vm4 = vcmask 1043456  }
  0x96   : > { %6033 = vmatprep.mubr.msk.bf16.mxu1 %vm6988_vm1, %v6987_v36  ;;  %s8554_s4 = sld [smem:[#allocation20_spill]]  ;;  %s8493_s10 = smov 96   ;;  %vm3081_vm5 = vcmask 257024   ;;  %vm3324_vm6 = vcmask 1045504   ;;  %vm3295_vm7 = vcmask 97280   ;;  %vm3299_vm8 = vcmask 93184  }
  0x97   : > { %s7310_s26 = scalar_lea.vmem %s8551_s5, %s5747_s18  ;;  %v7364_v37 = vrot.slane %v1401_v31, %v1568_v29  ;;  %v7368_v38 = vrot.slane %v1401_v31, %v1484_v30  ;;  %v7372_v41 = vrot.slane %v1401_v31, %v1668_v33  ;;  %s8485_s18 = smov 120   ;;  %vm5409_vm9 = vcmask 90112  }
  0x98   : > { %v1385_v2 = vld [vmem:[%s7310_s26] sm:$0xff]  ;;  %v1386_v3 = vld [vmem:[%s7310_s26 + $0x8] sm:$0xff]  ;;  %v1387_v4 = vld [vmem:[%s7310_s26 + $0x10] sm:$0xff]  ;;  %6000 = vmatpush3.bf16.msra.mxu0 %v6715_v12  ;;  %6032 = vmatpush3.bf16.msra.mxu1 %v6717_v39  ;;  %s8555_s14 = sld [smem:[#allocation15_spill]]  ;;  %s8567_s5 = sld [smem:[#allocation11_spill]] }
  0x99   : > { %1503 = vperm.xlu1 %6688, %v1385_v2   ;;  %1404 = vperm.xlu0 %6687, %v1385_v2   ;;  %v1388_v5 = vld [vmem:[%s7310_s26 + $0x18] sm:$0xff]  ;;  %v1390_v6 = vld [vmem:[%s7310_s26 + $0x28] sm:$0xff]  ;;  %v1391_v7 = vld [vmem:[%s7310_s26 + $0x30] sm:$0xff]  ;;  %s8571_s12 = smov 104   ;;  %s8572_s13 = smov 72  }
  0x9a   : > { %v1389_v9 = vld [vmem:[%s7310_s26 + $0x20] sm:$0xff]  ;;  %v1392_v11 = vld [vmem:[%s7310_s26 + $0x38] sm:$0xff]  ;;  %v1394_v13 = vld [vmem:[%s7310_s26 + $0x48] sm:$0xff]  ;;  %6017 = vmatprep.subr.bf16.mxu0 %v6987_v36  ;;  %s1375_s16 = scalar_lea.vmem %s8553_s9, %s5632_s15  ;;  %s8483_s15 = smov 112  }
  0x9b   : > { %v1395_v14 = vld [vmem:[%s7310_s26 + $0x50] sm:$0xff]  ;;  %v1397_v15 = vld [vmem:[%s7310_s26 + $0x60] sm:$0xff]  ;;  %v1398_v16 = vld [vmem:[%s7310_s26 + $0x68] sm:$0xff]  ;;  %s8570_s9 = sld [smem:[#allocation26_spill]]  ;;  %p8590_p6 = scmp.ne.s32.totalorder %s8544_s22, 0 }
  0x9c   : > { %v1393_v17 = vld [vmem:[%s7310_s26 + $0x40] sm:$0xff]  ;;  %v1399_v18 = vld [vmem:[%s7310_s26 + $0x70] sm:$0xff]  ;;  %v1396_v19 = vld [vmem:[%s7310_s26 + $0x58] sm:$0xff] }
  0x9d   : > { %1507 = vperm.xlu1 %6688, %v1386_v3   ;;  %1409 = vperm.xlu0 %6687, %v1386_v3   ;;  %v1400_v20 = vld [vmem:[%s7310_s26 + $0x78] sm:$0xff]  ;;  %s8495_s26 = smov 88  }
  0xa1   : > { %6689 = vset.pattern.permute.xlu1 %v6985_v1  ;;  %1414 = vperm.xlu0 %6687, %v1387_v4  }
  0xa2   : > { %1419 = vperm.xlu1 %6689, %v1388_v5  }
  0xa5   : > { %6690 = vset.pattern.permute.xlu0 %v6984_v0 }
  0xa6   : > { %6691 = vset.pattern.permute.xlu1 %v6984_v0  ;;  %1511 = vperm.xlu0 %6690, %v1387_v4  }
  0xa7   : > { %1515 = vperm.xlu1 %6691, %v1388_v5  }
  0xaa   : > { %1523 = vperm.xlu0 %6690, %v1390_v6  }
  0xab   : > { %6692 = vset.pattern.permute.xlu1 %v6986_v8 }
  0xac   : > { %1603 = vperm.xlu1 %6692, %v1385_v2  }
  0xae   : > { %1527 = vperm.xlu0 %6690, %v1391_v7  }
  0xb0   : > { %1611 = vperm.xlu1 %6692, %v1387_v4  }
  0xb2   : > { %6696 = vset.pattern.permute.xlu0 %v6986_v8 }
  0xb3   : > { %1607 = vperm.xlu0 %6696, %v1386_v3  }
  0xb4   : > { %1615 = vperm.xlu1 %6692, %v1388_v5  }
  0xb7   : > { %1619 = vperm.xlu0 %6696, %v1389_v9  }
  0xb8   : > { %6693 = vset.pattern.permute.xlu1 %v6985_v1 }
  0xb9   : > { %1429 = vperm.xlu1 %6693, %v1390_v6  }
  0xbb   : > { %1631 = vperm.xlu0 %6696, %v1392_v11  }
  0xbd   : > { %6694 = vset.pattern.permute.xlu1 %v6984_v0 }
  0xbe   : > { %1519 = vperm.xlu1 %6694, %v1389_v9  }
  0xbf   : > { %1639 = vperm.xlu0 %6696, %v1394_v13  }
  0xc2   : > { %6695 = vset.pattern.permute.xlu1 %v6985_v1 }
  0xc3   : > { %1434 = vperm.xlu1 %6695, %v1391_v7   ;;  %6704 = vset.pattern.permute.xlu0 %v6985_v1 }
  0xc4   : > { %1424 = vperm.xlu0 %6704, %v1389_v9  }
  0xc7   : > { %1439 = vperm.xlu1 %6695, %v1392_v11  }
  0xc8   : > { %1449 = vperm.xlu0 %6704, %v1394_v13  }
  0xcb   : > { %6697 = vset.pattern.permute.xlu1 %v6984_v0 }
  0xcc   : > { %1531 = vperm.xlu1 %6697, %v1392_v11   ;;  %1454 = vperm.xlu0 %6704, %v1395_v14  }
  0xd0   : > { %6698 = vset.pattern.permute.xlu1 %v6986_v8  ;;  %1464 = vperm.xlu0 %6704, %v1397_v15  }
  0xd1   : > { %1623 = vperm.xlu1 %6698, %v1390_v6  }
  0xd4   : > { %6705 = vset.pattern.permute.xlu0 %v6984_v0 }
  0xd5   : > { %1627 = vperm.xlu1 %6698, %v1391_v7   ;;  %1543 = vperm.xlu0 %6705, %v1395_v14  }
  0xd9   : > { %6699 = vset.pattern.permute.xlu1 %v6985_v1  ;;  %1555 = vperm.xlu0 %6705, %v1398_v16  }
  0xda   : > { %1444 = vperm.xlu1 %6699, %v1393_v17  }
  0xdd   : > { %1559 = vperm.xlu0 %6705, %v1399_v18  }
  0xde   : > { %6700 = vset.pattern.permute.xlu1 %v6984_v0 }
  0xdf   : > { %1535 = vperm.xlu1 %6700, %v1393_v17  }
  0xe1   : > { %6710 = vset.pattern.permute.xlu0 %v6986_v8 }
  0xe2   : > { %1651 = vperm.xlu0 %6710, %v1397_v15  }
  0xe3   : > { %1539 = vperm.xlu1 %6700, %v1394_v13  }
  0xe6   : > { %1663 = vperm.xlu0 %6710, %v1400_v20  }
  0xe7   : > { %6701 = vset.pattern.permute.xlu1 %v6985_v1 }
  0xe8   : > { %1459 = vperm.xlu1 %6701, %v1396_v19  }
  0xea   : > { %6713 = vset.pattern.permute.xlu0 %v6985_v1 }
  0xec   : > { %6702 = vset.pattern.permute.xlu1 %v6984_v0 }
  0xed   : > { %1547 = vperm.xlu1 %6702, %v1396_v19  }
  0xf1   : > { %6703 = vset.pattern.permute.xlu1 %v6986_v8 }
  0xf2   : > { %1635 = vperm.xlu1 %6703, %v1393_v17  }
  0xf6   : > { %1643 = vperm.xlu1 %6703, %v1395_v14  }
  0xfa   : > { %1647 = vperm.xlu1 %6703, %v1396_v19  }
  0xfe   : > { %6706 = vset.pattern.permute.xlu1 %v6985_v1 }
  0xff   : > { %1469 = vperm.xlu1 %6706, %v1398_v16  }
 0x103   : > { %6707 = vset.pattern.permute.xlu1 %v6984_v0 }
 0x104   : > { %1551 = vperm.xlu1 %6707, %v1397_v15  }
 0x108   : > { %6708 = vset.pattern.permute.xlu1 %v6985_v1 }
 0x109   : > { %1474 = vperm.xlu1 %6708, %v1399_v18  }
 0x10d   : > { %1479 = vperm.xlu1 %6708, %v1400_v20  }
 0x111   : > { %6709 = vset.pattern.permute.xlu1 %v6984_v0 }
 0x112   : > { %1563 = vperm.xlu1 %6709, %v1400_v20  }
 0x116   : > { %6711 = vset.pattern.permute.xlu1 %v6986_v8 }
 0x117   : > { %1655 = vperm.xlu1 %6711, %v1398_v16  }
 0x118   : > { %v1504_v21 = vpop.permute.xlu1 %1503  ;;  %v1405_v22 = vpop.permute.xlu0 %1404 }
 0x119   : > { %v1570_v44 = vmul.f32 %v7364_v37, %v1504_v21  ;;  %v1486_v45 = vmul.f32 %v7368_v38, %v1405_v22 }
 0x11b   : > { %1659 = vperm.xlu1 %6711, %v1399_v18   ;;  %v1586_v50 = vadd.f32 %v1570_v44, %v1486_v45 }
 0x11c   : > { %v1508_v24 = vpop.permute.xlu1 %1507  ;;  %v1410_v25 = vpop.permute.xlu0 %1409 }
 0x11d   : > { %v1571_v51 = vmul.f32 %v7364_v37, %v1508_v24  ;;  %v1487_v52 = vmul.f32 %v7368_v38, %v1410_v25 }
 0x11f   : > { %6712 = vset.pattern.permute.xlu1 %v6985_v1  ;;  %v1587_v61 = vadd.f32 %v1571_v51, %v1487_v52 }
 0x120   : > { %v1415_v27 = vpop.permute.xlu0 %1414 }
 0x121   : > { %v1420_v28 = vpop.permute.xlu1 %1419  ;;  %v1488_v42 = vmul.f32 %v7368_v38, %v1415_v27 }
 0x122   : > { %v1489_v57 = vmul.f32 %v7368_v38, %v1420_v28 }
 0x125   : > { %v1512_v32 = vpop.permute.xlu0 %1511 }
 0x126   : > { %v1516_v35 = vpop.permute.xlu1 %1515  ;;  %v1572_v43 = vmul.f32 %v7364_v37, %v1512_v32 }
 0x127   : > { %v1573_v54 = vmul.f32 %v7364_v37, %v1516_v35 }
 0x128   : > { %v1588_v49 = vadd.f32 %v1572_v43, %v1488_v42 }
 0x129   : > { %v1524_v40 = vpop.permute.xlu0 %1523  ;;  %v1589_v0 = vadd.f32 %v1573_v54, %v1489_v57 }
 0x12a   : > { %v1575_v29 = vmul.f32 %v7364_v37, %v1524_v40 }
 0x12b   : > { %v1604_v46 = vpop.permute.xlu1 %1603 }
 0x12c   : > { %v1670_v47 = vmul.f32 %v7372_v41, %v1604_v46 }
 0x12d   : > { %v1528_v48 = vpop.permute.xlu0 %1527 }
 0x12e   : > { %v1686_v56 = vadd.f32 %v1670_v47, %v1586_v50  ;;  %v1576_v42 = vmul.f32 %v7364_v37, %v1528_v48 }
 0x12f   : > { %v1612_v53 = vpop.permute.xlu1 %1611 }
 0x130   : > { %v1672_v55 = vmul.f32 %v7372_v41, %v1612_v53  ;;  %v1709_v3 = vadd.f32 %v7385_v58, %v1686_v56 }
 0x132   : > { %v1688_v59 = vadd.f32 %v1672_v55, %v1588_v49  ;;  %v1608_v60 = vpop.permute.xlu0 %1607  ;;  %v1725_v10 = vmax.f32 %v1709_v3, 0.0 }
 0x133   : > { %v1671_v62 = vmul.f32 %v7372_v41, %v1608_v60  ;;  %v1616_v63 = vpop.permute.xlu1 %1615 }
 0x134   : > { %v1673_v1 = vmul.f32 %v7372_v41, %v1616_v63  ;;  %v1711_v4 = vadd.f32 %v7385_v58, %v1688_v59 }
 0x135   : > { %v1687_v2 = vadd.f32 %v1671_v62, %v1587_v61 }
 0x136   : > { %v1689_v5 = vadd.f32 %v1673_v1, %v1589_v0  ;;  %v1620_v6 = vpop.permute.xlu0 %1619  ;;  %v1727_v12 = vmax.f32 %v1711_v4, 0.0 }
 0x137   : > { %v1710_v7 = vadd.f32 %v7385_v58, %v1687_v2  ;;  %v1674_v24 = vmul.f32 %v7372_v41, %v1620_v6 }
 0x138   : > { %v1712_v8 = vadd.f32 %v7385_v58, %v1689_v5  ;;  %v1430_v9 = vpop.permute.xlu1 %1429 }
 0x139   : > { %v1726_v11 = vmax.f32 %v1710_v7, 0.0  ;;  %v1491_v31 = vmul.f32 %v7368_v38, %v1430_v9 }
 0x13a   : > { %v1728_v13 = vmax.f32 %v1712_v8, 0.0  ;;  %v1632_v14 = vpop.permute.xlu0 %1631 }
 0x13b   : > { %v1741_v15 = vpack.c.bf16 %v1726_v11, %v1725_v10  ;;  %v1677_v33 = vmul.f32 %v7372_v41, %v1632_v14  ;;  %v1591_v43 = vadd.f32 %v1575_v29, %v1491_v31 }
 0x13c   : > { %v1742_v16 = vpack.c.bf16 %v1728_v13, %v1727_v12 }
 0x13d   : > { %v1520_v17 = vpop.permute.xlu1 %1519  ;;  %6001 = vmatprep.mubr.msk.bf16.mxu0 %vm1772_vm0, %v1741_v15 }
 0x13e   : > { %6002 = vmatmul.mubr.msk.bf16.vlgmr.msra.gmra.mrb[0].mxu0 %vm1772_vm0, %v1742_v16  ;;  %v1640_v18 = vpop.permute.xlu0 %1639  ;;  %v1574_v23 = vmul.f32 %v7364_v37, %v1520_v17 }
 0x13f   : > { %v1679_v7 = vmul.f32 %v7372_v41, %v1640_v18 }
 0x142   : > { %v1435_v19 = vpop.permute.xlu1 %1434 }
 0x143   : > { %v1425_v20 = vpop.permute.xlu0 %1424  ;;  %v1492_v44 = vmul.f32 %v7368_v38, %v1435_v19 }
 0x144   : > { %v1490_v22 = vmul.f32 %v7368_v38, %v1425_v20 }
 0x145   : > { %v1592_v50 = vadd.f32 %v1576_v42, %v1492_v44 }
 0x146   : > { %v1440_v21 = vpop.permute.xlu1 %1439  ;;  %v1590_v25 = vadd.f32 %v1574_v23, %v1490_v22 }
 0x147   : > { %v1493_v32 = vmul.f32 %v7368_v38, %v1440_v21  ;;  %v1450_v63 = vpop.permute.xlu0 %1449 }
 0x148   : > { %v1690_v34 = vadd.f32 %v1674_v24, %v1590_v25  ;;  %v1495_v6 = vmul.f32 %v7368_v38, %v1450_v63 }
 0x14a   : > { %v1713_v46 = vadd.f32 %v7385_v58, %v1690_v34 }
 0x14b   : > { %v1532_v27 = vpop.permute.xlu1 %1531  ;;  %v1455_v1 = vpop.permute.xlu0 %1454 }
 0x14c   : > { %v1577_v28 = vmul.f32 %v7364_v37, %v1532_v27  ;;  %v1729_v53 = vmax.f32 %v1713_v46, 0.0  ;;  %v1496_v14 = vmul.f32 %v7368_v38, %v1455_v1 }
 0x14e   : > { %v1593_v35 = vadd.f32 %v1577_v28, %v1493_v32 }
 0x14f   : > { %v1465_v4 = vpop.permute.xlu0 %1464 }
 0x150   : > { %v1624_v39 = vpop.permute.xlu1 %1623  ;;  %v1693_v47 = vadd.f32 %v1677_v33, %v1593_v35 }
 0x151   : > { %v1675_v45 = vmul.f32 %v7372_v41, %v1624_v39 }
 0x152   : > { %v1716_v54 = vadd.f32 %v7385_v58, %v1693_v47 }
 0x153   : > { %v1691_v40 = vadd.f32 %v1675_v45, %v1591_v43 }
 0x154   : > { %v1628_v49 = vpop.permute.xlu1 %1627  ;;  %v1732_v60 = vmax.f32 %v1716_v54, 0.0  ;;  %v1544_v10 = vpop.permute.xlu0 %1543 }
 0x155   : > { %v1714_v51 = vadd.f32 %v7385_v58, %v1691_v40  ;;  %v1676_v52 = vmul.f32 %v7372_v41, %v1628_v49  ;;  %v1580_v15 = vmul.f32 %v7364_v37, %v1544_v10 }
 0x157   : > { %v1730_v55 = vmax.f32 %v1714_v51, 0.0  ;;  %v1692_v48 = vadd.f32 %v1676_v52, %v1592_v50  ;;  %v1596_v18 = vadd.f32 %v1580_v15, %v1496_v14 }
 0x158   : > { %v1556_v47 = vpop.permute.xlu0 %1555 }
 0x159   : > { %v1715_v56 = vadd.f32 %v7385_v58, %v1692_v48  ;;  %v1445_v57 = vpop.permute.xlu1 %1444  ;;  %v1743_v59 = vpack.c.bf16 %v1730_v55, %v1729_v53  ;;  %v1498_v55 = vmul.f32 %v7368_v38, %v1465_v4  ;;  %v2009_v48 = vld [vmem:[%s7065_s30] sm:$0xf] }
 0x15a   : > { %v1494_v12 = vmul.f32 %v7368_v38, %v1445_v57  ;;  %v6718_v57 = vld [vmem:[%s7085_s27] sm:$0xff]  }
 0x15b   : > { %v1731_v61 = vmax.f32 %v1715_v56, 0.0  ;;  %6005 = vmatprep.mubr.msk.bf16.mxu0 %vm1772_vm0, %v1743_v59  ;;  %v2010_v56 = vpack.c.bf16 %v2009_v48, %v2009_v48  ;;  %6037 = vmatprep.subr.bf16.mxu1 %v6718_v57 }
 0x15c   : > { %v1560_v50 = vpop.permute.xlu0 %1559 }
 0x15d   : > { %v1744_v62 = vpack.c.bf16 %v1732_v60, %v1731_v61  ;;  %6034 = vmatmul.mubr.msk.bf16.vlgmr.msra.gmra.mrb[0].mxu1 %vm1772_vm0, %v2010_v56 }
 0x15e   : > { %v1536_v0 = vpop.permute.xlu1 %1535  ;;  %6038 = vmatpush3.bf16.msra.mxu1 %v6718_v57 }
 0x15f   : > { %6006 = vmatmul.mubr.msk.bf16.gmra.mrb[4].mxu0 %vm1772_vm0, %v1744_v62  ;;  %v1578_v11 = vmul.f32 %v7364_v37, %v1536_v0  ;;  %v1583_v0 = vmul.f32 %v7364_v37, %v1556_v47 }
 0x161   : > { %v1594_v17 = vadd.f32 %v1578_v11, %v1494_v12  ;;  %v1652_v54 = vpop.permute.xlu0 %1651 }
 0x162   : > { %v1540_v2 = vpop.permute.xlu1 %1539  ;;  %v1682_v60 = vmul.f32 %v7372_v41, %v1652_v54 }
 0x163   : > { %v1579_v5 = vmul.f32 %v7364_v37, %v1540_v2 }
 0x165   : > { %v1595_v8 = vadd.f32 %v1579_v5, %v1495_v6  ;;  %v1664_v63 = vpop.permute.xlu0 %1663 }
 0x166   : > { %v1685_v6 = vmul.f32 %v7372_v41, %v1664_v63 }
 0x167   : > { %v1460_v3 = vpop.permute.xlu1 %1459  ;;  %v1695_v13 = vadd.f32 %v1679_v7, %v1595_v8 }
 0x168   : > { %v1497_v28 = vmul.f32 %v7368_v38, %v1460_v3  ;;  %v6719_v3 = vld [vmem:[%s7085_s27 + $0x8] sm:$0xff]  }
 0x169   : > { %v1718_v20 = vadd.f32 %v7385_v58, %v1695_v13  ;;  %6039 = vmatprep.subr.bf16.mxu1 %v6719_v3 }
 0x16a   : > { %6040 = vmatpush3.bf16.msra.mxu1 %v6719_v3 }
 0x16b   : > { %v1734_v27 = vmax.f32 %v1718_v20, 0.0  ;;  %6077 = vmatprep.subr.bf16.mxu1 %v6987_v36 }
 0x16c   : > { %v1548_v9 = vpop.permute.xlu1 %1547 }
 0x16d   : > { %v1581_v23 = vmul.f32 %v7364_v37, %v1548_v9  ;;  %v1584_v9 = vmul.f32 %v7364_v37, %v1560_v50 }
 0x16f   : > { %v1597_v33 = vadd.f32 %v1581_v23, %v1497_v28  ;;  %v6723_v28 = vld [vmem:[%s8541_s8 + $0x18] sm:$0xff]  }
 0x171   : > { %v1636_v16 = vpop.permute.xlu1 %1635 }
 0x172   : > { %v1678_v19 = vmul.f32 %v7372_v41, %v1636_v16 }
 0x174   : > { %v1694_v21 = vadd.f32 %v1678_v19, %v1594_v17 }
 0x175   : > { %v1644_v22 = vpop.permute.xlu1 %1643 }
 0x176   : > { %v1717_v24 = vadd.f32 %v7385_v58, %v1694_v21  ;;  %v1680_v25 = vmul.f32 %v7372_v41, %v1644_v22 }
 0x178   : > { %v1733_v29 = vmax.f32 %v1717_v24, 0.0  ;;  %v1696_v31 = vadd.f32 %v1680_v25, %v1596_v18 }
 0x179   : > { %v1648_v32 = vpop.permute.xlu1 %1647 }
 0x17a   : > { %v1681_v34 = vmul.f32 %v7372_v41, %v1648_v32  ;;  %v1745_v35 = vpack.c.bf16 %v1734_v27, %v1733_v29  ;;  %v1719_v39 = vadd.f32 %v7385_v58, %v1696_v31  ;;  %v6721_v27 = vld [vmem:[%s8541_s8 + $0x8] sm:$0xff]   ;;  %v5636_v31 = vld [vmem:[%s8552_s3] ss:$0 sm:$0xff]  ;;  %s8564_s3 = smov 88  }
 0x17c   : > { %v1697_v42 = vadd.f32 %v1681_v34, %v1597_v33  ;;  %6009 = vmatprep.mubr.msk.bf16.mxu0 %vm1772_vm0, %v1745_v35  ;;  %v1735_v45 = vmax.f32 %v1719_v39, 0.0 }
 0x17e   : > { %v1720_v43 = vadd.f32 %v7385_v58, %v1697_v42  ;;  %v1470_v44 = vpop.permute.xlu1 %1469 }
 0x17f   : > { %v1499_v1 = vmul.f32 %v7368_v38, %v1470_v44 }
 0x180   : > { %v1736_v46 = vmax.f32 %v1720_v43, 0.0 }
 0x181   : > { %v1599_v8 = vadd.f32 %v1583_v0, %v1499_v1 }
 0x182   : > { %v1746_v40 = vpack.c.bf16 %v1736_v46, %v1735_v45 }
 0x183   : > { %v1552_v49 = vpop.permute.xlu1 %1551 }
 0x184   : > { %6010 = vmatmul.mubr.msk.bf16.gmra.mrb[8].mxu0 %vm1772_vm0, %v1746_v40  ;;  %v1582_v53 = vmul.f32 %v7364_v37, %v1552_v49 }
 0x186   : > { %v1598_v59 = vadd.f32 %v1582_v53, %v1498_v55 }
 0x188   : > { %v1475_v51 = vpop.permute.xlu1 %1474  ;;  %v1698_v4 = vadd.f32 %v1682_v60, %v1598_v59 }
 0x189   : > { %v1500_v10 = vmul.f32 %v7368_v38, %v1475_v51 }
 0x18a   : > { %v1721_v12 = vadd.f32 %v7385_v58, %v1698_v4 }
 0x18b   : > { %v1600_v16 = vadd.f32 %v1584_v9, %v1500_v10 }
 0x18c   : > { %v1480_v52 = vpop.permute.xlu1 %1479 }
 0x18d   : > { %v1501_v2 = vmul.f32 %v7368_v38, %v1480_v52 }
 0x191   : > { %v1564_v61 = vpop.permute.xlu1 %1563 }
 0x192   : > { %v1585_v62 = vmul.f32 %v7364_v37, %v1564_v61  ;;  %v1737_v37 = vmax.f32 %v1721_v12, 0.0 }
 0x194   : > { %v1601_v5 = vadd.f32 %v1585_v62, %v1501_v2 }
 0x196   : > { %v1656_v7 = vpop.permute.xlu1 %1655  ;;  %v1701_v13 = vadd.f32 %v1685_v6, %v1601_v5  ;;  %v1894_v6 = vld [vmem:[%s1375_s16] sm:$0xff]  ;;  %s8489_s16 = smov 80  }
 0x197   : > { %v1683_v11 = vmul.f32 %v7372_v41, %v1656_v7  ;;  %v1895_v7 = vpack.c.bf16 %v1894_v6, %v1894_v6 }
 0x198   : > { %v1724_v38 = vadd.f32 %v7385_v58, %v1701_v13 }
 0x199   : > { %v1699_v14 = vadd.f32 %v1683_v11, %v1599_v8 }
 0x19a   : > { %v1660_v15 = vpop.permute.xlu1 %1659  ;;  %v1740_v23 = vmax.f32 %v1724_v38, 0.0 }
 0x19b   : > { %v1722_v17 = vadd.f32 %v7385_v58, %v1699_v14  ;;  %v1684_v19 = vmul.f32 %v7372_v41, %v1660_v15  ;;  %v6720_v41 = vld [vmem:[%s8541_s8] sm:$0xff]  }
 0x19c   : > { %6018 = vmatpush3.bf16.msra.mxu0 %v6720_v41 }
 0x19d   : > { %v1738_v20 = vmax.f32 %v1722_v17, 0.0  ;;  %v1700_v21 = vadd.f32 %v1684_v19, %v1600_v16  ;;  %6019 = vmatprep.subr.bf16.mxu0 %v6987_v36 }
 0x19f   : > { %v1723_v18 = vadd.f32 %v7385_v58, %v1700_v21  ;;  %v1747_v22 = vpack.c.bf16 %v1738_v20, %v1737_v37  ;;  %v6722_v58 = vld [vmem:[%s8541_s8 + $0x10] sm:$0xff]   ;;  %v7509_v37 = vld [vmem:[%s8554_s4] ss:$0 sm:$0xff]  ;;  %s8565_s4 = smov 96   ;;  %s8569_s8 = smov 112  }
 0x1a0   : > { %6020 = vmatpush3.bf16.msra.mxu0 %v6721_v27 }
 0x1a1   : > { %v1739_v24 = vmax.f32 %v1723_v18, 0.0  ;;  %6013 = vmatprep.mubr.msk.bf16.mxu0 %vm1772_vm0, %v1747_v22  ;;  %6021 = vmatprep.subr.bf16.mxu0 %v6987_v36 }
 0x1a3   : > { %v1748_v25 = vpack.c.bf16 %v1740_v23, %v1739_v24 }
 0x1a4   : > { %6022 = vmatpush3.bf16.msra.mxu0 %v6722_v58 }
 0x1a5   : > { %6014 = vmatmul.mubr.msk.bf16.gmra.mrb[12].mxu0 %vm1772_vm0, %v1748_v25  ;;  %6023 = vmatprep.subr.bf16.mxu0 %v6987_v36 }
 0x1a6   : > { %6025 = vmatprep.mubr.msk.bf16.mxu0 %vm6988_vm1, %v6987_v36 }
 0x1a8   : > { %6024 = vmatpush3.bf16.msra.mxu0 %v6723_v28 }
 0x1a9   : > { %6057 = vmatprep.subr.bf16.mxu0 %v6987_v36 }
 0x1ad   : > { %6026 = vmatmul.mubr.msk.bf16.vlgmr.msra.gmra.mrb[16].mxu0 %vm1935_vm2, %v1895_v7 }
 0x1ae   : > { %6073 = vmatprep.mubr.msk.bf16.mxu0 %vm6988_vm1, %v6987_v36 }
 0x211   : > { %v6003_v29 = vpop.f32.mrb[0].mxu0 }
 0x212   : > { %v1831_v32 = vpop.f32.mrb[1].mxu0  ;;  %v1840_v34 = vadd.f32 %v6003_v29, %v5636_v31 }
 0x213   : > { %v6004_v33 = vpop.f32.mrb[2].mxu0  ;;  %v1832_v42 = vadd.f32 %v5636_v31, %v1831_v32 }
 0x214   : > { %v1843_v35 = vadd.f32 %v6004_v33, %v5636_v31  ;;  %v1834_v39 = vpop.f32.mrb[3].mxu0 }
 0x215   : > { %v1835_v43 = vadd.f32 %v5636_v31, %v1834_v39 }
 0x216   : > { %v7467_v44 = vpack.c.bf16 %v1843_v35, %v1840_v34 }
 0x217   : > { %v7469_v45 = vpack.c.bf16 %v1835_v43, %v1832_v42 }
 0x219   : > { %6041 = vmatprep.mubr.msk.bf16.mxu1 %vm1772_vm0, %v7469_v45 }
 0x21a   : > { %6042 = vmatmul.mubr.msk.bf16.vlgmr.msra.gmra.mrb[4].mxu1 %vm1772_vm0, %v7467_v44 }
 0x230   : > { %v7491_v2 = vpop.f32.mrb[0].mxu1 }
 0x231   : > { %v6035_v3 = vpop.f32.mrb[1].mxu1 }
 0x232   : > { %v6007_v46 = vpop.f32.mrb[4].mxu0  ;;  %v2074_v4 = vpop.f32.mrb[2].mxu1 }
 0x233   : > { %v1847_v47 = vpop.f32.mrb[5].mxu0  ;;  %v1856_v49 = vadd.f32 %v6007_v46, %v5636_v31  ;;  %v6036_v5 = vpop.f32.mrb[3].mxu1 }
 0x234   : > { %v6008_v40 = vpop.f32.mrb[6].mxu0  ;;  %v1848_v52 = vadd.f32 %v5636_v31, %v1847_v47 }
 0x235   : > { %v1859_v50 = vadd.f32 %v6008_v40, %v5636_v31  ;;  %v1850_v51 = vpop.f32.mrb[7].mxu0 }
 0x236   : > { %v1851_v53 = vadd.f32 %v5636_v31, %v1850_v51 }
 0x237   : > { %v7475_v54 = vpack.c.bf16 %v1859_v50, %v1856_v49 }
 0x238   : > { %v7477_v55 = vpack.c.bf16 %v1851_v53, %v1848_v52 }
 0x23a   : > { %6045 = vmatprep.mubr.msk.bf16.mxu1 %vm1772_vm0, %v7477_v55 }
 0x23b   : > { %6046 = vmatmul.mubr.msk.bf16.gmra.mrb[8].mxu1 %vm1772_vm0, %v7475_v54 }
 0x257   : > { %v6011_v48 = vpop.f32.mrb[8].mxu0 }
 0x258   : > { %v1863_v56 = vpop.f32.mrb[9].mxu0  ;;  %v1872_v59 = vadd.f32 %v6011_v48, %v5636_v31 }
 0x259   : > { %v6012_v57 = vpop.f32.mrb[10].mxu0  ;;  %v1864_v62 = vadd.f32 %v5636_v31, %v1863_v56 }
 0x25a   : > { %v1875_v60 = vadd.f32 %v6012_v57, %v5636_v31  ;;  %v1866_v61 = vpop.f32.mrb[11].mxu0 }
 0x25b   : > { %v1867_v63 = vadd.f32 %v5636_v31, %v1866_v61 }
 0x25c   : > { %v7483_v0 = vpack.c.bf16 %v1875_v60, %v1872_v59 }
 0x25d   : > { %v7485_v1 = vpack.c.bf16 %v1867_v63, %v1864_v62 }
 0x25f   : > { %6049 = vmatprep.mubr.msk.bf16.mxu1 %vm1772_vm0, %v7485_v1 }
 0x260   : > { %6050 = vmatmul.mubr.msk.bf16.gmra.mrb[12].mxu1 %vm1772_vm0, %v7483_v0 }
 0x278   : > { %v6015_v8 = vpop.f32.mrb[12].mxu0 }
 0x279   : > { %v1879_v9 = vpop.f32.mrb[13].mxu0  ;;  %v1888_v11 = vadd.f32 %v6015_v8, %v5636_v31 }
 0x27a   : > { %v6016_v10 = vpop.f32.mrb[14].mxu0  ;;  %v1880_v14 = vadd.f32 %v5636_v31, %v1879_v9 }
 0x27b   : > { %v1891_v12 = vadd.f32 %v6016_v10, %v5636_v31  ;;  %v1882_v13 = vpop.f32.mrb[15].mxu0 }
 0x27c   : > { %v1883_v15 = vadd.f32 %v5636_v31, %v1882_v13 }
 0x27d   : > { %v7498_v16 = vpack.c.bf16 %v1891_v12, %v1888_v11 }
 0x27e   : > { %v7500_v17 = vpack.c.bf16 %v1883_v15, %v1880_v14 }
 0x280   : > { %6053 = vmatprep.mubr.msk.bf16.mxu1 %vm1772_vm0, %v7500_v17  ;;  %v7559_v62 = vpop.f32.mrb[16].mxu0 }
 0x281   : > { %6054 = vmatmul.mubr.msk.bf16.gmra.mrb[16].mxu1 %vm1772_vm0, %v7498_v16  ;;  %v6027_v63 = vpop.f32.mrb[17].mxu0 }
 0x282   : > { %6093 = vmatprep.mubr.msk.bf16.mxu1 %vm6988_vm1, %v6987_v36  ;;  %v1976_v3 = vpop.f32.mrb[18].mxu0 }
 0x283   : > { %v6028_v4 = vpop.f32.mrb[19].mxu0 }
 0x2ed   : > { %v6043_v19 = vpop.f32.mrb[4].mxu1 }
 0x2ee   : > { %v2166_v38 = vpop.f32.mrb[5].mxu1  ;;  %v2175_v21 = vadd.f32 %v6043_v19, %v7509_v37  ;;  %v5655_v19 = vld [vmem:[%s7080_s20] ss:$0 sm:$0xff] }
 0x2ef   : > { %v6044_v20 = vpop.f32.mrb[6].mxu1  ;;  %v2167_v23 = vadd.f32 %v7509_v37, %v2166_v38 }
 0x2f0   : > { %v2178_v18 = vadd.f32 %v6044_v20, %v7509_v37  ;;  %v2169_v22 = vpop.f32.mrb[7].mxu1  ;;  %v2072_v20 = vadd.f32 %v5655_v19, %v7491_v2 }
 0x2f1   : > { %v2170_v24 = vadd.f32 %v7509_v37, %v2169_v22 }
 0x2f2   : > { %v7515_v25 = vpack.c.bf16 %v2178_v18, %v2175_v21  ;;  %v7578_v21 = vpack.c.bf16 %v2072_v20, %v2072_v20 }
 0x2f3   : > { %v7517_v41 = vpack.c.bf16 %v2170_v24, %v2167_v23 }
 0x2f4   : > { %v2251_v58 = vsel %vm2243_vm3, %v7515_v25, 0 }
 0x2f5   : > { %2333 = vrot.lane.b32.xlu0 %v7517_v41, %s8493_s10  ;;  %v2248_v27 = vsel %vm2243_vm3, %v7517_v41, 0 }
 0x2f6   : > { %6058 = vmatpush3.bf16.xpose.msra.mxu0 %v2248_v27 }
 0x2f7   : > { %6059 = vmatprep.subr.bf16.mxu0 %v6987_v36 }
 0x2f9   : > { %2335 = vrot.lane.b32.xlu0 %v7515_v25, %s8493_s10 }
 0x2fe   : > { %6060 = vmatpush3.bf16.xpose.msra.mxu0 %v2251_v58 }
 0x2ff   : > { %6061 = vmatprep.subr.bf16.mxu0 %v6987_v36 }
 0x30e   : > { %v6047_v28 = vpop.f32.mrb[8].mxu1 }
 0x30f   : > { %v2182_v29 = vpop.f32.mrb[9].mxu1  ;;  %v2191_v32 = vadd.f32 %v6047_v28, %v7509_v37 }
 0x310   : > { %v6048_v31 = vpop.f32.mrb[10].mxu1  ;;  %v2183_v35 = vadd.f32 %v7509_v37, %v2182_v29 }
 0x311   : > { %v2194_v33 = vadd.f32 %v6048_v31, %v7509_v37  ;;  %v2185_v34 = vpop.f32.mrb[11].mxu1 }
 0x312   : > { %v2186_v39 = vadd.f32 %v7509_v37, %v2185_v34 }
 0x313   : > { %v7533_v42 = vpack.c.bf16 %v2194_v33, %v2191_v32 }
 0x314   : > { %v7535_v43 = vpack.c.bf16 %v2186_v39, %v2183_v35 }
 0x315   : > { %2339 = vrot.lane.b32.xlu0 %v7533_v42, %s8493_s10  ;;  %v2257_v47 = vsel %vm2243_vm3, %v7533_v42, 0 }
 0x316   : > { %v2254_v46 = vsel %vm2243_vm3, %v7535_v43, 0 }
 0x317   : > { %6062 = vmatpush3.bf16.xpose.msra.mxu0 %v2254_v46 }
 0x318   : > { %6063 = vmatprep.subr.bf16.mxu0 %v6987_v36 }
 0x31f   : > { %6064 = vmatpush3.bf16.xpose.msra.mxu0 %v2257_v47 }
 0x320   : > { %6065 = vmatprep.subr.bf16.mxu0 %v6987_v36 }
 0x333   : > { %v6051_v40 = vpop.f32.mrb[12].mxu1 }
 0x334   : > { %v2198_v49 = vpop.f32.mrb[13].mxu1  ;;  %v2207_v51 = vadd.f32 %v6051_v40, %v7509_v37 }
 0x335   : > { %v6052_v50 = vpop.f32.mrb[14].mxu1  ;;  %v2199_v48 = vadd.f32 %v7509_v37, %v2198_v49 }
 0x336   : > { %v2210_v52 = vadd.f32 %v6052_v50, %v7509_v37  ;;  %v2201_v53 = vpop.f32.mrb[15].mxu1 }
 0x337   : > { %v2202_v56 = vadd.f32 %v7509_v37, %v2201_v53 }
 0x338   : > { %v7549_v57 = vpack.c.bf16 %v2210_v52, %v2207_v51 }
 0x339   : > { %v7551_v59 = vpack.c.bf16 %v2202_v56, %v2199_v48 }
 0x33a   : > { %v2263_v61 = vsel %vm2243_vm3, %v7549_v57, 0 }
 0x33b   : > { %v2260_v60 = vsel %vm2243_vm3, %v7551_v59, 0 }
 0x33c   : > { %6066 = vmatpush3.bf16.xpose.msra.mxu0 %v2260_v60 }
 0x33d   : > { %6067 = vmatprep.subr.bf16.mxu0 %v6987_v36 }
 0x344   : > { %6068 = vmatpush3.bf16.xpose.msra.mxu0 %v2263_v61 }
 0x345   : > { %6069 = vmatprep.subr.bf16.mxu0 %v6987_v36 }
 0x354   : > { %v6055_v5 = vpop.f32.mrb[16].mxu1 }
 0x355   : > { %v2214_v6 = vpop.f32.mrb[17].mxu1  ;;  %v2223_v8 = vadd.f32 %v6055_v5, %v7509_v37 }
 0x356   : > { %v6056_v7 = vpop.f32.mrb[18].mxu1  ;;  %v2215_v11 = vadd.f32 %v7509_v37, %v2214_v6 }
 0x357   : > { %v2226_v9 = vadd.f32 %v6056_v7, %v7509_v37  ;;  %v2217_v10 = vpop.f32.mrb[19].mxu1 }
 0x358   : > { %v2218_v12 = vadd.f32 %v7509_v37, %v2217_v10 }
 0x359   : > { %v7565_v13 = vpack.c.bf16 %v2226_v9, %v2223_v8 }
 0x35a   : > { %v7567_v14 = vpack.c.bf16 %v2218_v12, %v2215_v11 }
 0x35b   : > { %v2269_v38 = vsel %vm2243_vm3, %v7565_v13, 0 }
 0x35c   : > { %v2266_v15 = vsel %vm2243_vm3, %v7567_v14, 0 }
 0x35d   : > { %6070 = vmatpush3.bf16.xpose.msra.mxu0 %v2266_v15 }
 0x35e   : > { %6071 = vmatprep.subr.bf16.mxu0 %v6987_v36 }
 0x365   : > { %6072 = vmatpush3.bf16.xpose.msra.mxu0 %v2269_v38 }
 0x366   : > { %6117 = vmatprep.subr.bf16.mxu0 %v6987_v36 }
 0x367   : > { %v2334_v37 = vpop.permute.xlu0 %2333 }
 0x368   : > { %6078 = vmatpush3.bf16.msra.mxu1 %v2334_v37 }
 0x369   : > { %6079 = vmatprep.subr.bf16.mxu1 %v6987_v36 }
 0x36b   : > { %v2336_v18 = vpop.permute.xlu0 %2335 }
 0x36c   : > { %6074 = vmatmul.mubr.msk.bf16.vlgmr.msra.gmra.mrb[20].mxu0 %vm2243_vm3, %v7578_v21  ;;  %6080 = vmatpush3.bf16.msra.mxu1 %v2336_v18 }
 0x36d   : > { %6081 = vmatprep.subr.bf16.mxu1 %v6987_v36  ;;  %6133 = vmatprep.mubr.msk.bf16.mxu0 %vm6988_vm1, %v6987_v36 }
 0x387   : > { %v2340_v33 = vpop.permute.xlu0 %2339 }
 0x43f   : > { %v2305_v22 = vpop.f32.mrb[20].mxu0 }
 0x440   : > { %v2311_v2 = vmul.f32 0.35355338, %v2305_v22  ;;  %v6075_v23 = vpop.f32.mrb[21].mxu0 }
 0x441   : > { %v2308_v24 = vpop.f32.mrb[22].mxu0 }
 0x442   : > { %v6076_v27 = vpop.f32.mrb[23].mxu0  ;;  %v2313_v58 = vsel %vm2312_vm4, %v2311_v2, -inf }
 0x443   : > { %2314 = vmax.xlane.f32.xlu1 %v2313_v58 }
 0x454   : > { %2337 = vrot.lane.b32.xlu1 %v7535_v43, %s8493_s10 }
 0x458   : > { %2341 = vrot.lane.b32.xlu1 %v7551_v59, %s8493_s10 }
 0x45c   : > { %2343 = vrot.lane.b32.xlu1 %v7549_v57, %s8493_s10 }
 0x460   : > { %2345 = vrot.lane.b32.xlu1 %v7567_v14, %s8493_s10 }
 0x464   : > { %2401 = vrot.lane.b32.xlu1 %v7517_v41, %s8485_s18 }
 0x468   : > { %2405 = vrot.lane.b32.xlu1 %v7535_v43, %s8485_s18 }
 0x46c   : > { %2409 = vrot.lane.b32.xlu1 %v7551_v59, %s8485_s18 }
 0x470   : > { %2413 = vrot.lane.b32.xlu1 %v7567_v14, %s8485_s18 }
 0x474   : > { %2399 = vrot.lane.b32.xlu1 %v7578_v21, %s8485_s18 }
 0x478   : > { %2497 = vrot.lane.b32.xlu1 %v7517_v41, %s8495_s26 }
 0x47c   : > { %2501 = vrot.lane.b32.xlu1 %v7535_v43, %s8495_s26 }
 0x480   : > { %2507 = vrot.lane.b32.xlu1 %v7549_v57, %s8495_s26 }
 0x4d0   : > { %v2315_v28 = vpop.xlane.xlu1 %2314 }
 0x4d1   : > { %v2316_v29 = vsub.f32 %v2311_v2, %v2315_v28 }
 0x4d3   : > { %v2317_v31 = vmul.f32 1.442695, %v2316_v29 }
 0x4d4   : > { %v2338_v32 = vpop.permute.xlu1 %2337 }
 0x4d5   : > { %6738 = vpow2.f32 %v2317_v31  ;;  %6082 = vmatpush3.bf16.msra.mxu1 %v2338_v32 }
 0x4d6   : > { %6083 = vmatprep.subr.bf16.mxu1 %v6987_v36 }
 0x4d8   : > { %v2342_v34 = vpop.permute.xlu1 %2341 }
 0x4d9   : > { %6084 = vmatpush3.bf16.msra.mxu1 %v2340_v33 }
 0x4da   : > { %6085 = vmatprep.subr.bf16.mxu1 %v6987_v36 }
 0x4dc   : > { %v2344_v35 = vpop.permute.xlu1 %2343 }
 0x4dd   : > { %6086 = vmatpush3.bf16.msra.mxu1 %v2342_v34 }
 0x4de   : > { %6087 = vmatprep.subr.bf16.mxu1 %v6987_v36 }
 0x4df   : > { %v6739_v39 = vpop.eup %6738 }
 0x4e0   : > { %v2346_v46 = vpop.permute.xlu1 %2345  ;;  %v2319_v47 = vsel %vm2312_vm4, %v6739_v39, 0.0 }
 0x4e1   : > { %2320 = vadd.xlane.f32.xlu0 %v2319_v47  ;;  %6088 = vmatpush3.bf16.msra.mxu1 %v2344_v35 }
 0x4e2   : > { %6089 = vmatprep.subr.bf16.mxu1 %v6987_v36 }
 0x4e4   : > { %v2402_v40 = vpop.permute.xlu1 %2401 }
 0x4e5   : > { %6090 = vmatpush3.bf16.msra.mxu1 %v2346_v46  ;;  %v2421_v3 = vsel %vm2243_vm3, %v2402_v40, 0 }
 0x4e6   : > { %6091 = vmatprep.subr.bf16.mxu1 %v6987_v36 }
 0x4e8   : > { %v2406_v49 = vpop.permute.xlu1 %2405 }
 0x4e9   : > { %v2427_v6 = vsel %vm2243_vm3, %v2406_v49, 0 }
 0x4ec   : > { %v2410_v50 = vpop.permute.xlu1 %2409 }
 0x4ed   : > { %v2433_v9 = vsel %vm2243_vm3, %v2410_v50, 0 }
 0x4f0   : > { %v2414_v51 = vpop.permute.xlu1 %2413 }
 0x4f1   : > { %v2439_v12 = vsel %vm2243_vm3, %v2414_v51, 0 }
 0x4f4   : > { %v2400_v52 = vpop.permute.xlu1 %2399 }
 0x4f7   : > { %2347 = vrot.lane.b32.xlu0 %v7565_v13, %s8493_s10  ;;  %s8559_s10 = sld [smem:[#allocation21_spill]] }
 0x4f8   : > { %v2498_v53 = vpop.permute.xlu1 %2497 }
 0x4f9   : > { %6118 = vmatpush3.bf16.msra.mxu0 %v2498_v53 }
 0x4fa   : > { %6119 = vmatprep.subr.bf16.mxu0 %v6987_v36 }
 0x4fb   : > { %2403 = vrot.lane.b32.xlu0 %v7515_v25, %s8485_s18 }
 0x4fc   : > { %v2502_v33 = vpop.permute.xlu1 %2501 }
 0x4ff   : > { %2407 = vrot.lane.b32.xlu0 %v7533_v42, %s8485_s18 }
 0x500   : > { %v2508_v40 = vpop.permute.xlu1 %2507 }
 0x503   : > { %2411 = vrot.lane.b32.xlu0 %v7549_v57, %s8485_s18 }
 0x507   : > { %2415 = vrot.lane.b32.xlu0 %v7565_v13, %s8485_s18  ;;  %s8491_s18 = smov 72  }
 0x56e   : > { %v2321_v48 = vpop.xlane.xlu0 %2320 }
 0x56f   : > { %6740 = vrcp.f32 %v2321_v48 }
 0x572   : > { %v2348_v56 = vpop.permute.xlu0 %2347 }
 0x573   : > { %6092 = vmatpush3.bf16.msra.mxu1 %v2348_v56 }
 0x574   : > { %6097 = vmatprep.subr.bf16.mxu1 %v6987_v36 }
 0x576   : > { %v2404_v4 = vpop.permute.xlu0 %2403 }
 0x577   : > { %v2424_v5 = vsel %vm2243_vm3, %v2404_v4, 0 }
 0x579   : > { %v6741_v60 = vpop.eup %6740 }
 0x57a   : > { %v2323_v61 = vmul.f32 %v6741_v60, %v6739_v39  ;;  %v2408_v7 = vpop.permute.xlu0 %2407 }
 0x57b   : > { %v2430_v8 = vsel %vm2243_vm3, %v2408_v7, 0 }
 0x57c   : > { %v2324_v63 = vpack.c.bf16 %v2323_v61, %v2323_v61 }
 0x57e   : > { %6094 = vmatmul.mubr.bf16.vlgmr.msra.gmra.mrb[20].mxu1 %v2324_v63  ;;  %v2412_v10 = vpop.permute.xlu0 %2411  ;;  %v2230_v63 = vld [vmem:[%s7095_s17 + $0x4] sm:$0xf] }
 0x57f   : > { %6098 = vmatpush3.bf16.xpose.msra.mxu1 %v2421_v3  ;;  %6113 = vmatprep.mubr.msk.bf16.mxu1 %vm6988_vm1, %v6987_v36  ;;  %v2436_v11 = vsel %vm2243_vm3, %v2412_v10, 0 }
 0x580   : > { %6099 = vmatprep.subr.bf16.mxu1 %v6987_v36 }
 0x582   : > { %v2416_v15 = vpop.permute.xlu0 %2415 }
 0x583   : > { %v2442_v19 = vsel %vm2243_vm3, %v2416_v15, 0 }
 0x587   : > { %6100 = vmatpush3.bf16.xpose.msra.mxu1 %v2424_v5  ;;  %v2566_v5 = vsel %vm2312_vm4, %v2230_v63, 0 }
 0x588   : > { %6101 = vmatprep.subr.bf16.mxu1 %v6987_v36 }
 0x58f   : > { %6102 = vmatpush3.bf16.xpose.msra.mxu1 %v2427_v6  ;;  %v2229_v6 = vld [vmem:[%s7095_s17] sm:$0xf] }
 0x590   : > { %6103 = vmatprep.subr.bf16.mxu1 %v6987_v36  ;;  %v2612_v10 = vsel %vm2312_vm4, %v2229_v6, 0 }
 0x597   : > { %6104 = vmatpush3.bf16.xpose.msra.mxu1 %v2430_v8 }
 0x598   : > { %6105 = vmatprep.subr.bf16.mxu1 %v6987_v36 }
 0x59f   : > { %6106 = vmatpush3.bf16.xpose.msra.mxu1 %v2433_v9 }
 0x5a0   : > { %6107 = vmatprep.subr.bf16.mxu1 %v6987_v36 }
 0x5a7   : > { %6108 = vmatpush3.bf16.xpose.msra.mxu1 %v2436_v11 }
 0x5a8   : > { %6109 = vmatprep.subr.bf16.mxu1 %v6987_v36 }
 0x5af   : > { %6110 = vmatpush3.bf16.xpose.msra.mxu1 %v2439_v12 }
 0x5b0   : > { %6111 = vmatprep.subr.bf16.mxu1 %v6987_v36 }
 0x5b7   : > { %6112 = vmatpush3.bf16.xpose.msra.mxu1 %v2442_v19 }
 0x5b8   : > { %6169 = vmatprep.subr.bf16.mxu1 %v6987_v36 }
 0x5be   : > { %6114 = vmatmul.mubr.msk.bf16.vlgmr.msra.gmra.mrb[24].mxu1 %vm2243_vm3, %v2400_v52 }
 0x5bf   : > { %6185 = vmatprep.mubr.msk.bf16.mxu1 %vm6988_vm1, %v6987_v36 }
 0x651   : > { %v7649_v38 = vpop.f32.mrb[20].mxu1 }
 0x652   : > { %v6095_v20 = vpop.f32.mrb[21].mxu1  ;;  %v2397_v15 = vpack.c.bf16 %v7649_v38, %v7649_v38 }
 0x653   : > { %v2394_v37 = vpop.f32.mrb[22].mxu1 }
 0x654   : > { %v6096_v18 = vpop.f32.mrb[23].mxu1 }
 0x691   : > { %v2478_v22 = vpop.f32.mrb[24].mxu1 }
 0x692   : > { %v2484_v2 = vmul.f32 0.35355338, %v2478_v22  ;;  %v6115_v23 = vpop.f32.mrb[25].mxu1 }
 0x693   : > { %v2481_v24 = vpop.f32.mrb[26].mxu1 }
 0x694   : > { %v6116_v27 = vpop.f32.mrb[27].mxu1  ;;  %v2485_v58 = vsel %vm2312_vm4, %v2484_v2, -inf }
 0x695   : > { %2486 = vmax.xlane.f32.xlu0 %v2485_v58 }
 0x6ab   : > { %2499 = vrot.lane.b32.xlu0 %v7515_v25, %s8495_s26 }
 0x6af   : > { %2503 = vrot.lane.b32.xlu0 %v7533_v42, %s8495_s26 }
 0x6b3   : > { %2505 = vrot.lane.b32.xlu0 %v7551_v59, %s8495_s26 }
 0x6b7   : > { %2509 = vrot.lane.b32.xlu0 %v7567_v14, %s8495_s26 }
 0x6bb   : > { %2656 = vrot.lane.b32.xlu0 %v7517_v41, %s8483_s15 }
 0x6bf   : > { %2660 = vrot.lane.b32.xlu0 %v7535_v43, %s8483_s15 }
 0x6c3   : > { %2664 = vrot.lane.b32.xlu0 %v7551_v59, %s8483_s15 }
 0x6c7   : > { %2668 = vrot.lane.b32.xlu0 %v7567_v14, %s8483_s15 }
 0x6cb   : > { %2654 = vrot.lane.b32.xlu0 %v7578_v21, %s8483_s15 }
 0x6cf   : > { %2752 = vrot.lane.b32.xlu0 %v7517_v41, %s8489_s16 }
 0x6d3   : > { %2756 = vrot.lane.b32.xlu0 %v7535_v43, %s8489_s16 }
 0x6d7   : > { %2762 = vrot.lane.b32.xlu0 %v7549_v57, %s8489_s16 }
 0x722   : > { %v2487_v28 = vpop.xlane.xlu0 %2486 }
 0x723   : > { %v2488_v29 = vsub.f32 %v2484_v2, %v2487_v28 }
 0x725   : > { %v2489_v31 = vmul.f32 1.442695, %v2488_v29 }
 0x726   : > { %v2500_v32 = vpop.permute.xlu0 %2499 }
 0x727   : > { %6742 = vpow2.f32 %v2489_v31  ;;  %6120 = vmatpush3.bf16.msra.mxu0 %v2500_v32 }
 0x728   : > { %6121 = vmatprep.subr.bf16.mxu0 %v6987_v36 }
 0x72a   : > { %v2504_v34 = vpop.permute.xlu0 %2503 }
 0x72b   : > { %6122 = vmatpush3.bf16.msra.mxu0 %v2502_v33 }
 0x72c   : > { %6123 = vmatprep.subr.bf16.mxu0 %v6987_v36 }
 0x72e   : > { %v2506_v35 = vpop.permute.xlu0 %2505 }
 0x72f   : > { %6124 = vmatpush3.bf16.msra.mxu0 %v2504_v34 }
 0x730   : > { %6125 = vmatprep.subr.bf16.mxu0 %v6987_v36 }
 0x731   : > { %v6743_v39 = vpop.eup %6742 }
 0x732   : > { %v2510_v46 = vpop.permute.xlu0 %2509  ;;  %v2491_v47 = vsel %vm2312_vm4, %v6743_v39, 0.0 }
 0x733   : > { %2492 = vadd.xlane.f32.xlu1 %v2491_v47  ;;  %6126 = vmatpush3.bf16.msra.mxu0 %v2506_v35 }
 0x734   : > { %6127 = vmatprep.subr.bf16.mxu0 %v6987_v36 }
 0x736   : > { %v2657_v49 = vpop.permute.xlu0 %2656 }
 0x737   : > { %6128 = vmatpush3.bf16.msra.mxu0 %v2508_v40  ;;  %v2676_v19 = vsel %vm2243_vm3, %v2657_v49, 0 }
 0x738   : > { %6129 = vmatprep.subr.bf16.mxu0 %v6987_v36 }
 0x73a   : > { %v2661_v50 = vpop.permute.xlu0 %2660 }
 0x73b   : > { %6130 = vmatpush3.bf16.msra.mxu0 %v2510_v46  ;;  %v2682_v18 = vsel %vm2243_vm3, %v2661_v50, 0 }
 0x73c   : > { %6131 = vmatprep.subr.bf16.mxu0 %v6987_v36 }
 0x73e   : > { %v2665_v51 = vpop.permute.xlu0 %2664 }
 0x73f   : > { %v2688_v2 = vsel %vm2243_vm3, %v2665_v51, 0 }
 0x742   : > { %v2669_v52 = vpop.permute.xlu0 %2668 }
 0x743   : > { %v2694_v27 = vsel %vm2243_vm3, %v2669_v52, 0 }
 0x744   : > { %2511 = vrot.lane.b32.xlu1 %v7565_v13, %s8495_s26  ;;  %s8560_s26 = sld [smem:[#allocation18_spill]] }
 0x746   : > { %v7685_v53 = vpop.permute.xlu0 %2654 }
 0x748   : > { %2658 = vrot.lane.b32.xlu1 %v7515_v25, %s8483_s15 }
 0x74a   : > { %v2753_v48 = vpop.permute.xlu0 %2752 }
 0x74b   : > { %6170 = vmatpush3.bf16.msra.mxu1 %v2753_v48 }
 0x74c   : > { %2662 = vrot.lane.b32.xlu1 %v7533_v42, %s8483_s15  ;;  %6171 = vmatprep.subr.bf16.mxu1 %v6987_v36 }
 0x74e   : > { %v2757_v63 = vpop.permute.xlu0 %2756 }
 0x750   : > { %2666 = vrot.lane.b32.xlu1 %v7549_v57, %s8483_s15 }
 0x754   : > { %2670 = vrot.lane.b32.xlu1 %v7565_v13, %s8483_s15  ;;  %s8487_s15 = smov 104  }
 0x7c0   : > { %v2493_v56 = vpop.xlane.xlu1 %2492 }
 0x7c1   : > { %6744 = vrcp.f32 %v2493_v56 }
 0x7c4   : > { %v2512_v60 = vpop.permute.xlu1 %2511 }
 0x7c5   : > { %6132 = vmatpush3.bf16.msra.mxu0 %v2512_v60 }
 0x7c6   : > { %6137 = vmatprep.subr.bf16.mxu0 %v6987_v36 }
 0x7c8   : > { %v2659_v20 = vpop.permute.xlu1 %2658 }
 0x7c9   : > { %v2679_v37 = vsel %vm2243_vm3, %v2659_v20, 0  ;;  %v2231_v20 = vld [vmem:[%s7095_s17 + $0x8] sm:$0xf] }
 0x7cb   : > { %v6745_v61 = vpop.eup %6744 }
 0x7cc   : > { %v2495_v3 = vmul.f32 %v6745_v61, %v6743_v39  ;;  %v2663_v38 = vpop.permute.xlu1 %2662 }
 0x7cd   : > { %v2685_v22 = vsel %vm2243_vm3, %v2663_v38, 0  ;;  %v2821_v38 = vsel %vm2312_vm4, %v2231_v20, 0 }
 0x7ce   : > { %v2496_v4 = vpack.c.bf16 %v2495_v3, %v2495_v3 }
 0x7d0   : > { %6134 = vmatmul.mubr.bf16.vlgmr.msra.gmra.mrb[24].mxu0 %v2496_v4  ;;  %v2667_v23 = vpop.permute.xlu1 %2666 }
 0x7d1   : > { %6138 = vmatpush3.bf16.msra.mxu0 %v2566_v5  ;;  %6139 = vmatprep.mubr.msk.bf16.mxu0 %vm6988_vm1, %v6987_v36  ;;  %v2691_v24 = vsel %vm2243_vm3, %v2667_v23, 0  ;;  %v2763_v5 = vpop.permute.xlu0 %2762 }
 0x7d2   : > { %6143 = vmatprep.subr.bf16.mxu0 %v6987_v36 }
 0x7d4   : > { %v2671_v58 = vpop.permute.xlu1 %2670 }
 0x7d5   : > { %v2697_v28 = vsel %vm2243_vm3, %v2671_v58, 0 }
 0x8a3   : > { %v2555_v7 = vpop.f32.mrb[24].mxu0 }
 0x8a4   : > { %v2561_v8 = vpack.c.bf16 %v2555_v7, %v2555_v7  ;;  %v6135_v9 = vpop.f32.mrb[25].mxu0 }
 0x8a5   : > { %v2558_v11 = vpop.f32.mrb[26].mxu0 }
 0x8a6   : > { %v6136_v12 = vpop.f32.mrb[27].mxu0  ;;  %6140 = vmatmul.mubr.msk.bf16.vlgmr.msra.gmra.mrb[28].mxu0 %vm2243_vm3, %v2561_v8 }
 0x8a7   : > { %6144 = vmatpush3.bf16.msra.mxu0 %v2612_v10  ;;  %6145 = vmatprep.mubr.msk.bf16.mxu0 %vm6988_vm1, %v6987_v36 }
 0x8a8   : > { %6149 = vmatprep.subr.bf16.mxu0 %v6987_v36 }
 0x8ae   : > { %6146 = vmatmul.mubr.msk.bf16.vlgmr.msra.gmra.mrb[32].mxu0 %vm2243_vm3, %v2397_v15 }
 0x8af   : > { %6165 = vmatprep.mubr.msk.bf16.mxu0 %vm6988_vm1, %v6987_v36 }
 0x8b0   : > { %6150 = vmatpush3.bf16.xpose.msra.mxu0 %v2676_v19 }
 0x8b1   : > { %6151 = vmatprep.subr.bf16.mxu0 %v6987_v36 }
 0x8b8   : > { %6152 = vmatpush3.bf16.xpose.msra.mxu0 %v2679_v37 }
 0x8b9   : > { %6153 = vmatprep.subr.bf16.mxu0 %v6987_v36 }
 0x8c0   : > { %6154 = vmatpush3.bf16.xpose.msra.mxu0 %v2682_v18 }
 0x8c1   : > { %6155 = vmatprep.subr.bf16.mxu0 %v6987_v36 }
 0x8c8   : > { %6156 = vmatpush3.bf16.xpose.msra.mxu0 %v2685_v22 }
 0x8c9   : > { %6157 = vmatprep.subr.bf16.mxu0 %v6987_v36 }
 0x8d0   : > { %6158 = vmatpush3.bf16.xpose.msra.mxu0 %v2688_v2 }
 0x8d1   : > { %6159 = vmatprep.subr.bf16.mxu0 %v6987_v36 }
 0x8d8   : > { %6160 = vmatpush3.bf16.xpose.msra.mxu0 %v2691_v24 }
 0x8d9   : > { %6161 = vmatprep.subr.bf16.mxu0 %v6987_v36 }
 0x8e0   : > { %6162 = vmatpush3.bf16.xpose.msra.mxu0 %v2694_v27 }
 0x8e1   : > { %6163 = vmatprep.subr.bf16.mxu0 %v6987_v36 }
 0x8e8   : > { %6164 = vmatpush3.bf16.xpose.msra.mxu0 %v2697_v28 }
 0x8e9   : > { %6215 = vmatprep.subr.bf16.mxu0 %v6987_v36 }
 0x8ef   : > { %6166 = vmatmul.mubr.msk.bf16.vlgmr.msra.gmra.mrb[36].mxu0 %vm2243_vm3, %v7685_v53 }
 0x8f0   : > { %6231 = vmatprep.mubr.msk.bf16.mxu0 %vm6988_vm1, %v6987_v36 }
 0x979   : > { %v2602_v29 = vpop.f32.mrb[28].mxu0 }
 0x97a   : > { %v6141_v31 = vpop.f32.mrb[29].mxu0 }
 0x97b   : > { %v2605_v32 = vpop.f32.mrb[30].mxu0 }
 0x97c   : > { %v6142_v33 = vpop.f32.mrb[31].mxu0 }
 0x981   : > { %v2648_v34 = vpop.f32.mrb[32].mxu0 }
 0x982   : > { %v7733_v35 = vadd.f32 %v2648_v34, %v2602_v29  ;;  %v6147_v39 = vpop.f32.mrb[33].mxu0 }
 0x983   : > { %v2651_v46 = vpop.f32.mrb[34].mxu0 }
 0x984   : > { %v6148_v47 = vpop.f32.mrb[35].mxu0 }
 0x9c2   : > { %v2733_v40 = vpop.f32.mrb[36].mxu0 }
 0x9c3   : > { %v2739_v49 = vmul.f32 0.35355338, %v2733_v40  ;;  %v6167_v50 = vpop.f32.mrb[37].mxu0 }
 0x9c4   : > { %v2736_v51 = vpop.f32.mrb[38].mxu0 }
 0x9c5   : > { %v6168_v52 = vpop.f32.mrb[39].mxu0  ;;  %v2740_v53 = vsel %vm2312_vm4, %v2739_v49, -inf }
 0x9c6   : > { %2741 = vmax.xlane.f32.xlu1 %v2740_v53 }
 0x9d7   : > { %2754 = vrot.lane.b32.xlu1 %v7515_v25, %s8489_s16 }
 0x9db   : > { %2758 = vrot.lane.b32.xlu1 %v7533_v42, %s8489_s16 }
 0x9df   : > { %2760 = vrot.lane.b32.xlu1 %v7551_v59, %s8489_s16 }
 0x9e3   : > { %2764 = vrot.lane.b32.xlu1 %v7567_v14, %s8489_s16 }
 0x9e7   : > { %2866 = vrot.lane.b32.xlu1 %v7517_v41, %s8487_s15 }
 0x9eb   : > { %2870 = vrot.lane.b32.xlu1 %v7535_v43, %s8487_s15 }
 0x9ef   : > { %2874 = vrot.lane.b32.xlu1 %v7551_v59, %s8487_s15 }
 0x9f3   : > { %2878 = vrot.lane.b32.xlu1 %v7567_v14, %s8487_s15 }
 0x9f7   : > { %2864 = vrot.lane.b32.xlu1 %v7578_v21, %s8487_s15 }
 0x9fb   : > { %2962 = vrot.lane.b32.xlu1 %v7517_v41, %s8491_s18 }
 0x9ff   : > { %2966 = vrot.lane.b32.xlu1 %v7535_v43, %s8491_s18 }
 0xa03   : > { %2972 = vrot.lane.b32.xlu1 %v7549_v57, %s8491_s18 }
 0xa53   : > { %v2742_v48 = vpop.xlane.xlu1 %2741 }
 0xa54   : > { %v2743_v56 = vsub.f32 %v2739_v49, %v2742_v48 }
 0xa56   : > { %v2744_v60 = vmul.f32 1.442695, %v2743_v56 }
 0xa57   : > { %v2755_v61 = vpop.permute.xlu1 %2754 }
 0xa58   : > { %6746 = vpow2.f32 %v2744_v60  ;;  %6172 = vmatpush3.bf16.msra.mxu1 %v2755_v61 }
 0xa59   : > { %6173 = vmatprep.subr.bf16.mxu1 %v6987_v36 }
 0xa5b   : > { %v2759_v21 = vpop.permute.xlu1 %2758 }
 0xa5c   : > { %6174 = vmatpush3.bf16.msra.mxu1 %v2757_v63 }
 0xa5d   : > { %6175 = vmatprep.subr.bf16.mxu1 %v6987_v36 }
 0xa5f   : > { %v2761_v41 = vpop.permute.xlu1 %2760 }
 0xa60   : > { %6176 = vmatpush3.bf16.msra.mxu1 %v2759_v21 }
 0xa61   : > { %6177 = vmatprep.subr.bf16.mxu1 %v6987_v36 }
 0xa62   : > { %v6747_v43 = vpop.eup %6746 }
 0xa63   : > { %v2765_v3 = vpop.permute.xlu1 %2764  ;;  %v2746_v4 = vsel %vm2312_vm4, %v6747_v43, 0.0 }
 0xa64   : > { %2747 = vadd.xlane.f32.xlu0 %v2746_v4  ;;  %6178 = vmatpush3.bf16.msra.mxu1 %v2761_v41 }
 0xa65   : > { %6179 = vmatprep.subr.bf16.mxu1 %v6987_v36 }
 0xa67   : > { %v2867_v6 = vpop.permute.xlu1 %2866 }
 0xa68   : > { %6180 = vmatpush3.bf16.msra.mxu1 %v2763_v5  ;;  %v2886_v24 = vsel %vm2243_vm3, %v2867_v6, 0 }
 0xa69   : > { %6181 = vmatprep.subr.bf16.mxu1 %v6987_v36 }
 0xa6b   : > { %v2871_v7 = vpop.permute.xlu1 %2870 }
 0xa6c   : > { %6182 = vmatpush3.bf16.msra.mxu1 %v2765_v3  ;;  %v2892_v29 = vsel %vm2243_vm3, %v2871_v7, 0 }
 0xa6d   : > { %6183 = vmatprep.subr.bf16.mxu1 %v6987_v36 }
 0xa6f   : > { %v2875_v8 = vpop.permute.xlu1 %2874 }
 0xa70   : > { %v2898_v33 = vsel %vm2243_vm3, %v2875_v8, 0 }
 0xa73   : > { %v2879_v9 = vpop.permute.xlu1 %2878 }
 0xa74   : > { %v2904_v46 = vsel %vm2243_vm3, %v2879_v9, 0 }
 0xa77   : > { %v2865_v10 = vpop.permute.xlu1 %2864 }
 0xa7a   : > { %2766 = vrot.lane.b32.xlu0 %v7565_v13, %s8489_s16  ;;  %s8557_s16 = sld [smem:[#allocation17_spill]] }
 0xa7b   : > { %v2963_v11 = vpop.permute.xlu1 %2962 }
 0xa7c   : > { %6216 = vmatpush3.bf16.msra.mxu0 %v2963_v11 }
 0xa7d   : > { %6217 = vmatprep.subr.bf16.mxu0 %v6987_v36 }
 0xa7e   : > { %2868 = vrot.lane.b32.xlu0 %v7515_v25, %s8487_s15 }
 0xa82   : > { %2872 = vrot.lane.b32.xlu0 %v7533_v42, %s8487_s15 }
 0xa86   : > { %2876 = vrot.lane.b32.xlu0 %v7549_v57, %s8487_s15 }
 0xa8a   : > { %2880 = vrot.lane.b32.xlu0 %v7565_v13, %s8487_s15  ;;  %s8556_s15 = sld [smem:[#allocation16_spill]] }
 0xaf1   : > { %v2748_v12 = vpop.xlane.xlu0 %2747 }
 0xaf2   : > { %6748 = vrcp.f32 %v2748_v12 }
 0xaf5   : > { %v2767_v15 = vpop.permute.xlu0 %2766 }
 0xaf6   : > { %6184 = vmatpush3.bf16.msra.mxu1 %v2767_v15 }
 0xaf7   : > { %6189 = vmatprep.subr.bf16.mxu1 %v6987_v36 }
 0xaf9   : > { %v2869_v58 = vpop.permute.xlu0 %2868 }
 0xafa   : > { %v2889_v28 = vsel %vm2243_vm3, %v2869_v58, 0 }
 0xafc   : > { %v6749_v19 = vpop.eup %6748 }
 0xafd   : > { %v2750_v37 = vmul.f32 %v6749_v19, %v6747_v43  ;;  %v2873_v31 = vpop.permute.xlu0 %2872 }
 0xafe   : > { %v2895_v32 = vsel %vm2243_vm3, %v2873_v31, 0 }
 0xaff   : > { %v2751_v18 = vpack.c.bf16 %v2750_v37, %v2750_v37 }
 0xb01   : > { %6186 = vmatmul.mubr.bf16.vlgmr.msra.gmra.mrb[28].mxu1 %v2751_v18  ;;  %v2877_v34 = vpop.permute.xlu0 %2876  ;;  %v2232_v18 = vld [vmem:[%s7095_s17 + $0xc] sm:$0xf] }
 0xb02   : > { %6190 = vmatpush3.bf16.msra.mxu1 %v2821_v38  ;;  %6191 = vmatprep.mubr.msk.bf16.mxu1 %vm6988_vm1, %v6987_v36  ;;  %v2901_v39 = vsel %vm2243_vm3, %v2877_v34, 0 }
 0xb03   : > { %6195 = vmatprep.subr.bf16.mxu1 %v6987_v36 }
 0xb05   : > { %v2881_v47 = vpop.permute.xlu0 %2880 }
 0xb06   : > { %v2907_v40 = vsel %vm2243_vm3, %v2881_v47, 0 }
 0xbd4   : > { %v2810_v57 = vpop.f32.mrb[28].mxu1 }
 0xbd5   : > { %v2816_v22 = vpack.c.bf16 %v2810_v57, %v2810_v57  ;;  %v6187_v2 = vpop.f32.mrb[29].mxu1 }
 0xbd6   : > { %v2813_v23 = vpop.f32.mrb[30].mxu1 }
 0xbd7   : > { %v6188_v27 = vpop.f32.mrb[31].mxu1  ;;  %6192 = vmatmul.mubr.msk.bf16.vlgmr.msra.gmra.mrb[32].mxu1 %vm2243_vm3, %v2816_v22 }
 0xbd8   : > { %6196 = vmatpush3.bf16.xpose.msra.mxu1 %v2886_v24  ;;  %6211 = vmatprep.mubr.msk.bf16.mxu1 %vm6988_vm1, %v6987_v36  ;;  %v5653_v27 = vld [vmem:[%s8556_s15] ss:$0 sm:$0xff]  ;;  %s8561_s15 = sld [smem:[#allocation24_spill]] }
 0xbd9   : > { %6197 = vmatprep.subr.bf16.mxu1 %v6987_v36 }
 0xbe0   : > { %6198 = vmatpush3.bf16.xpose.msra.mxu1 %v2889_v28  ;;  %v5654_v28 = vld [vmem:[%s8557_s16] ss:$0 sm:$0xff]  ;;  %s8562_s16 = sld [smem:[#allocation23_spill]] }
 0xbe1   : > { %6199 = vmatprep.subr.bf16.mxu1 %v6987_v36 }
 0xbe8   : > { %6200 = vmatpush3.bf16.xpose.msra.mxu1 %v2892_v29 }
 0xbe9   : > { %6201 = vmatprep.subr.bf16.mxu1 %v6987_v36 }
 0xbf0   : > { %6202 = vmatpush3.bf16.xpose.msra.mxu1 %v2895_v32 }
 0xbf1   : > { %6203 = vmatprep.subr.bf16.mxu1 %v6987_v36 }
 0xbf8   : > { %6204 = vmatpush3.bf16.xpose.msra.mxu1 %v2898_v33 }
 0xbf9   : > { %6205 = vmatprep.subr.bf16.mxu1 %v6987_v36 }
 0xc00   : > { %6206 = vmatpush3.bf16.xpose.msra.mxu1 %v2901_v39 }
 0xc01   : > { %6207 = vmatprep.subr.bf16.mxu1 %v6987_v36 }
 0xc08   : > { %6208 = vmatpush3.bf16.xpose.msra.mxu1 %v2904_v46 }
 0xc09   : > { %6209 = vmatprep.subr.bf16.mxu1 %v6987_v36 }
 0xc10   : > { %6210 = vmatpush3.bf16.xpose.msra.mxu1 %v2907_v40 }
 0xc11   : > { %6257 = vmatprep.subr.bf16.mxu1 %v6987_v36 }
 0xc17   : > { %6212 = vmatmul.mubr.msk.bf16.vlgmr.msra.gmra.mrb[36].mxu1 %vm2243_vm3, %v2865_v10 }
 0xc18   : > { %6259 = vmatprep.mubr.msk.bf16.mxu1 %vm6988_vm1, %v6987_v36 }
 0xcaa   : > { %v2857_v49 = vpop.f32.mrb[32].mxu1 }
 0xcab   : > { %v7807_v50 = vadd.f32 %v2857_v49, %v7733_v35  ;;  %v6193_v51 = vpop.f32.mrb[33].mxu1  ;;  %v5647_v35 = vld [vmem:[%s8555_s14] ss:$0 sm:$0xff]  ;;  %s8573_s14 = sld [smem:[#allocation30_spill]] }
 0xcac   : > { %v2860_v52 = vpop.f32.mrb[34].mxu1  ;;  %v1974_v41 = vadd.f32 %v5647_v35, %v7559_v62  ;;  %v5678_v49 = vld [vmem:[%s8559_s10] ss:$0 sm:$0xff]  ;;  %s8563_s10 = sld [smem:[#allocation25_spill]] }
 0xcad   : > { %v6194_v53 = vpop.f32.mrb[35].mxu1 }
 0xcae   : > { %v1981_v43 = vsel %vm1772_vm0, %v1974_v41, 0.0 }
 0xcea   : > { %v2943_v48 = vpop.f32.mrb[36].mxu1 }
 0xceb   : > { %v2949_v56 = vmul.f32 0.35355338, %v2943_v48  ;;  %v6213_v60 = vpop.f32.mrb[37].mxu1 }
 0xcec   : > { %v2946_v61 = vpop.f32.mrb[38].mxu1 }
 0xced   : > { %v6214_v63 = vpop.f32.mrb[39].mxu1  ;;  %v2950_v21 = vsel %vm2312_vm4, %v2949_v56, -inf }
 0xcee   : > { %2951 = vmax.xlane.f32.xlu0 %v2950_v21  ;;  %v7853_v63 = vld [vmem:[%s8560_s26] sm:$0xff]  ;;  %v7856_v21 = vld [vmem:[%s8560_s26 + $0x8] sm:$0xf] }
 0xd04   : > { %2964 = vrot.lane.b32.xlu0 %v7515_v25, %s8491_s18  ;;  %v2967_v25 = vpop.permute.xlu1 %2966 }
 0xd08   : > { %2968 = vrot.lane.b32.xlu0 %v7533_v42, %s8491_s18  ;;  %v2973_v7 = vpop.permute.xlu1 %2972 }
 0xd0c   : > { %2970 = vrot.lane.b32.xlu0 %v7551_v59, %s8491_s18 }
 0xd10   : > { %2974 = vrot.lane.b32.xlu0 %v7567_v14, %s8491_s18 }
 0xd2f   : > { %1982 = vadd.xlane.f32.xlu0 %v1981_v43  ;;  %v6726_v43 = vld [vmem:[%s8561_s15] sm:$0xff]  }
 0xd7b   : > { %v2952_v3 = vpop.xlane.xlu0 %2951 }
 0xd7c   : > { %v2953_v4 = vsub.f32 %v2949_v56, %v2952_v3 }
 0xd7e   : > { %v2954_v5 = vmul.f32 1.442695, %v2953_v4  ;;  %v6727_v4 = vld [vmem:[%s8561_s15 + $0x8] sm:$0xff]   ;;  %s8578_s15 = sld [smem:[#allocation39_spill]] }
 0xd7f   : > { %v2965_v6 = vpop.permute.xlu0 %2964 }
 0xd80   : > { %6750 = vpow2.f32 %v2954_v5  ;;  %6218 = vmatpush3.bf16.msra.mxu0 %v2965_v6  ;;  %v5679_v6 = vld [vmem:[%s8562_s16] ss:$0 sm:$0xff]  ;;  %s8566_s16 = smov 120  }
 0xd81   : > { %6219 = vmatprep.subr.bf16.mxu0 %v6987_v36 }
 0xd83   : > { %v2969_v42 = vpop.permute.xlu0 %2968 }
 0xd84   : > { %6220 = vmatpush3.bf16.msra.mxu0 %v2967_v25 }
 0xd85   : > { %6221 = vmatprep.subr.bf16.mxu0 %v6987_v36 }
 0xd87   : > { %v2971_v62 = vpop.permute.xlu0 %2970 }
 0xd88   : > { %6222 = vmatpush3.bf16.msra.mxu0 %v2969_v42 }
 0xd89   : > { %6223 = vmatprep.subr.bf16.mxu0 %v6987_v36 }
 0xd8a   : > { %v6751_v59 = vpop.eup %6750 }
 0xd8b   : > { %v2956_v14 = vsel %vm2312_vm4, %v6751_v59, 0.0  ;;  %v2975_v8 = vpop.permute.xlu0 %2974 }
 0xd8c   : > { %2957 = vadd.xlane.f32.xlu1 %v2956_v14  ;;  %6224 = vmatpush3.bf16.msra.mxu0 %v2971_v62 }
 0xd8d   : > { %6225 = vmatprep.subr.bf16.mxu0 %v6987_v36 }
 0xd90   : > { %6226 = vmatpush3.bf16.msra.mxu0 %v2973_v7 }
 0xd91   : > { %6227 = vmatprep.subr.bf16.mxu0 %v6987_v36 }
 0xd94   : > { %6228 = vmatpush3.bf16.msra.mxu0 %v2975_v8 }
 0xd95   : > { %6229 = vmatprep.subr.bf16.mxu0 %v6987_v36 }
 0xd9d   : > { %2976 = vrot.lane.b32.xlu1 %v7565_v13, %s8491_s18  ;;  %v3031_v13 = vsel %vm2312_vm4, %v2232_v18, 0  ;;  %s8558_s18 = sld [smem:[#allocation22_spill]] }
 0xda3   : > { %v6724_v47 = vld [vmem:[%s8558_s18] sm:$0xff]   ;;  %v6725_v40 = vld [vmem:[%s8558_s18 + $0x8] sm:$0xff]  }
 0xdbc   : > { %v1983_v9 = vpop.xlane.xlu0 %1982 }
 0xdbd   : > { %v1985_v10 = vmul.f32 0.03125, %v1983_v9  ;;  %v5683_v9 = vld [vmem:[%s8563_s10] ss:$0 sm:$0xff]  ;;  %s7904_s10 = scalar_lea.vmem %s8567_s5, %s7306_s2  ;;  %s8568_s5 = smov 80  }
 0xdbf   : > { %v1986_v11 = vsub.f32 %v1974_v41, %v1985_v10 }
 0xdc1   : > { %v1987_v12 = vmul.f32 %v1986_v11, %v1986_v11 }
 0xdc3   : > { %v1988_v15 = vsel %vm1772_vm0, %v1987_v12, 0.0 }
 0xdc4   : > { %1989 = vadd.xlane.f32.xlu1 %v1988_v15 }
 0xe19   : > { %v2958_v19 = vpop.xlane.xlu1 %2957 }
 0xe1a   : > { %6752 = vrcp.f32 %v2958_v19 }
 0xe1d   : > { %v2977_v20 = vpop.permute.xlu1 %2976 }
 0xe1e   : > { %6230 = vmatpush3.bf16.msra.mxu0 %v2977_v20 }
 0xe1f   : > { %6235 = vmatprep.subr.bf16.mxu0 %v6987_v36 }
 0xe24   : > { %v6753_v37 = vpop.eup %6752 }
 0xe25   : > { %v2960_v38 = vmul.f32 %v6753_v37, %v6751_v59 }
 0xe27   : > { %v2961_v57 = vpack.c.bf16 %v2960_v38, %v2960_v38 }
 0xe29   : > { %6232 = vmatmul.mubr.bf16.vlgmr.msra.gmra.mrb[40].mxu0 %v2961_v57 }
 0xe2a   : > { %6236 = vmatpush3.bf16.msra.mxu0 %v3031_v13  ;;  %6237 = vmatprep.mubr.msk.bf16.mxu0 %vm6988_vm1, %v6987_v36 }
 0xe2b   : > { %6241 = vmatprep.subr.bf16.mxu0 %v6987_v36 }
 0xe51   : > { %v1990_v22 = vpop.xlane.xlu1 %1989 }
 0xe52   : > { %v1991_v2 = vmul.f32 0.03125, %v1990_v22 }
 0xe54   : > { %v1992_v23 = vadd.f32 1e-12, %v1991_v2 }
 0xe56   : > { %6754 = vrsqrt.f32 %v1992_v23  ;;  %v3088_v23 = vld [vmem:[%s7904_s10] sm:$0x1] }
 0xe60   : > { %v6755_v24 = vpop.eup %6754 }
 0xe61   : > { %v1994_v58 = vmul.f32 %v6755_v24, %v1986_v11  ;;  %v3089_v24 = vsub.f32 1.0, %v3088_v23 }
 0xe63   : > { %v2001_v29 = vmul.f32 %v5653_v27, %v1994_v58  ;;  %v3090_v27 = vmul.f32 -1e+09, %v3089_v24 }
 0xe65   : > { %v2008_v31 = vadd.f32 %v5654_v28, %v2001_v29  ;;  %v7909_v58 = vrot.slane %v3090_v27, %v1484_v30 }
 0xe67   : > { %3083 = vst.msk [vmem:[#allocation2 + $0x4] sm:$0xff] %vm1772_vm0, %v2008_v31 }
 0xe6e   : > { %v7850_v61 = vld [vmem:[#allocation2 + $0x8] sm:$0xf] }
 0xe6f   : > { %v3092_v41 = vadd.f32 %v7856_v21, %v7850_v61 }
 0xefc   : > { %v3020_v32 = vpop.f32.mrb[40].mxu0 }
 0xefd   : > { %v3026_v33 = vpack.c.bf16 %v3020_v32, %v3020_v32  ;;  %v6233_v34 = vpop.f32.mrb[41].mxu0 }
 0xefe   : > { %v3023_v39 = vpop.f32.mrb[42].mxu0 }
 0xeff   : > { %v6234_v46 = vpop.f32.mrb[43].mxu0  ;;  %6238 = vmatmul.mubr.msk.bf16.vlgmr.msra.gmra.mrb[44].mxu0 %vm2243_vm3, %v3026_v33 }
 0xf00   : > { %6245 = vmatprep.mubr.msk.bf16.mxu0 %vm6988_vm1, %v6987_v36  ;;  %6242 = vmatpush3.bf16.msra.mxu0 %v6724_v47 }
 0xf01   : > { %6243 = vmatprep.subr.bf16.mxu0 %v6987_v36 }
 0xf04   : > { %6244 = vmatpush3.bf16.msra.mxu0 %v6725_v40 }
 0xf05   : > { %6249 = vmatprep.subr.bf16.mxu0 %v6987_v36 }
 0xfd2   : > { %v3067_v51 = vpop.f32.mrb[44].mxu0 }
 0xfd3   : > { %v3073_v52 = vadd.f32 %v3067_v51, %v7807_v50  ;;  %v6239_v53 = vpop.f32.mrb[45].mxu0 }
 0xfd4   : > { %v3070_v48 = vpop.f32.mrb[46].mxu0 }
 0xfd5   : > { %v3080_v56 = vadd.f32 %v5678_v49, %v3073_v52  ;;  %v6240_v60 = vpop.f32.mrb[47].mxu0 }
 0xfd7   : > { %3082 = vst.msk [vmem:[#allocation2] sm:$0xf] %vm3081_vm5, %v3080_v56 }
 0xfde   : > { %v7858_v35 = vld [vmem:[#allocation2] sm:$0xff] }
 0xfdf   : > { %v3091_v50 = vadd.f32 %v7853_v63, %v7858_v35  ;;  %v3161_v5 = vpack.c.bf16 %v7850_v61, %v7858_v35 }
 0xfe1   : > { %v3093_v3 = vpack.c.bf16 %v3092_v41, %v3091_v50 }
 0xfe3   : > { %6246 = vmatmul.mubr.msk.bf16.vlgmr.msra.gmra.mrb[48].mxu0 %vm1772_vm0, %v3093_v3 }
 0xfe4   : > { %6250 = vmatpush3.bf16.msra.mxu0 %v6726_v43  ;;  %6253 = vmatprep.mubr.msk.bf16.mxu0 %vm6988_vm1, %v6987_v36 }
 0xfe5   : > { %6251 = vmatprep.subr.bf16.mxu0 %v6987_v36 }
 0xfe8   : > { %6252 = vmatpush3.bf16.msra.mxu0 %v6727_v4 }
 0xfe9   : > { %6263 = vmatprep.subr.bf16.mxu0 %v6987_v36 }
 0xfeb   : > { %6254 = vmatmul.mubr.msk.bf16.vlgmr.msra.gmra.mrb[52].mxu0 %vm1772_vm0, %v3161_v5 }
 0xfec   : > { %6265 = vmatprep.mubr.msk.bf16.mxu0 %vm6988_vm1, %v6987_v36 }
0x10b6   : > { %v3154_v25 = vpop.f32.mrb[48].mxu0 }
0x10b7   : > { %v6247_v42 = vpop.f32.mrb[49].mxu0  ;;  %v3155_v62 = vadd.f32 %v5679_v6, %v3154_v25 }
0x10b8   : > { %v3157_v59 = vpop.f32.mrb[50].mxu0 }
0x10b9   : > { %v3158_v14 = vadd.f32 %v5679_v6, %v3157_v59  ;;  %v6248_v7 = vpop.f32.mrb[51].mxu0 }
0x10bb   : > { %v7877_v8 = vpack.c.bf16 %v3158_v14, %v3155_v62 }
0x10bd   : > { %3372 = vrot.lane.b32.xlu1 %v7877_v8, %s8564_s3  ;;  %3236 = vrot.lane.b32.xlu0 %v7877_v8, %s8565_s4 }
0x10be   : > { %v3222_v10 = vpop.f32.mrb[52].mxu0 }
0x10bf   : > { %v6255_v11 = vpop.f32.mrb[53].mxu0  ;;  %v3223_v15 = vadd.f32 %v5683_v9, %v3222_v10 }
0x10c0   : > { %v3225_v12 = vpop.f32.mrb[54].mxu0 }
0x10c1   : > { %v3226_v19 = vadd.f32 %v5683_v9, %v3225_v12  ;;  %3370 = vrot.lane.b32.xlu0 %v7877_v8, %s8566_s16  ;;  %v6256_v20 = vpop.f32.mrb[55].mxu0 }
0x10c3   : > { %v7886_v37 = vpack.c.bf16 %v3226_v19, %v3223_v15 }
0x10c5   : > { %v3326_v18 = vsel %vm3324_vm6, %v7886_v37, 0 }
0x10c6   : > { %6264 = vmatpush3.bf16.msra.mxu0 %v3326_v18 }
0x10c7   : > { %6275 = vmatprep.subr.bf16.mxu0 %v6987_v36 }
0x112f   : > { %v3237_v38 = vpop.permute.xlu0 %3236  ;;  %v3373_v13 = vpop.permute.xlu1 %3372 }
0x1130   : > { %v3242_v57 = vsel %vm2243_vm3, %v3237_v38, 0  ;;  %v3378_v22 = vsel %vm2243_vm3, %v3373_v13, 0 }
0x1131   : > { %6258 = vmatpush3.bf16.xpose.msra.mxu1 %v3242_v57 }
0x1132   : > { %6269 = vmatprep.subr.bf16.mxu1 %v6987_v36 }
0x1133   : > { %v3371_v2 = vpop.permute.xlu0 %3370 }
0x1138   : > { %6260 = vmatmul.mubr.msk.bf16.vlgmr.msra.gmra.mrb[40].mxu1 %vm2243_vm3, %v7877_v8 }
0x1139   : > { %6270 = vmatpush3.bf16.xpose.msra.mxu1 %v3378_v22  ;;  %6271 = vmatprep.mubr.msk.bf16.mxu1 %vm6988_vm1, %v6987_v36 }
0x113a   : > { %6281 = vmatprep.subr.bf16.mxu1 %v6987_v36 }
0x1140   : > { %6272 = vmatmul.mubr.msk.bf16.vlgmr.msra.gmra.mrb[44].mxu1 %vm2243_vm3, %v3371_v2 }
0x1141   : > { %6283 = vmatprep.mubr.msk.bf16.mxu1 %vm6988_vm1, %v6987_v36 }
0x120b   : > { %v3278_v28 = vpop.f32.mrb[40].mxu1 }
0x120c   : > { %v3285_v29 = vmul.f32 0.35355338, %v3278_v28  ;;  %v6261_v31 = vpop.f32.mrb[41].mxu1 }
0x120d   : > { %v3281_v32 = vpop.f32.mrb[42].mxu1 }
0x120e   : > { %v3293_v33 = vadd.f32 %v7909_v58, %v3285_v29  ;;  %v3286_v34 = vmul.f32 0.35355338, %v3281_v32  ;;  %v6262_v39 = vpop.f32.mrb[43].mxu1 }
0x1210   : > { %v3294_v46 = vadd.f32 %v7909_v58, %v3286_v34  ;;  %v3296_v47 = vsel %vm3295_vm7, %v3293_v33, -inf }
0x1211   : > { %3297 = vmax.xlane.f32.xlu1 %v3296_v47  ;;  %v3229_v47 = vld [vmem:[%s8570_s9] sm:$0xf] }
0x1212   : > { %v3300_v40 = vsel %vm3299_vm8, %v3294_v46, -inf }
0x1213   : > { %3301 = vmax.xlane.f32.xlu0 %v3300_v40  ;;  %v3414_v26 = vpop.f32.mrb[44].mxu1  ;;  %v3550_v40 = vsel %vm2312_vm4, %v3229_v47, 0 }
0x1214   : > { %v3421_v30 = vmul.f32 0.35355338, %v3414_v26  ;;  %v6273_v49 = vpop.f32.mrb[45].mxu1  ;;  %v3230_v26 = vld [vmem:[%s8570_s9 + $0x4] sm:$0xf] }
0x1215   : > { %v3417_v51 = vpop.f32.mrb[46].mxu1 }
0x1216   : > { %v3423_v52 = vadd.f32 %v3421_v30, %v7909_v58  ;;  %v3422_v53 = vmul.f32 0.35355338, %v3417_v51  ;;  %v6274_v48 = vpop.f32.mrb[47].mxu1  ;;  %v3503_v30 = vsel %vm2312_vm4, %v3230_v26, 0 }
0x1217   : > { %6282 = vmatpush3.bf16.msra.mxu1 %v3503_v30 }
0x1218   : > { %v3424_v56 = vadd.f32 %v3422_v53, %v7909_v58  ;;  %v3425_v60 = vsel %vm3295_vm7, %v3423_v52, -inf  ;;  %6293 = vmatprep.subr.bf16.mxu1 %v6987_v36 }
0x1219   : > { %3426 = vmax.xlane.f32.xlu0 %v3425_v60 }
0x121a   : > { %v3428_v50 = vsel %vm3299_vm8, %v3424_v56, -inf }
0x121b   : > { %3429 = vmax.xlane.f32.xlu1 %v3428_v50 }
0x129e   : > { %v3298_v41 = vpop.xlane.xlu1 %3297 }
0x129f   : > { %v3303_v43 = vsub.f32 %v3293_v33, %v3298_v41 }
0x12a0   : > { %v3302_v3 = vpop.xlane.xlu0 %3301 }
0x12a1   : > { %v3305_v4 = vmul.f32 1.442695, %v3303_v43  ;;  %v3304_v5 = vsub.f32 %v3294_v46, %v3302_v3 }
0x12a3   : > { %6756 = vpow2.f32 %v3305_v4  ;;  %v3307_v6 = vmul.f32 1.442695, %v3304_v5 }
0x12a5   : > { %6758 = vpow2.f32 %v3307_v6 }
0x12a6   : > { %v3427_v25 = vpop.xlane.xlu0 %3426 }
0x12a7   : > { %v3431_v42 = vsub.f32 %v3423_v52, %v3427_v25 }
0x12a8   : > { %v3430_v59 = vpop.xlane.xlu1 %3429 }
0x12a9   : > { %v3433_v62 = vmul.f32 1.442695, %v3431_v42  ;;  %v3432_v14 = vsub.f32 %v3424_v56, %v3430_v59 }
0x12ab   : > { %6760 = vpow2.f32 %v3433_v62  ;;  %v3435_v7 = vmul.f32 1.442695, %v3432_v14 }
0x12ad   : > { %v6757_v9 = vpop.eup %6756  ;;  %6762 = vpow2.f32 %v3435_v7 }
0x12ae   : > { %v3309_v10 = vsel %vm3295_vm7, %v6757_v9, 0.0 }
0x12af   : > { %v6759_v11 = vpop.eup %6758  ;;  %3310 = vadd.xlane.f32.xlu0 %v3309_v10 }
0x12b0   : > { %v3312_v12 = vsel %vm3299_vm8, %v6759_v11, 0.0 }
0x12b1   : > { %3313 = vadd.xlane.f32.xlu1 %v3312_v12 }
0x12b5   : > { %v6761_v15 = vpop.eup %6760 }
0x12b6   : > { %v3437_v19 = vsel %vm3295_vm7, %v6761_v15, 0.0 }
0x12b7   : > { %v6763_v20 = vpop.eup %6762  ;;  %3438 = vadd.xlane.f32.xlu0 %v3437_v19 }
0x12b8   : > { %v3440_v18 = vsel %vm3299_vm8, %v6763_v20, 0.0 }
0x12b9   : > { %3441 = vadd.xlane.f32.xlu1 %v3440_v18 }
0x12ca   : > { %3595 = vrot.lane.b32.xlu1 %v7877_v8, %s8568_s5 }
0x12cd   : > { %3449 = vrot.lane.b32.xlu0 %v7886_v37, %s8566_s16 }
0x12ce   : > { %3593 = vrot.lane.b32.xlu1 %v7877_v8, %s8569_s8 }
0x133c   : > { %v3311_v38 = vpop.xlane.xlu0 %3310 }
0x133d   : > { %6764 = vrcp.f32 %v3311_v38 }
0x133e   : > { %v3314_v57 = vpop.xlane.xlu1 %3313 }
0x133f   : > { %6766 = vrcp.f32 %v3314_v57 }
0x1344   : > { %v3439_v13 = vpop.xlane.xlu0 %3438 }
0x1345   : > { %6768 = vrcp.f32 %v3439_v13 }
0x1346   : > { %v3442_v22 = vpop.xlane.xlu1 %3441 }
0x1347   : > { %v6765_v2 = vpop.eup %6764  ;;  %6770 = vrcp.f32 %v3442_v22 }
0x1348   : > { %v3317_v24 = vmul.f32 %v6765_v2, %v6757_v9  ;;  %v3450_v28 = vpop.permute.xlu0 %3449 }
0x1349   : > { %v6767_v23 = vpop.eup %6766  ;;  %v3455_v31 = vsel %vm3324_vm6, %v3450_v28, 0 }
0x134a   : > { %v3318_v27 = vmul.f32 %v6767_v23, %v6759_v11  ;;  %v3596_v50 = vpop.permute.xlu1 %3595 }
0x134b   : > { %v3601_v4 = vsel %vm2243_vm3, %v3596_v50, 0 }
0x134c   : > { %v3319_v29 = vpack.c.bf16 %v3318_v27, %v3317_v24 }
0x134e   : > { %6266 = vmatmul.mubr.msk.bf16.vlgmr.msra.gmra.mrb[56].mxu0 %vm3295_vm7, %v3319_v29  ;;  %v3594_v5 = vpop.permute.xlu1 %3593 }
0x134f   : > { %v6769_v32 = vpop.eup %6768  ;;  %6276 = vmatpush3.bf16.msra.mxu0 %v3455_v31  ;;  %6277 = vmatprep.mubr.msk.bf16.mxu0 %vm6988_vm1, %v6987_v36 }
0x1350   : > { %6287 = vmatprep.subr.bf16.mxu0 %v6987_v36  ;;  %v3445_v34 = vmul.f32 %v6769_v32, %v6761_v15 }
0x1351   : > { %v6771_v33 = vpop.eup %6770 }
0x1352   : > { %v3446_v39 = vmul.f32 %v6771_v33, %v6763_v20 }
0x1354   : > { %v3447_v46 = vpack.c.bf16 %v3446_v39, %v3445_v34 }
0x1356   : > { %6278 = vmatmul.mubr.msk.bf16.vlgmr.msra.gmra.mrb[60].mxu0 %vm3295_vm7, %v3447_v46 }
0x1357   : > { %6289 = vmatprep.mubr.msk.bf16.mxu0 %vm6988_vm1, %v6987_v36  ;;  %6288 = vmatpush3.bf16.msra.mxu0 %v3550_v40 }
0x1358   : > { %6299 = vmatprep.subr.bf16.mxu0 %v6987_v36 }
0x1421   : > { %v3362_v49 = vpop.f32.mrb[56].mxu0 }
0x1422   : > { %v6267_v51 = vpop.f32.mrb[57].mxu0 }
0x1423   : > { %v3365_v52 = vpop.f32.mrb[58].mxu0 }
0x1424   : > { %v3369_v53 = vpack.c.bf16 %v3365_v52, %v3362_v49  ;;  %v6268_v48 = vpop.f32.mrb[59].mxu0 }
0x1426   : > { %6290 = vmatmul.mubr.msk.bf16.vlgmr.msra.gmra.mrb[64].mxu0 %vm2243_vm3, %v3369_v53 }
0x1427   : > { %6301 = vmatprep.mubr.msk.bf16.mxu0 %vm6988_vm1, %v6987_v36 }
0x1429   : > { %v3491_v56 = vpop.f32.mrb[60].mxu0 }
0x142a   : > { %v6279_v60 = vpop.f32.mrb[61].mxu0 }
0x142b   : > { %v3494_v41 = vpop.f32.mrb[62].mxu0  ;;  %v3231_v60 = vld [vmem:[%s8570_s9 + $0x8] sm:$0xf] }
0x142c   : > { %v3498_v43 = vpack.c.bf16 %v3494_v41, %v3491_v56  ;;  %v6280_v3 = vpop.f32.mrb[63].mxu0  ;;  %v3725_v50 = vsel %vm2312_vm4, %v3231_v60, 0 }
0x142e   : > { %6284 = vmatmul.mubr.msk.bf16.vlgmr.msra.gmra.mrb[48].mxu1 %vm2243_vm3, %v3498_v43 }
0x142f   : > { %6294 = vmatpush3.bf16.xpose.msra.mxu1 %v3601_v4  ;;  %6295 = vmatprep.mubr.msk.bf16.mxu1 %vm6988_vm1, %v6987_v36 }
0x1430   : > { %6305 = vmatprep.subr.bf16.mxu1 %v6987_v36 }
0x1436   : > { %6296 = vmatmul.mubr.msk.bf16.vlgmr.msra.gmra.mrb[52].mxu1 %vm2243_vm3, %v3594_v5 }
0x1437   : > { %6307 = vmatprep.mubr.msk.bf16.mxu1 %vm6988_vm1, %v6987_v36  ;;  %6306 = vmatpush3.bf16.msra.mxu1 %v3725_v50 }
0x1438   : > { %6317 = vmatprep.subr.bf16.mxu1 %v6987_v36 }
0x14f9   : > { %v3586_v6 = vpop.f32.mrb[64].mxu0 }
0x14fa   : > { %v6291_v25 = vpop.f32.mrb[65].mxu0 }
0x14fb   : > { %v3589_v42 = vpop.f32.mrb[66].mxu0 }
0x14fc   : > { %v6292_v59 = vpop.f32.mrb[67].mxu0 }
0x1501   : > { %v3539_v62 = vpop.f32.mrb[48].mxu1 }
0x1502   : > { %v7954_v14 = vadd.f32 %v3586_v6, %v3539_v62  ;;  %v6285_v7 = vpop.f32.mrb[49].mxu1 }
0x1503   : > { %v3542_v9 = vpop.f32.mrb[50].mxu1 }
0x1504   : > { %v7956_v10 = vadd.f32 %v3589_v42, %v3542_v9  ;;  %v6286_v11 = vpop.f32.mrb[51].mxu1 }
0x1509   : > { %v3637_v12 = vpop.f32.mrb[52].mxu1 }
0x150a   : > { %v3644_v15 = vmul.f32 0.35355338, %v3637_v12  ;;  %v6297_v19 = vpop.f32.mrb[53].mxu1 }
0x150b   : > { %v3640_v20 = vpop.f32.mrb[54].mxu1 }
0x150c   : > { %v3646_v18 = vadd.f32 %v3644_v15, %v7909_v58  ;;  %v3645_v38 = vmul.f32 0.35355338, %v3640_v20  ;;  %v6298_v57 = vpop.f32.mrb[55].mxu1 }
0x150e   : > { %v3647_v13 = vadd.f32 %v3645_v38, %v7909_v58  ;;  %v3648_v22 = vsel %vm3295_vm7, %v3646_v18, -inf }
0x150f   : > { %3649 = vmax.xlane.f32.xlu0 %v3648_v22 }
0x1510   : > { %v3651_v2 = vsel %vm3299_vm8, %v3647_v13, -inf }
0x1511   : > { %3652 = vmax.xlane.f32.xlu1 %v3651_v2 }
0x1522   : > { %3671 = vrot.lane.b32.xlu1 %v7886_v37, %s8569_s8 }
0x1526   : > { %3770 = vrot.lane.b32.xlu1 %v7877_v8, %s8571_s12 }
0x159c   : > { %v3650_v23 = vpop.xlane.xlu0 %3649 }
0x159d   : > { %v3654_v24 = vsub.f32 %v3646_v18, %v3650_v23 }
0x159e   : > { %v3653_v27 = vpop.xlane.xlu1 %3652 }
0x159f   : > { %v3656_v28 = vmul.f32 1.442695, %v3654_v24  ;;  %v3655_v29 = vsub.f32 %v3647_v13, %v3653_v27  ;;  %v3232_v24 = vld [vmem:[%s8570_s9 + $0xc] sm:$0xf]  ;;  %s8574_s9 = sld [smem:[#allocation27_spill]] }
0x15a0   : > { %v3902_v27 = vsel %vm2312_vm4, %v3232_v24, 0 }
0x15a1   : > { %6772 = vpow2.f32 %v3656_v28  ;;  %v3658_v31 = vmul.f32 1.442695, %v3655_v29 }
0x15a2   : > { %v3672_v32 = vpop.permute.xlu1 %3671 }
0x15a3   : > { %6774 = vpow2.f32 %v3658_v31  ;;  %v3677_v33 = vsel %vm3324_vm6, %v3672_v32, 0 }
0x15a4   : > { %6300 = vmatpush3.bf16.msra.mxu0 %v3677_v33 }
0x15a5   : > { %6311 = vmatprep.subr.bf16.mxu0 %v6987_v36  ;;  %v5699_v60 = vld [vmem:[%s8574_s9] ss:$0 sm:$0xff]  ;;  %s8576_s9 = sld [smem:[#allocation28_spill]] }
0x15ab   : > { %v6773_v34 = vpop.eup %6772 }
0x15ac   : > { %v3660_v39 = vsel %vm3295_vm7, %v6773_v34, 0.0 }
0x15ad   : > { %v6775_v46 = vpop.eup %6774  ;;  %3661 = vadd.xlane.f32.xlu0 %v3660_v39 }
0x15ae   : > { %v3663_v47 = vsel %vm3299_vm8, %v6775_v46, 0.0 }
0x15b1   : > { %3664 = vadd.xlane.f32.xlu0 %v3663_v47 }
0x15c7   : > { %3772 = vrot.lane.b32.xlu0 %v7877_v8, %s8572_s13  ;;  %v3771_v8 = vpop.permute.xlu1 %3770 }
0x163a   : > { %v3662_v40 = vpop.xlane.xlu0 %3661 }
0x163b   : > { %6776 = vrcp.f32 %v3662_v40 }
0x163e   : > { %v3665_v26 = vpop.xlane.xlu0 %3664 }
0x163f   : > { %6778 = vrcp.f32 %v3665_v26 }
0x1642   : > { %v3773_v53 = vpop.permute.xlu0 %3772 }
0x1643   : > { %v3778_v56 = vsel %vm2243_vm3, %v3773_v53, 0 }
0x1645   : > { %v6777_v30 = vpop.eup %6776 }
0x1646   : > { %v3668_v51 = vmul.f32 %v6777_v30, %v6773_v34 }
0x1649   : > { %v6779_v49 = vpop.eup %6778 }
0x164a   : > { %v3669_v52 = vmul.f32 %v6779_v49, %v6775_v46 }
0x164c   : > { %v3670_v48 = vpack.c.bf16 %v3669_v52, %v3668_v51 }
0x164e   : > { %6302 = vmatmul.mubr.msk.bf16.vlgmr.msra.gmra.mrb[68].mxu0 %vm3295_vm7, %v3670_v48 }
0x164f   : > { %6312 = vmatpush3.bf16.xpose.msra.mxu0 %v3778_v56  ;;  %6313 = vmatprep.mubr.msk.bf16.mxu0 %vm6988_vm1, %v6987_v36 }
0x1650   : > { %6323 = vmatprep.subr.bf16.mxu0 %v6987_v36 }
0x1656   : > { %6314 = vmatmul.mubr.msk.bf16.vlgmr.msra.gmra.mrb[72].mxu0 %vm2243_vm3, %v3771_v8  ;;  %v6729_v8 = vld [vmem:[%s8573_s14 + $0x8] sm:$0xff]  }
0x1657   : > { %6325 = vmatprep.mubr.msk.bf16.mxu0 %vm6988_vm1, %v6987_v36  ;;  %6324 = vmatpush3.bf16.msra.mxu0 %v3902_v27 }
0x1721   : > { %v3713_v41 = vpop.f32.mrb[68].mxu0 }
0x1722   : > { %v6303_v43 = vpop.f32.mrb[69].mxu0 }
0x1723   : > { %v3716_v3 = vpop.f32.mrb[70].mxu0 }
0x1724   : > { %v3720_v4 = vpack.c.bf16 %v3716_v3, %v3713_v41  ;;  %v6304_v5 = vpop.f32.mrb[71].mxu0 }
0x1726   : > { %6308 = vmatmul.mubr.msk.bf16.vlgmr.msra.gmra.mrb[56].mxu1 %vm2243_vm3, %v3720_v4 }
0x1727   : > { %6319 = vmatprep.mubr.msk.bf16.mxu1 %vm6988_vm1, %v6987_v36 }
0x1729   : > { %v3814_v6 = vpop.f32.mrb[72].mxu0 }
0x172a   : > { %v3821_v25 = vmul.f32 0.35355338, %v3814_v6  ;;  %v6315_v42 = vpop.f32.mrb[73].mxu0 }
0x172b   : > { %v3817_v59 = vpop.f32.mrb[74].mxu0 }
0x172c   : > { %v3823_v62 = vadd.f32 %v3821_v25, %v7909_v58  ;;  %v3822_v7 = vmul.f32 0.35355338, %v3817_v59  ;;  %v6316_v9 = vpop.f32.mrb[75].mxu0 }
0x172e   : > { %v3824_v11 = vadd.f32 %v3822_v7, %v7909_v58  ;;  %v3825_v12 = vsel %vm3295_vm7, %v3823_v62, -inf }
0x172f   : > { %3826 = vmax.xlane.f32.xlu1 %v3825_v12 }
0x1730   : > { %v3828_v15 = vsel %vm3299_vm8, %v3824_v11, -inf }
0x1731   : > { %3829 = vmax.xlane.f32.xlu0 %v3828_v15 }
0x17bc   : > { %v3827_v19 = vpop.xlane.xlu1 %3826 }
0x17bd   : > { %v3831_v20 = vsub.f32 %v3823_v62, %v3827_v19 }
0x17be   : > { %v3830_v18 = vpop.xlane.xlu0 %3829 }
0x17bf   : > { %v3833_v38 = vmul.f32 1.442695, %v3831_v20  ;;  %v3832_v57 = vsub.f32 %v3824_v11, %v3830_v18 }
0x17c1   : > { %6780 = vpow2.f32 %v3833_v38  ;;  %v3835_v13 = vmul.f32 1.442695, %v3832_v57 }
0x17c3   : > { %6782 = vpow2.f32 %v3835_v13 }
0x17cb   : > { %v6781_v22 = vpop.eup %6780 }
0x17cc   : > { %v3837_v2 = vsel %vm3295_vm7, %v6781_v22, 0.0 }
0x17cd   : > { %v6783_v23 = vpop.eup %6782  ;;  %3838 = vadd.xlane.f32.xlu0 %v3837_v2 }
0x17ce   : > { %v3840_v58 = vsel %vm3299_vm8, %v6783_v23, 0.0 }
0x17cf   : > { %3841 = vadd.xlane.f32.xlu1 %v3840_v58 }
0x17e3   : > { %3848 = vrot.lane.b32.xlu0 %v7886_v37, %s8571_s12 }
0x17f9   : > { %v3761_v28 = vpop.f32.mrb[56].mxu1 }
0x17fa   : > { %v3768_v29 = vadd.f32 %v3761_v28, %v7954_v14  ;;  %v6309_v31 = vpop.f32.mrb[57].mxu1 }
0x17fb   : > { %v3764_v32 = vpop.f32.mrb[58].mxu1 }
0x17fc   : > { %v3769_v33 = vadd.f32 %v3764_v32, %v7956_v10  ;;  %v6310_v34 = vpop.f32.mrb[59].mxu1  ;;  %v6728_v10 = vld [vmem:[%s8573_s14] sm:$0xff]   ;;  %s8575_s14 = sld [smem:[#allocation31_spill]] }
0x17fd   : > { %6337 = vmatprep.subr.bf16.mxu0 %v6728_v10 }
0x1802   : > { %v5706_v59 = vld [vmem:[%s8575_s14] ss:$0 sm:$0xff]  ;;  %s8577_s14 = sld [smem:[#allocation38_spill]] }
0x185a   : > { %v3839_v39 = vpop.xlane.xlu0 %3838 }
0x185b   : > { %6784 = vrcp.f32 %v3839_v39 }
0x185c   : > { %v3842_v46 = vpop.xlane.xlu1 %3841 }
0x185d   : > { %6786 = vrcp.f32 %v3842_v46 }
0x185e   : > { %v3849_v47 = vpop.permute.xlu0 %3848 }
0x185f   : > { %v3854_v37 = vsel %vm3324_vm6, %v3849_v47, 0 }
0x1860   : > { %6318 = vmatpush3.bf16.msra.mxu1 %v3854_v37 }
0x1861   : > { %6329 = vmatprep.subr.bf16.mxu1 %v6987_v36 }
0x1865   : > { %v6785_v40 = vpop.eup %6784 }
0x1866   : > { %v3845_v14 = vmul.f32 %v6785_v40, %v6781_v22 }
0x1867   : > { %v6787_v26 = vpop.eup %6786 }
0x1868   : > { %v3846_v30 = vmul.f32 %v6787_v26, %v6783_v23 }
0x186a   : > { %v3847_v49 = vpack.c.bf16 %v3846_v30, %v3845_v14 }
0x186c   : > { %6320 = vmatmul.mubr.msk.bf16.vlgmr.msra.gmra.mrb[60].mxu1 %vm3295_vm7, %v3847_v49 }
0x186d   : > { %6333 = vmatprep.mubr.msk.bf16.mxu1 %vm6988_vm1, %v6987_v36 }
0x193f   : > { %v3890_v51 = vpop.f32.mrb[60].mxu1 }
0x1940   : > { %v6321_v52 = vpop.f32.mrb[61].mxu1 }
0x1941   : > { %v3893_v53 = vpop.f32.mrb[62].mxu1 }
0x1942   : > { %v3897_v48 = vpack.c.bf16 %v3893_v53, %v3890_v51  ;;  %v6322_v56 = vpop.f32.mrb[63].mxu1 }
0x1944   : > { %6326 = vmatmul.mubr.msk.bf16.vlgmr.msra.gmra.mrb[76].mxu0 %vm2243_vm3, %v3897_v48 }
0x1945   : > { %6338 = vmatpush3.bf16.msra.mxu0 %v6728_v10  ;;  %6341 = vmatprep.mubr.msk.bf16.mxu0 %vm1772_vm0, %v7469_v45 }
0x1946   : > { %6339 = vmatprep.subr.bf16.mxu0 %v6729_v8 }
0x1949   : > { %6340 = vmatpush3.bf16.msra.mxu0 %v6729_v8 }
0x194a   : > { %6377 = vmatprep.subr.bf16.mxu0 %v6987_v36 }
0x194c   : > { %6342 = vmatmul.mubr.msk.bf16.vlgmr.msra.gmra.mrb[80].mxu0 %vm1772_vm0, %v7467_v44 }
0x194d   : > { %6345 = vmatprep.mubr.msk.bf16.mxu0 %vm1772_vm0, %v7477_v55 }
0x1954   : > { %6346 = vmatmul.mubr.msk.bf16.gmra.mrb[84].mxu0 %vm1772_vm0, %v7475_v54 }
0x1955   : > { %6349 = vmatprep.mubr.msk.bf16.mxu0 %vm1772_vm0, %v7485_v1 }
0x195c   : > { %6350 = vmatmul.mubr.msk.bf16.gmra.mrb[88].mxu0 %vm1772_vm0, %v7483_v0 }
0x195d   : > { %6353 = vmatprep.mubr.msk.bf16.mxu0 %vm1772_vm0, %v7500_v17 }
0x1964   : > { %6354 = vmatmul.mubr.msk.bf16.gmra.mrb[92].mxu0 %vm1772_vm0, %v7498_v16 }
0x1965   : > { %6393 = vmatprep.mubr.msk.bf16.mxu0 %vm6988_vm1, %v6987_v36 }
0x1a17   : > { %v3938_v50 = vpop.f32.mrb[76].mxu0 }
0x1a18   : > { %v3945_v41 = vadd.f32 %v3938_v50, %v3768_v29  ;;  %v6327_v43 = vpop.f32.mrb[77].mxu0 }
0x1a19   : > { %v3941_v3 = vpop.f32.mrb[78].mxu0 }
0x1a1a   : > { %v3953_v4 = vadd.f32 %v5699_v60, %v3945_v41  ;;  %v3946_v5 = vadd.f32 %v3941_v3, %v3769_v33  ;;  %v6328_v6 = vpop.f32.mrb[79].mxu0 }
0x1a1c   : > { %v3954_v25 = vadd.f32 %v5699_v60, %v3946_v5  ;;  %v3955_v42 = vadd.f32 %v3953_v4, %v7858_v35 }
0x1a1e   : > { %v3959_v62 = vsel %vm1772_vm0, %v3955_v42, 0.0  ;;  %v3956_v7 = vadd.f32 %v3954_v25, %v7850_v61 }
0x1a1f   : > { %3960 = vadd.xlane.f32.xlu1 %v3959_v62  ;;  %v6343_v9 = vpop.f32.mrb[80].mxu0 }
0x1a20   : > { %v4137_v11 = vadd.f32 %v6343_v9, %v5706_v59  ;;  %v4128_v12 = vpop.f32.mrb[81].mxu0  ;;  %v3962_v18 = vsel %vm3081_vm5, %v3956_v7, 0.0 }
0x1a21   : > { %v6344_v15 = vpop.f32.mrb[82].mxu0  ;;  %v4129_v38 = vadd.f32 %v5706_v59, %v4128_v12  ;;  %v6731_v12 = vld [vmem:[%s8576_s9 + $0x8] sm:$0xff]  }
0x1a22   : > { %v4140_v19 = vadd.f32 %v6344_v15, %v5706_v59  ;;  %v4131_v20 = vpop.f32.mrb[83].mxu0 }
0x1a23   : > { %v4132_v57 = vadd.f32 %v5706_v59, %v4131_v20  ;;  %3963 = vadd.xlane.f32.xlu1 %v3962_v18 }
0x1a24   : > { %v8031_v13 = vpack.c.bf16 %v4140_v19, %v4137_v11  ;;  %v6730_v11 = vld [vmem:[%s8576_s9] sm:$0xff]  }
0x1a25   : > { %v8033_v35 = vpack.c.bf16 %v4132_v57, %v4129_v38  ;;  %6330 = vmatpush3.bf16.msra.mxu1 %v6730_v11  ;;  %v5700_v57 = vld [vmem:[%s8577_s14] ss:$0 sm:$0xff]  ;;  %s8587_s14 = sld [smem:[#allocation37_spill]] }
0x1a26   : > { %6331 = vmatprep.subr.bf16.mxu1 %v6987_v36 }
0x1a27   : > { %v6347_v22 = vpop.f32.mrb[84].mxu0  ;;  %4304 = vrot.lane.b32.xlu0 %v8033_v35, %s8565_s4 }
0x1a28   : > { %v4153_v61 = vadd.f32 %v6347_v22, %v5706_v59  ;;  %v4144_v2 = vpop.f32.mrb[85].mxu0 }
0x1a29   : > { %v6348_v23 = vpop.f32.mrb[86].mxu0  ;;  %v4145_v27 = vadd.f32 %v5706_v59, %v4144_v2  ;;  %6332 = vmatpush3.bf16.msra.mxu1 %v6731_v12 }
0x1a2a   : > { %v4156_v58 = vadd.f32 %v6348_v23, %v5706_v59  ;;  %v4147_v24 = vpop.f32.mrb[87].mxu0  ;;  %6357 = vmatprep.subr.bf16.mxu1 %v6987_v36  ;;  %v5701_v23 = vld [vmem:[%s8578_s15] ss:$0 sm:$0xff]  ;;  %s8579_s15 = sld [smem:[#allocation29_spill]] }
0x1a2b   : > { %v4148_v28 = vadd.f32 %v5706_v59, %v4147_v24 }
0x1a2c   : > { %v8037_v29 = vpack.c.bf16 %v4156_v58, %v4153_v61 }
0x1a2d   : > { %v8039_v31 = vpack.c.bf16 %v4148_v28, %v4145_v27 }
0x1a2f   : > { %v6351_v32 = vpop.f32.mrb[88].mxu0  ;;  %4308 = vrot.lane.b32.xlu0 %v8039_v31, %s8565_s4 }
0x1a30   : > { %v4160_v33 = vpop.f32.mrb[89].mxu0  ;;  %v4169_v39 = vadd.f32 %v6351_v32, %v5706_v59 }
0x1a31   : > { %v6352_v34 = vpop.f32.mrb[90].mxu0  ;;  %v4161_v37 = vadd.f32 %v5706_v59, %v4160_v33 }
0x1a32   : > { %v4172_v46 = vadd.f32 %v6352_v34, %v5706_v59  ;;  %v4163_v47 = vpop.f32.mrb[91].mxu0 }
0x1a33   : > { %v4164_v40 = vadd.f32 %v5706_v59, %v4163_v47 }
0x1a34   : > { %v8043_v26 = vpack.c.bf16 %v4172_v46, %v4169_v39  ;;  %v4209_v39 = vsel %vm2243_vm3, %v8033_v35, 0  ;;  %v4212_v46 = vsel %vm2243_vm3, %v8031_v13, 0 }
0x1a35   : > { %v8045_v14 = vpack.c.bf16 %v4164_v40, %v4161_v37 }
0x1a36   : > { %v4224_v37 = vsel %vm2243_vm3, %v8043_v26, 0 }
0x1a37   : > { %v6355_v30 = vpop.f32.mrb[92].mxu0  ;;  %4312 = vrot.lane.b32.xlu0 %v8045_v14, %s8565_s4  ;;  %v4221_v47 = vsel %vm2243_vm3, %v8045_v14, 0 }
0x1a38   : > { %v4176_v49 = vpop.f32.mrb[93].mxu0  ;;  %v4185_v51 = vadd.f32 %v6355_v30, %v5706_v59 }
0x1a39   : > { %v6356_v10 = vpop.f32.mrb[94].mxu0  ;;  %v4177_v48 = vadd.f32 %v5706_v59, %v4176_v49  ;;  %v5702_v49 = vld [vmem:[%s8579_s15] ss:$0 sm:$0xff]  ;;  %s8588_s15 = sld [smem:[#allocation42_spill]] }
0x1a3a   : > { %v4188_v52 = vadd.f32 %v6356_v10, %v5706_v59  ;;  %v4179_v53 = vpop.f32.mrb[95].mxu0 }
0x1a3b   : > { %v4180_v56 = vadd.f32 %v5706_v59, %v4179_v53  ;;  %4314 = vrot.lane.b32.xlu0 %v8043_v26, %s8565_s4 }
0x1a3c   : > { %v8051_v8 = vpack.c.bf16 %v4188_v52, %v4185_v51 }
0x1a3d   : > { %v8053_v60 = vpack.c.bf16 %v4180_v56, %v4177_v48 }
0x1a3e   : > { %v4230_v30 = vsel %vm2243_vm3, %v8051_v8, 0 }
0x1a3f   : > { %4316 = vrot.lane.b32.xlu0 %v8053_v60, %s8565_s4  ;;  %v4227_v40 = vsel %vm2243_vm3, %v8053_v60, 0 }
0x1a43   : > { %4318 = vrot.lane.b32.xlu0 %v8051_v8, %s8565_s4 }
0x1a99   : > { %v4305_v50 = vpop.permute.xlu0 %4304 }
0x1a9a   : > { %6378 = vmatpush3.bf16.msra.mxu0 %v4305_v50 }
0x1a9b   : > { %6379 = vmatprep.subr.bf16.mxu0 %v6987_v36 }
0x1aac   : > { %v3961_v41 = vpop.xlane.xlu1 %3960 }
0x1aad   : > { %v3965_v43 = vmul.f32 0.03125, %v3961_v41 }
0x1aaf   : > { %v3967_v3 = vsub.f32 %v3955_v42, %v3965_v43 }
0x1ab0   : > { %v3964_v4 = vpop.xlane.xlu1 %3963 }
0x1ab1   : > { %v3966_v5 = vmul.f32 0.03125, %v3964_v4  ;;  %v3969_v6 = vmul.f32 %v3967_v3, %v3967_v3 }
0x1ab3   : > { %v3968_v25 = vsub.f32 %v3956_v7, %v3966_v5  ;;  %v3971_v59 = vsel %vm1772_vm0, %v3969_v6, 0.0 }
0x1ab4   : > { %3972 = vadd.xlane.f32.xlu1 %v3971_v59 }
0x1ab5   : > { %v3970_v62 = vmul.f32 %v3968_v25, %v3968_v25 }
0x1ab7   : > { %v3974_v9 = vsel %vm3081_vm5, %v3970_v62, 0.0 }
0x1ab8   : > { %3975 = vadd.xlane.f32.xlu1 %v3974_v9 }
0x1b41   : > { %v3973_v42 = vpop.xlane.xlu1 %3972 }
0x1b42   : > { %v3977_v15 = vmul.f32 0.03125, %v3973_v42 }
0x1b44   : > { %v3979_v7 = vadd.f32 1e-05, %v3977_v15 }
0x1b45   : > { %v3976_v19 = vpop.xlane.xlu1 %3975 }
0x1b46   : > { %6788 = vrsqrt.f32 %v3979_v7  ;;  %v3978_v20 = vmul.f32 0.03125, %v3976_v19  ;;  %v4309_v7 = vpop.permute.xlu0 %4308 }
0x1b48   : > { %v3980_v18 = vadd.f32 1e-05, %v3978_v20 }
0x1b4a   : > { %6790 = vrsqrt.f32 %v3980_v18  ;;  %v4313_v19 = vpop.permute.xlu0 %4312 }
0x1b50   : > { %v6789_v38 = vpop.eup %6788 }
0x1b51   : > { %v3983_v22 = vmul.f32 %v6789_v38, %v3967_v3 }
0x1b53   : > { %v3991_v61 = vmul.f32 %v5700_v57, %v3983_v22  ;;  %v4315_v22 = vpop.permute.xlu0 %4314 }
0x1b54   : > { %v6791_v2 = vpop.eup %6790 }
0x1b55   : > { %v3984_v58 = vmul.f32 %v6791_v2, %v3968_v25  ;;  %v8068_v27 = vadd.f32 %v5701_v23, %v3991_v61 }
0x1b57   : > { %v3992_v24 = vmul.f32 %v5700_v57, %v3984_v58  ;;  %v4001_v32 = vadd.f32 %v8068_v27, %v7853_v63  ;;  %v4215_v63 = vsel %vm2243_vm3, %v8039_v31, 0  ;;  %v4317_v61 = vpop.permute.xlu0 %4316 }
0x1b59   : > { %v8070_v28 = vadd.f32 %v5701_v23, %v3992_v24 }
0x1b5b   : > { %v4002_v33 = vadd.f32 %v8070_v28, %v7856_v21  ;;  %v4218_v21 = vsel %vm2243_vm3, %v8037_v29, 0  ;;  %v4319_v2 = vpop.permute.xlu0 %4318 }
0x1b5d   : > { %v4003_v34 = vpack.c.bf16 %v4002_v33, %v4001_v32 }
0x1b5f   : > { %6334 = vmatmul.mubr.msk.bf16.vlgmr.msra.gmra.mrb[64].mxu1 %vm1772_vm0, %v4003_v34 }
0x1b60   : > { %6358 = vmatpush3.bf16.xpose.msra.mxu1 %v4209_v39  ;;  %6373 = vmatprep.mubr.msk.bf16.mxu1 %vm6988_vm1, %v6987_v36 }
0x1b61   : > { %6359 = vmatprep.subr.bf16.mxu1 %v6987_v36 }
0x1b68   : > { %6360 = vmatpush3.bf16.xpose.msra.mxu1 %v4212_v46 }
0x1b69   : > { %6361 = vmatprep.subr.bf16.mxu1 %v6987_v36 }
0x1b70   : > { %6362 = vmatpush3.bf16.xpose.msra.mxu1 %v4215_v63 }
0x1b71   : > { %6363 = vmatprep.subr.bf16.mxu1 %v6987_v36 }
0x1b78   : > { %6364 = vmatpush3.bf16.xpose.msra.mxu1 %v4218_v21 }
0x1b79   : > { %6365 = vmatprep.subr.bf16.mxu1 %v6987_v36 }
0x1b80   : > { %6366 = vmatpush3.bf16.xpose.msra.mxu1 %v4221_v47 }
0x1b81   : > { %6367 = vmatprep.subr.bf16.mxu1 %v6987_v36 }
0x1b88   : > { %6368 = vmatpush3.bf16.xpose.msra.mxu1 %v4224_v37 }
0x1b89   : > { %6369 = vmatprep.subr.bf16.mxu1 %v6987_v36 }
0x1b90   : > { %6370 = vmatpush3.bf16.xpose.msra.mxu1 %v4227_v40 }
0x1b91   : > { %6371 = vmatprep.subr.bf16.mxu1 %v6987_v36 }
0x1b98   : > { %6372 = vmatpush3.bf16.xpose.msra.mxu1 %v4230_v30 }
0x1b99   : > { %6417 = vmatprep.subr.bf16.mxu1 %v6987_v36 }
0x1c32   : > { %v4064_v10 = vpop.f32.mrb[64].mxu1 }
0x1c33   : > { %v6335_v51 = vpop.f32.mrb[65].mxu1  ;;  %v4065_v53 = vadd.f32 %v5702_v49, %v4064_v10 }
0x1c34   : > { %v4067_v52 = vpop.f32.mrb[66].mxu1 }
0x1c35   : > { %v4068_v48 = vadd.f32 %v5702_v49, %v4067_v52  ;;  %v6336_v56 = vpop.f32.mrb[67].mxu1 }
0x1c37   : > { %v8104_v50 = vpack.c.bf16 %v4068_v48, %v4065_v53 }
0x1c39   : > { %6374 = vmatmul.mubr.msk.bf16.vlgmr.msra.gmra.mrb[68].mxu1 %vm2243_vm3, %v8104_v50 }
0x1c3a   : > { %6433 = vmatprep.mubr.msk.bf16.mxu1 %vm6988_vm1, %v6987_v36 }
0x1d0c   : > { %v4266_v41 = vpop.f32.mrb[68].mxu1 }
0x1d0d   : > { %v6375_v43 = vpop.f32.mrb[69].mxu1  ;;  %v4273_v25 = vmul.f32 0.35355338, %v4266_v41 }
0x1d0e   : > { %v4269_v3 = vpop.f32.mrb[70].mxu1 }
0x1d0f   : > { %v4274_v4 = vmul.f32 0.35355338, %v4269_v3  ;;  %v6376_v5 = vpop.f32.mrb[71].mxu1 }
0x1d11   : > { %v4277_v6 = vsel %vm2312_vm4, %v4274_v4, -inf }
0x1d12   : > { %4278 = vmax.xlane.f32.xlu1 %v4277_v6 }
0x1d16   : > { %4275 = vmax.xlane.f32.xlu1 %v4273_v25 }
0x1d27   : > { %4306 = vrot.lane.b32.xlu1 %v8031_v13, %s8565_s4 }
0x1d2b   : > { %4310 = vrot.lane.b32.xlu1 %v8037_v29, %s8565_s4  ;;  %s8580_s4 = sld [smem:[#allocation32_spill]] }
0x1d9f   : > { %v4279_v59 = vpop.xlane.xlu1 %4278 }
0x1da0   : > { %v4281_v62 = vsub.f32 %v4274_v4, %v4279_v59  ;;  %v4191_v4 = vld [vmem:[%s8580_s4] sm:$0xf] }
0x1da1   : > { %v4597_v5 = vsel %vm2312_vm4, %v4191_v4, 0 }
0x1da2   : > { %v4284_v9 = vmul.f32 1.442695, %v4281_v62 }
0x1da3   : > { %v4276_v11 = vpop.xlane.xlu1 %4275 }
0x1da4   : > { %6792 = vpow2.f32 %v4284_v9  ;;  %v4280_v12 = vsub.f32 %v4273_v25, %v4276_v11 }
0x1da6   : > { %v4282_v42 = vmul.f32 1.442695, %v4280_v12 }
0x1da7   : > { %v4307_v15 = vpop.permute.xlu1 %4306 }
0x1da8   : > { %6794 = vpow2.f32 %v4282_v42  ;;  %6380 = vmatpush3.bf16.msra.mxu0 %v4307_v15 }
0x1da9   : > { %6381 = vmatprep.subr.bf16.mxu0 %v6987_v36 }
0x1dab   : > { %v4311_v18 = vpop.permute.xlu1 %4310 }
0x1dac   : > { %6382 = vmatpush3.bf16.msra.mxu0 %v4309_v7 }
0x1dad   : > { %6383 = vmatprep.subr.bf16.mxu0 %v6987_v36 }
0x1dae   : > { %v6793_v20 = vpop.eup %6792 }
0x1daf   : > { %v4288_v38 = vsel %vm2312_vm4, %v6793_v20, 0.0 }
0x1db0   : > { %4289 = vadd.xlane.f32.xlu1 %v4288_v38  ;;  %6384 = vmatpush3.bf16.msra.mxu0 %v4311_v18 }
0x1db1   : > { %6385 = vmatprep.subr.bf16.mxu0 %v6987_v36 }
0x1db2   : > { %v6795_v57 = vpop.eup %6794 }
0x1db3   : > { %4286 = vadd.xlane.f32.xlu0 %v6795_v57 }
0x1db4   : > { %6386 = vmatpush3.bf16.msra.mxu0 %v4313_v19 }
0x1db5   : > { %6387 = vmatprep.subr.bf16.mxu0 %v6987_v36 }
0x1db8   : > { %6388 = vmatpush3.bf16.msra.mxu0 %v4315_v22 }
0x1db9   : > { %6389 = vmatprep.subr.bf16.mxu0 %v6987_v36 }
0x1dbc   : > { %6390 = vmatpush3.bf16.msra.mxu0 %v4317_v61 }
0x1dbd   : > { %6391 = vmatprep.subr.bf16.mxu0 %v6987_v36 }
0x1dc0   : > { %6392 = vmatpush3.bf16.msra.mxu0 %v4319_v2 }
0x1dc1   : > { %4375 = vrot.lane.b32.xlu1 %v8031_v13, %s8566_s16  ;;  %6397 = vmatprep.subr.bf16.mxu0 %v6987_v36 }
0x1dc5   : > { %4379 = vrot.lane.b32.xlu1 %v8037_v29, %s8566_s16 }
0x1dc9   : > { %4383 = vrot.lane.b32.xlu1 %v8043_v26, %s8566_s16  ;;  %4373 = vrot.lane.b32.xlu0 %v8033_v35, %s8566_s16 }
0x1dcd   : > { %4387 = vrot.lane.b32.xlu1 %v8051_v8, %s8566_s16  ;;  %4377 = vrot.lane.b32.xlu0 %v8039_v31, %s8566_s16 }
0x1dd1   : > { %4381 = vrot.lane.b32.xlu0 %v8045_v14, %s8566_s16 }
0x1dd5   : > { %4385 = vrot.lane.b32.xlu0 %v8053_v60, %s8566_s16 }
0x1dd9   : > { %4371 = vrot.lane.b32.xlu0 %v8104_v50, %s8566_s16  ;;  %s8585_s16 = sld [smem:[#allocation41_spill]] }
0x1e3d   : > { %v4290_v23 = vpop.xlane.xlu1 %4289 }
0x1e3e   : > { %6796 = vrcp.f32 %v4290_v23 }
0x1e40   : > { %v4287_v58 = vpop.xlane.xlu0 %4286 }
0x1e41   : > { %6798 = vrcp.f32 %v4287_v58  ;;  %v4376_v21 = vpop.permute.xlu1 %4375 }
0x1e42   : > { %v4396_v47 = vsel %vm2243_vm3, %v4376_v21, 0 }
0x1e44   : > { %v4374_v39 = vpop.permute.xlu0 %4373 }
0x1e45   : > { %v4393_v63 = vsel %vm2243_vm3, %v4374_v39, 0  ;;  %v4380_v30 = vpop.permute.xlu1 %4379 }
0x1e46   : > { %v4402_v49 = vsel %vm2243_vm3, %v4380_v30, 0 }
0x1e48   : > { %v6797_v24 = vpop.eup %6796  ;;  %v4378_v37 = vpop.permute.xlu0 %4377 }
0x1e49   : > { %v4294_v33 = vmul.f32 %v6797_v24, %v6793_v20  ;;  %v4399_v40 = vsel %vm2243_vm3, %v4378_v37, 0  ;;  %v4384_v52 = vpop.permute.xlu1 %4383 }
0x1e4a   : > { %v4408_v53 = vsel %vm2243_vm3, %v4384_v52, 0 }
0x1e4b   : > { %v6799_v32 = vpop.eup %6798 }
0x1e4c   : > { %v4293_v34 = vmul.f32 %v6799_v32, %v6795_v57  ;;  %v4382_v10 = vpop.permute.xlu0 %4381 }
0x1e4d   : > { %v4405_v51 = vsel %vm2243_vm3, %v4382_v10, 0  ;;  %v4388_v41 = vpop.permute.xlu1 %4387 }
0x1e4e   : > { %v4295_v46 = vpack.c.bf16 %v4294_v33, %v4293_v34  ;;  %v4414_v43 = vsel %vm2243_vm3, %v4388_v41, 0 }
0x1e50   : > { %6394 = vmatmul.mubr.bf16.vlgmr.msra.gmra.mrb[96].mxu0 %v4295_v46  ;;  %v4386_v48 = vpop.permute.xlu0 %4385 }
0x1e51   : > { %6398 = vmatpush3.bf16.xpose.msra.mxu0 %v4393_v63  ;;  %6413 = vmatprep.mubr.msk.bf16.mxu0 %vm6988_vm1, %v6987_v36  ;;  %v4411_v56 = vsel %vm2243_vm3, %v4386_v48, 0  ;;  %v4192_v48 = vld [vmem:[%s8580_s4 + $0x4] sm:$0xf] }
0x1e52   : > { %6399 = vmatprep.subr.bf16.mxu0 %v6987_v36 }
0x1e54   : > { %v4372_v3 = vpop.permute.xlu0 %4371 }
0x1e59   : > { %6400 = vmatpush3.bf16.xpose.msra.mxu0 %v4396_v47 }
0x1e5a   : > { %6401 = vmatprep.subr.bf16.mxu0 %v6987_v36 }
0x1e61   : > { %6402 = vmatpush3.bf16.xpose.msra.mxu0 %v4399_v40 }
0x1e62   : > { %6403 = vmatprep.subr.bf16.mxu0 %v6987_v36 }
0x1e69   : > { %6404 = vmatpush3.bf16.xpose.msra.mxu0 %v4402_v49 }
0x1e6a   : > { %6405 = vmatprep.subr.bf16.mxu0 %v6987_v36 }
0x1e71   : > { %6406 = vmatpush3.bf16.xpose.msra.mxu0 %v4405_v51 }
0x1e72   : > { %6407 = vmatprep.subr.bf16.mxu0 %v6987_v36 }
0x1e79   : > { %6408 = vmatpush3.bf16.xpose.msra.mxu0 %v4408_v53 }
0x1e7a   : > { %6409 = vmatprep.subr.bf16.mxu0 %v6987_v36 }
0x1e81   : > { %6410 = vmatpush3.bf16.xpose.msra.mxu0 %v4411_v56 }
0x1e82   : > { %6411 = vmatprep.subr.bf16.mxu0 %v6987_v36 }
0x1e89   : > { %6412 = vmatpush3.bf16.xpose.msra.mxu0 %v4414_v43 }
0x1e8a   : > { %6443 = vmatprep.subr.bf16.mxu0 %v6987_v36 }
0x1e90   : > { %6414 = vmatmul.mubr.msk.bf16.vlgmr.msra.gmra.mrb[100].mxu0 %vm2243_vm3, %v4372_v3  ;;  %v4550_v3 = vsel %vm2312_vm4, %v4192_v48, 0 }
0x1e91   : > { %6445 = vmatprep.mubr.msk.bf16.mxu0 %vm6988_vm1, %v6987_v36  ;;  %6444 = vmatpush3.bf16.msra.mxu0 %v4597_v5 }
0x1e92   : > { %6469 = vmatprep.subr.bf16.mxu0 %v6987_v36 }
0x1f23   : > { %v4362_v6 = vpop.f32.mrb[96].mxu0 }
0x1f24   : > { %v6395_v25 = vpop.f32.mrb[97].mxu0 }
0x1f25   : > { %v4365_v59 = vpop.f32.mrb[98].mxu0 }
0x1f26   : > { %v4369_v62 = vpack.c.bf16 %v4365_v59, %v4362_v6  ;;  %v6396_v9 = vpop.f32.mrb[99].mxu0 }
0x1f28   : > { %6446 = vmatmul.mubr.msk.bf16.vlgmr.msra.gmra.mrb[104].mxu0 %vm2243_vm3, %v4369_v62 }
0x1f29   : > { %6485 = vmatprep.mubr.msk.bf16.mxu0 %vm6988_vm1, %v6987_v36 }
0x1f63   : > { %v4450_v11 = vpop.f32.mrb[100].mxu0 }
0x1f64   : > { %v4457_v12 = vmul.f32 0.35355338, %v4450_v11  ;;  %v6415_v42 = vpop.f32.mrb[101].mxu0 }
0x1f65   : > { %v4453_v15 = vpop.f32.mrb[102].mxu0 }
0x1f66   : > { %v4458_v7 = vmul.f32 0.35355338, %v4453_v15  ;;  %4459 = vmax.xlane.f32.xlu0 %v4457_v12  ;;  %v6416_v19 = vpop.f32.mrb[103].mxu0 }
0x1f68   : > { %v4461_v20 = vsel %vm2312_vm4, %v4458_v7, -inf }
0x1f69   : > { %4462 = vmax.xlane.f32.xlu1 %v4461_v20 }
0x1f7a   : > { %4482 = vrot.lane.b32.xlu1 %v8031_v13, %s8564_s3 }
0x1f7c   : > { %4480 = vrot.lane.b32.xlu0 %v8033_v35, %s8564_s3 }
0x1f7e   : > { %4488 = vrot.lane.b32.xlu1 %v8045_v14, %s8564_s3 }
0x1f80   : > { %4484 = vrot.lane.b32.xlu0 %v8039_v31, %s8564_s3 }
0x1f84   : > { %4486 = vrot.lane.b32.xlu0 %v8037_v29, %s8564_s3 }
0x1f88   : > { %4490 = vrot.lane.b32.xlu0 %v8043_v26, %s8564_s3 }
0x1f8c   : > { %4494 = vrot.lane.b32.xlu0 %v8051_v8, %s8564_s3 }
0x1f90   : > { %4644 = vrot.lane.b32.xlu0 %v8031_v13, %s8569_s8 }
0x1f94   : > { %4648 = vrot.lane.b32.xlu0 %v8037_v29, %s8569_s8 }
0x1f98   : > { %4652 = vrot.lane.b32.xlu0 %v8043_v26, %s8569_s8 }
0x1f9c   : > { %4656 = vrot.lane.b32.xlu0 %v8051_v8, %s8569_s8 }
0x1ff3   : > { %v4460_v18 = vpop.xlane.xlu0 %4459 }
0x1ff4   : > { %v4464_v38 = vsub.f32 %v4457_v12, %v4460_v18 }
0x1ff6   : > { %v4466_v57 = vmul.f32 1.442695, %v4464_v38  ;;  %v4463_v22 = vpop.xlane.xlu1 %4462 }
0x1ff7   : > { %v4465_v61 = vsub.f32 %v4458_v7, %v4463_v22  ;;  %v4481_v2 = vpop.permute.xlu0 %4480 }
0x1ff8   : > { %6800 = vpow2.f32 %v4466_v57  ;;  %6418 = vmatpush3.bf16.msra.mxu1 %v4481_v2 }
0x1ff9   : > { %v4468_v23 = vmul.f32 1.442695, %v4465_v61  ;;  %6419 = vmatprep.subr.bf16.mxu1 %v6987_v36 }
0x1ffa   : > { %v4483_v58 = vpop.permute.xlu1 %4482 }
0x1ffb   : > { %6802 = vpow2.f32 %v4468_v23  ;;  %v8192_v24 = vpop.f32.mrb[104].mxu0  ;;  %v4485_v33 = vpop.permute.xlu0 %4484 }
0x1ffc   : > { %6420 = vmatpush3.bf16.msra.mxu1 %v4483_v58  ;;  %v6447_v32 = vpop.f32.mrb[105].mxu0 }
0x1ffd   : > { %v8194_v34 = vpop.f32.mrb[106].mxu0  ;;  %6421 = vmatprep.subr.bf16.mxu1 %v6987_v36 }
0x1ffe   : > { %v6448_v39 = vpop.f32.mrb[107].mxu0  ;;  %v4489_v37 = vpop.permute.xlu1 %4488 }
0x1fff   : > { %v4487_v63 = vpop.permute.xlu0 %4486 }
0x2000   : > { %6422 = vmatpush3.bf16.msra.mxu1 %v4485_v33 }
0x2001   : > { %6423 = vmatprep.subr.bf16.mxu1 %v6987_v36 }
0x2002   : > { %v6801_v46 = vpop.eup %6800 }
0x2003   : > { %4470 = vadd.xlane.f32.xlu1 %v6801_v46  ;;  %v4491_v40 = vpop.permute.xlu0 %4490 }
0x2004   : > { %6424 = vmatpush3.bf16.msra.mxu1 %v4487_v63 }
0x2005   : > { %v6803_v21 = vpop.eup %6802  ;;  %6425 = vmatprep.subr.bf16.mxu1 %v6987_v36 }
0x2006   : > { %v4472_v47 = vsel %vm2312_vm4, %v6803_v21, 0.0 }
0x2007   : > { %4473 = vadd.xlane.f32.xlu1 %v4472_v47  ;;  %v4495_v51 = vpop.permute.xlu0 %4494 }
0x2008   : > { %6426 = vmatpush3.bf16.msra.mxu1 %v4489_v37 }
0x2009   : > { %6427 = vmatprep.subr.bf16.mxu1 %v6987_v36 }
0x200b   : > { %v4645_v11 = vpop.permute.xlu0 %4644 }
0x200c   : > { %6428 = vmatpush3.bf16.msra.mxu1 %v4491_v40  ;;  %v4665_v12 = vsel %vm2243_vm3, %v4645_v11, 0 }
0x200d   : > { %6429 = vmatprep.subr.bf16.mxu1 %v6987_v36 }
0x200f   : > { %v4649_v7 = vpop.permute.xlu0 %4648 }
0x2010   : > { %v4671_v19 = vsel %vm2243_vm3, %v4649_v7, 0  ;;  %v4193_v7 = vld [vmem:[%s8580_s4 + $0x8] sm:$0xf] }
0x2013   : > { %v4653_v38 = vpop.permute.xlu0 %4652 }
0x2014   : > { %v4677_v57 = vsel %vm2243_vm3, %v4653_v38, 0  ;;  %v4819_v38 = vsel %vm2312_vm4, %v4193_v7, 0 }
0x2017   : > { %v4657_v2 = vpop.permute.xlu0 %4656 }
0x2018   : > { %4492 = vrot.lane.b32.xlu1 %v8053_v60, %s8564_s3  ;;  %v4683_v23 = vsel %vm2243_vm3, %v4657_v2, 0  ;;  %s8581_s3 = sld [smem:[#allocation33_spill]] }
0x201c   : > { %4642 = vrot.lane.b32.xlu1 %v8033_v35, %s8569_s8 }
0x2020   : > { %4646 = vrot.lane.b32.xlu1 %v8039_v31, %s8569_s8 }
0x2024   : > { %4650 = vrot.lane.b32.xlu1 %v8045_v14, %s8569_s8 }
0x2028   : > { %4654 = vrot.lane.b32.xlu1 %v8053_v60, %s8569_s8 }
0x202c   : > { %4640 = vrot.lane.b32.xlu1 %v8104_v50, %s8569_s8  ;;  %s8583_s8 = sld [smem:[#allocation36_spill]] }
0x2090   : > { %v4471_v30 = vpop.xlane.xlu1 %4470 }
0x2091   : > { %6804 = vrcp.f32 %v4471_v30 }
0x2094   : > { %v4474_v49 = vpop.xlane.xlu1 %4473 }
0x2095   : > { %6806 = vrcp.f32 %v4474_v49 }
0x2098   : > { %v4493_v10 = vpop.permute.xlu1 %4492 }
0x2099   : > { %6430 = vmatpush3.bf16.msra.mxu1 %v4493_v10 }
0x209a   : > { %6431 = vmatprep.subr.bf16.mxu1 %v6987_v36 }
0x209b   : > { %v6805_v52 = vpop.eup %6804 }
0x209c   : > { %v4477_v56 = vmul.f32 %v6805_v52, %v6801_v46  ;;  %v4643_v6 = vpop.permute.xlu1 %4642 }
0x209d   : > { %6432 = vmatpush3.bf16.msra.mxu1 %v4495_v51  ;;  %v4662_v9 = vsel %vm2243_vm3, %v4643_v6, 0 }
0x209e   : > { %6437 = vmatprep.subr.bf16.mxu1 %v6987_v36 }
0x209f   : > { %v6807_v53 = vpop.eup %6806 }
0x20a0   : > { %v4478_v41 = vmul.f32 %v6807_v53, %v6803_v21  ;;  %v4647_v42 = vpop.permute.xlu1 %4646 }
0x20a1   : > { %v4668_v15 = vsel %vm2243_vm3, %v4647_v42, 0 }
0x20a2   : > { %v4479_v43 = vpack.c.bf16 %v4478_v41, %v4477_v56 }
0x20a4   : > { %6434 = vmatmul.mubr.bf16.vlgmr.msra.gmra.mrb[72].mxu1 %v4479_v43  ;;  %v4651_v20 = vpop.permute.xlu1 %4650 }
0x20a5   : > { %6438 = vmatpush3.bf16.msra.mxu1 %v4550_v3  ;;  %6439 = vmatprep.mubr.msk.bf16.mxu1 %vm6988_vm1, %v6987_v36  ;;  %v4674_v18 = vsel %vm2243_vm3, %v4651_v20, 0 }
0x20a6   : > { %6449 = vmatprep.subr.bf16.mxu1 %v6987_v36 }
0x20a8   : > { %v4655_v22 = vpop.permute.xlu1 %4654 }
0x20a9   : > { %v4680_v61 = vsel %vm2243_vm3, %v4655_v22, 0 }
0x20ac   : > { %v4641_v58 = vpop.permute.xlu1 %4640 }
0x2177   : > { %v4538_v4 = vpop.f32.mrb[72].mxu1 }
0x2178   : > { %v6435_v5 = vpop.f32.mrb[73].mxu1 }
0x2179   : > { %v4541_v25 = vpop.f32.mrb[74].mxu1 }
0x217a   : > { %v4545_v59 = vpack.c.bf16 %v4541_v25, %v4538_v4  ;;  %v6436_v62 = vpop.f32.mrb[75].mxu1 }
0x217c   : > { %6440 = vmatmul.mubr.msk.bf16.vlgmr.msra.gmra.mrb[76].mxu1 %vm2243_vm3, %v4545_v59 }
0x217d   : > { %6450 = vmatpush3.bf16.xpose.msra.mxu1 %v4662_v9  ;;  %6465 = vmatprep.mubr.msk.bf16.mxu1 %vm6988_vm1, %v6987_v36 }
0x217e   : > { %6451 = vmatprep.subr.bf16.mxu1 %v6987_v36 }
0x2185   : > { %6452 = vmatpush3.bf16.xpose.msra.mxu1 %v4665_v12 }
0x2186   : > { %6453 = vmatprep.subr.bf16.mxu1 %v6987_v36 }
0x218d   : > { %6454 = vmatpush3.bf16.xpose.msra.mxu1 %v4668_v15 }
0x218e   : > { %6455 = vmatprep.subr.bf16.mxu1 %v6987_v36 }
0x2195   : > { %6456 = vmatpush3.bf16.xpose.msra.mxu1 %v4671_v19 }
0x2196   : > { %6457 = vmatprep.subr.bf16.mxu1 %v6987_v36 }
0x219d   : > { %6458 = vmatpush3.bf16.xpose.msra.mxu1 %v4674_v18 }
0x219e   : > { %6459 = vmatprep.subr.bf16.mxu1 %v6987_v36 }
0x21a5   : > { %6460 = vmatpush3.bf16.xpose.msra.mxu1 %v4677_v57 }
0x21a6   : > { %6461 = vmatprep.subr.bf16.mxu1 %v6987_v36 }
0x21ad   : > { %6462 = vmatpush3.bf16.xpose.msra.mxu1 %v4680_v61 }
0x21ae   : > { %6463 = vmatprep.subr.bf16.mxu1 %v6987_v36 }
0x21b5   : > { %6464 = vmatpush3.bf16.xpose.msra.mxu1 %v4683_v23 }
0x21b6   : > { %6515 = vmatprep.subr.bf16.mxu1 %v6987_v36 }
0x21bc   : > { %6466 = vmatmul.mubr.msk.bf16.vlgmr.msra.gmra.mrb[80].mxu1 %vm2243_vm3, %v4641_v58 }
0x21bd   : > { %6531 = vmatprep.mubr.msk.bf16.mxu1 %vm6988_vm1, %v6987_v36 }
0x224f   : > { %v4586_v32 = vpop.f32.mrb[76].mxu1 }
0x2250   : > { %v8244_v33 = vadd.f32 %v8192_v24, %v4586_v32  ;;  %v6441_v39 = vpop.f32.mrb[77].mxu1 }
0x2251   : > { %v4589_v46 = vpop.f32.mrb[78].mxu1 }
0x2252   : > { %v8247_v63 = vadd.f32 %v8194_v34, %v4589_v46  ;;  %v6442_v21 = vpop.f32.mrb[79].mxu1 }
0x228f   : > { %v4719_v47 = vpop.f32.mrb[80].mxu1 }
0x2290   : > { %v4726_v37 = vmul.f32 0.35355338, %v4719_v47  ;;  %v6467_v40 = vpop.f32.mrb[81].mxu1 }
0x2291   : > { %v4722_v30 = vpop.f32.mrb[82].mxu1 }
0x2292   : > { %v4727_v49 = vmul.f32 0.35355338, %v4722_v30  ;;  %4728 = vmax.xlane.f32.xlu1 %v4726_v37  ;;  %v6468_v10 = vpop.f32.mrb[83].mxu1 }
0x2294   : > { %v4730_v51 = vsel %vm2312_vm4, %v4727_v49, -inf }
0x2295   : > { %4731 = vmax.xlane.f32.xlu0 %v4730_v51 }
0x22a3   : > { %4751 = vrot.lane.b32.xlu1 %v8031_v13, %s8568_s5 }
0x22a7   : > { %4759 = vrot.lane.b32.xlu1 %v8043_v26, %s8568_s5 }
0x22ab   : > { %4749 = vrot.lane.b32.xlu0 %v8033_v35, %s8568_s5 }
0x22af   : > { %4753 = vrot.lane.b32.xlu0 %v8039_v31, %s8568_s5 }
0x22b3   : > { %4755 = vrot.lane.b32.xlu0 %v8037_v29, %s8568_s5 }
0x22b7   : > { %4757 = vrot.lane.b32.xlu0 %v8045_v14, %s8568_s5 }
0x22bb   : > { %4761 = vrot.lane.b32.xlu0 %v8053_v60, %s8568_s5 }
0x22bf   : > { %4866 = vrot.lane.b32.xlu0 %v8033_v35, %s8571_s12 }
0x22c3   : > { %4870 = vrot.lane.b32.xlu0 %v8039_v31, %s8571_s12 }
0x22c7   : > { %4874 = vrot.lane.b32.xlu0 %v8045_v14, %s8571_s12 }
0x22cb   : > { %4878 = vrot.lane.b32.xlu0 %v8053_v60, %s8571_s12 }
0x22cf   : > { %4864 = vrot.lane.b32.xlu0 %v8104_v50, %s8571_s12 }
0x231f   : > { %v4729_v24 = vpop.xlane.xlu1 %4728 }
0x2320   : > { %v4733_v34 = vsub.f32 %v4726_v37, %v4729_v24 }
0x2322   : > { %v4735_v52 = vmul.f32 1.442695, %v4733_v34  ;;  %v4732_v53 = vpop.xlane.xlu0 %4731 }
0x2323   : > { %v4734_v48 = vsub.f32 %v4727_v49, %v4732_v53  ;;  %v4752_v43 = vpop.permute.xlu1 %4751 }
0x2324   : > { %6808 = vpow2.f32 %v4735_v52 }
0x2325   : > { %v4737_v56 = vmul.f32 1.442695, %v4734_v48 }
0x2326   : > { %v4750_v41 = vpop.permute.xlu0 %4749 }
0x2327   : > { %6810 = vpow2.f32 %v4737_v56  ;;  %6470 = vmatpush3.bf16.msra.mxu0 %v4750_v41  ;;  %v4760_v59 = vpop.permute.xlu1 %4759 }
0x2328   : > { %6471 = vmatprep.subr.bf16.mxu0 %v6987_v36 }
0x232a   : > { %v4754_v3 = vpop.permute.xlu0 %4753 }
0x232b   : > { %6472 = vmatpush3.bf16.msra.mxu0 %v4752_v43 }
0x232c   : > { %6473 = vmatprep.subr.bf16.mxu0 %v6987_v36 }
0x232e   : > { %v6809_v4 = vpop.eup %6808  ;;  %v4756_v50 = vpop.permute.xlu0 %4755 }
0x232f   : > { %4739 = vadd.xlane.f32.xlu1 %v6809_v4  ;;  %6474 = vmatpush3.bf16.msra.mxu0 %v4754_v3 }
0x2330   : > { %6475 = vmatprep.subr.bf16.mxu0 %v6987_v36 }
0x2331   : > { %v6811_v5 = vpop.eup %6810 }
0x2332   : > { %v4741_v6 = vsel %vm2312_vm4, %v6811_v5, 0.0  ;;  %v4758_v25 = vpop.permute.xlu0 %4757 }
0x2333   : > { %4742 = vadd.xlane.f32.xlu1 %v4741_v6  ;;  %6476 = vmatpush3.bf16.msra.mxu0 %v4756_v50 }
0x2334   : > { %6477 = vmatprep.subr.bf16.mxu0 %v6987_v36 }
0x2336   : > { %v4762_v62 = vpop.permute.xlu0 %4761 }
0x2337   : > { %6478 = vmatpush3.bf16.msra.mxu0 %v4758_v25 }
0x2338   : > { %6479 = vmatprep.subr.bf16.mxu0 %v6987_v36 }
0x233a   : > { %v4867_v61 = vpop.permute.xlu0 %4866 }
0x233b   : > { %6480 = vmatpush3.bf16.msra.mxu0 %v4760_v59  ;;  %v4886_v32 = vsel %vm2243_vm3, %v4867_v61, 0 }
0x233c   : > { %6481 = vmatprep.subr.bf16.mxu0 %v6987_v36 }
0x233e   : > { %v4871_v21 = vpop.permute.xlu0 %4870 }
0x233f   : > { %6482 = vmatpush3.bf16.msra.mxu0 %v4762_v62  ;;  %v4892_v47 = vsel %vm2243_vm3, %v4871_v21, 0 }
0x2340   : > { %6483 = vmatprep.subr.bf16.mxu0 %v6987_v36 }
0x2342   : > { %v4875_v30 = vpop.permute.xlu0 %4874 }
0x2343   : > { %v4898_v49 = vsel %vm2243_vm3, %v4875_v30, 0  ;;  %v5725_v30 = vld [vmem:[%s8581_s3] ss:$0 sm:$0xff]  ;;  %s8589_s3 = sld [smem:[#allocation12_spill]] }
0x2344   : > { %4763 = vrot.lane.b32.xlu1 %v8051_v8, %s8568_s5  ;;  %s8586_s5 = sld [smem:[#allocation35_spill]] }
0x2346   : > { %v4879_v24 = vpop.permute.xlu0 %4878 }
0x2347   : > { %v4904_v34 = vsel %vm2243_vm3, %v4879_v24, 0 }
0x2348   : > { %4868 = vrot.lane.b32.xlu1 %v8031_v13, %s8571_s12 }
0x234a   : > { %v4865_v48 = vpop.permute.xlu0 %4864 }
0x234c   : > { %4872 = vrot.lane.b32.xlu1 %v8037_v29, %s8571_s12 }
0x2350   : > { %4876 = vrot.lane.b32.xlu1 %v8043_v26, %s8571_s12 }
0x2354   : > { %4880 = vrot.lane.b32.xlu1 %v8051_v8, %s8571_s12  ;;  %s8584_s12 = sld [smem:[#allocation40_spill]] }
0x23bc   : > { %v4740_v9 = vpop.xlane.xlu1 %4739 }
0x23bd   : > { %6812 = vrcp.f32 %v4740_v9 }
0x23c0   : > { %v4743_v11 = vpop.xlane.xlu1 %4742 }
0x23c1   : > { %6814 = vrcp.f32 %v4743_v11 }
0x23c4   : > { %v4764_v12 = vpop.permute.xlu1 %4763 }
0x23c5   : > { %6484 = vmatpush3.bf16.msra.mxu0 %v4764_v12 }
0x23c6   : > { %6489 = vmatprep.subr.bf16.mxu0 %v6987_v36 }
0x23c7   : > { %v6813_v42 = vpop.eup %6812 }
0x23c8   : > { %v4746_v19 = vmul.f32 %v6813_v42, %v6809_v4  ;;  %v4869_v39 = vpop.permute.xlu1 %4868 }
0x23c9   : > { %v4889_v46 = vsel %vm2243_vm3, %v4869_v39, 0 }
0x23cb   : > { %v6815_v15 = vpop.eup %6814 }
0x23cc   : > { %v4747_v20 = vmul.f32 %v6815_v15, %v6811_v5  ;;  %v4873_v37 = vpop.permute.xlu1 %4872 }
0x23cd   : > { %v4895_v40 = vsel %vm2243_vm3, %v4873_v37, 0 }
0x23ce   : > { %v4748_v18 = vpack.c.bf16 %v4747_v20, %v4746_v19 }
0x23d0   : > { %6486 = vmatmul.mubr.bf16.vlgmr.msra.gmra.mrb[108].mxu0 %v4748_v18  ;;  %v4877_v10 = vpop.permute.xlu1 %4876 }
0x23d1   : > { %6490 = vmatpush3.bf16.msra.mxu0 %v4819_v38  ;;  %6491 = vmatprep.mubr.msk.bf16.mxu0 %vm6988_vm1, %v6987_v36  ;;  %v4901_v51 = vsel %vm2243_vm3, %v4877_v10, 0 }
0x23d2   : > { %6495 = vmatprep.subr.bf16.mxu0 %v6987_v36 }
0x23d4   : > { %v4881_v52 = vpop.permute.xlu1 %4880 }
0x23d5   : > { %v4907_v53 = vsel %vm2243_vm3, %v4881_v52, 0 }
0x24a3   : > { %v4807_v57 = vpop.f32.mrb[108].mxu0 }
0x24a4   : > { %v6487_v22 = vpop.f32.mrb[109].mxu0 }
0x24a5   : > { %v4810_v2 = vpop.f32.mrb[110].mxu0 }
0x24a6   : > { %v4814_v23 = vpack.c.bf16 %v4810_v2, %v4807_v57  ;;  %v6488_v58 = vpop.f32.mrb[111].mxu0 }
0x24a8   : > { %6492 = vmatmul.mubr.msk.bf16.vlgmr.msra.gmra.mrb[112].mxu0 %vm2243_vm3, %v4814_v23  ;;  %v4194_v23 = vld [vmem:[%s8580_s4 + $0xc] sm:$0xf] }
0x24a9   : > { %6496 = vmatpush3.bf16.xpose.msra.mxu0 %v4886_v32  ;;  %6511 = vmatprep.mubr.msk.bf16.mxu0 %vm6988_vm1, %v6987_v36 }
0x24aa   : > { %6497 = vmatprep.subr.bf16.mxu0 %v6987_v36 }
0x24b1   : > { %6498 = vmatpush3.bf16.xpose.msra.mxu0 %v4889_v46 }
0x24b2   : > { %6499 = vmatprep.subr.bf16.mxu0 %v6987_v36 }
0x24b9   : > { %6500 = vmatpush3.bf16.xpose.msra.mxu0 %v4892_v47 }
0x24ba   : > { %6501 = vmatprep.subr.bf16.mxu0 %v6987_v36 }
0x24c1   : > { %6502 = vmatpush3.bf16.xpose.msra.mxu0 %v4895_v40 }
0x24c2   : > { %6503 = vmatprep.subr.bf16.mxu0 %v6987_v36 }
0x24c9   : > { %6504 = vmatpush3.bf16.xpose.msra.mxu0 %v4898_v49 }
0x24ca   : > { %6505 = vmatprep.subr.bf16.mxu0 %v6987_v36 }
0x24d1   : > { %6506 = vmatpush3.bf16.xpose.msra.mxu0 %v4901_v51 }
0x24d2   : > { %6507 = vmatprep.subr.bf16.mxu0 %v6987_v36 }
0x24d9   : > { %6508 = vmatpush3.bf16.xpose.msra.mxu0 %v4904_v34 }
0x24da   : > { %6509 = vmatprep.subr.bf16.mxu0 %v6987_v36 }
0x24e1   : > { %6510 = vmatpush3.bf16.xpose.msra.mxu0 %v4907_v53 }
0x24e2   : > { %6549 = vmatprep.subr.bf16.mxu0 %v6987_v36 }
0x24e8   : > { %6512 = vmatmul.mubr.msk.bf16.vlgmr.msra.gmra.mrb[116].mxu0 %vm2243_vm3, %v4865_v48 }
0x24e9   : > { %6557 = vmatprep.mubr.msk.bf16.mxu0 %vm6988_vm1, %v6987_v36 }
0x257b   : > { %v4855_v56 = vpop.f32.mrb[112].mxu0 }
0x257c   : > { %v8321_v41 = vadd.f32 %v4855_v56, %v8244_v33  ;;  %v6493_v43 = vpop.f32.mrb[113].mxu0 }
0x257d   : > { %v4858_v3 = vpop.f32.mrb[114].mxu0 }
0x257e   : > { %v8324_v4 = vadd.f32 %v4858_v3, %v8247_v63  ;;  %v6494_v50 = vpop.f32.mrb[115].mxu0 }
0x25bb   : > { %v4943_v5 = vpop.f32.mrb[116].mxu0 }
0x25bc   : > { %v4950_v6 = vmul.f32 0.35355338, %v4943_v5  ;;  %v6513_v25 = vpop.f32.mrb[117].mxu0 }
0x25bd   : > { %v4946_v59 = vpop.f32.mrb[118].mxu0 }
0x25be   : > { %v4951_v62 = vmul.f32 0.35355338, %v4946_v59  ;;  %4952 = vmax.xlane.f32.xlu0 %v4950_v6  ;;  %v6514_v9 = vpop.f32.mrb[119].mxu0 }
0x25c0   : > { %v4954_v11 = vsel %vm2312_vm4, %v4951_v62, -inf }
0x25c1   : > { %4955 = vmax.xlane.f32.xlu1 %v4954_v11 }
0x25d2   : > { %4975 = vrot.lane.b32.xlu1 %v8031_v13, %s8572_s13 }
0x25d4   : > { %4973 = vrot.lane.b32.xlu0 %v8033_v35, %s8572_s13 }
0x25d6   : > { %4981 = vrot.lane.b32.xlu1 %v8045_v14, %s8572_s13 }
0x25d8   : > { %4977 = vrot.lane.b32.xlu0 %v8039_v31, %s8572_s13 }
0x25dc   : > { %4979 = vrot.lane.b32.xlu0 %v8037_v29, %s8572_s13 }
0x25e0   : > { %4983 = vrot.lane.b32.xlu0 %v8043_v26, %s8572_s13 }
0x25e4   : > { %4987 = vrot.lane.b32.xlu0 %v8051_v8, %s8572_s13 }
0x264b   : > { %v4953_v33 = vpop.xlane.xlu0 %4952 }
0x264c   : > { %v4957_v13 = vsub.f32 %v4950_v6, %v4953_v33 }
0x264e   : > { %v4959_v63 = vmul.f32 1.442695, %v4957_v13  ;;  %v4956_v12 = vpop.xlane.xlu1 %4955  ;;  %v6734_v13 = vld [vmem:[%s8583_s8] sm:$0xff]  }
0x264f   : > { %v4958_v35 = vsub.f32 %v4951_v62, %v4956_v12  ;;  %v4974_v42 = vpop.permute.xlu0 %4973  ;;  %6550 = vmatpush3.bf16.msra.mxu0 %v6734_v13 }
0x2650   : > { %6816 = vpow2.f32 %v4959_v63  ;;  %6516 = vmatpush3.bf16.msra.mxu1 %v4974_v42  ;;  %v6735_v63 = vld [vmem:[%s8583_s8 + $0x8] sm:$0xff]   ;;  %6551 = vmatprep.subr.bf16.mxu0 %v6987_v36 }
0x2651   : > { %v4961_v14 = vmul.f32 1.442695, %v4958_v35  ;;  %6517 = vmatprep.subr.bf16.mxu1 %v6987_v36 }
0x2652   : > { %v4976_v31 = vpop.permute.xlu1 %4975 }
0x2653   : > { %6818 = vpow2.f32 %v4961_v14  ;;  %v4978_v29 = vpop.permute.xlu0 %4977  ;;  %6552 = vmatpush3.bf16.msra.mxu0 %v6735_v63 }
0x2654   : > { %6518 = vmatpush3.bf16.msra.mxu1 %v4976_v31  ;;  %6553 = vmatprep.subr.bf16.mxu0 %v6987_v36 }
0x2655   : > { %6519 = vmatprep.subr.bf16.mxu1 %v6987_v36 }
0x2656   : > { %v4982_v19 = vpop.permute.xlu1 %4981 }
0x2657   : > { %v4980_v8 = vpop.permute.xlu0 %4979 }
0x2658   : > { %6520 = vmatpush3.bf16.msra.mxu1 %v4978_v29 }
0x2659   : > { %6521 = vmatprep.subr.bf16.mxu1 %v6987_v36 }
0x265a   : > { %v6817_v26 = vpop.eup %6816 }
0x265b   : > { %4963 = vadd.xlane.f32.xlu1 %v6817_v26  ;;  %v4984_v20 = vpop.permute.xlu0 %4983 }
0x265c   : > { %6522 = vmatpush3.bf16.msra.mxu1 %v4980_v8  ;;  %v5726_v8 = vld [vmem:[%s8584_s12] ss:$0 sm:$0xff]  ;;  %s5748_s12 = sshll.u32 %s7306_s2, 4  ;;  %s1365_s2 = sand.u32 1, %s6929_s1  }
0x265d   : > { %v6819_v15 = vpop.eup %6818  ;;  %6523 = vmatprep.subr.bf16.mxu1 %v6987_v36 }
0x265e   : > { %v4965_v7 = vsel %vm2312_vm4, %v6819_v15, 0.0 }
0x265f   : > { %4966 = vadd.xlane.f32.xlu1 %v4965_v7  ;;  %v4988_v22 = vpop.permute.xlu0 %4987 }
0x2660   : > { %6524 = vmatpush3.bf16.msra.mxu1 %v4982_v19 }
0x2661   : > { %6525 = vmatprep.subr.bf16.mxu1 %v6987_v36 }
0x2664   : > { %6526 = vmatpush3.bf16.msra.mxu1 %v4984_v20 }
0x2665   : > { %6527 = vmatprep.subr.bf16.mxu1 %v6987_v36 }
0x2670   : > { %4985 = vrot.lane.b32.xlu1 %v8053_v60, %s8572_s13  ;;  %v5043_v60 = vsel %vm2312_vm4, %v4194_v23, 0  ;;  %s8582_s13 = sld [smem:[#allocation34_spill]]  ;;  %v2112_v23 = vsel %vm1772_vm0, %v7467_v44, 0  ;;  %v2121_v44 = vsel %vm1772_vm0, %v7485_v1, 0  ;;  %v6736_v1 = vld [vmem:[%s8583_s8 + $0x10] sm:$0xff]  }
0x2671   : > { %6554 = vmatpush3.bf16.msra.mxu0 %v6736_v1 }
0x2672   : > { %6555 = vmatprep.subr.bf16.mxu0 %v6987_v36 }
0x2676   : > { %v6732_v11 = vld [vmem:[%s8582_s13] sm:$0xff]   ;;  %v6733_v33 = vld [vmem:[%s8582_s13 + $0x8] sm:$0xff]  }
0x26e8   : > { %v4964_v18 = vpop.xlane.xlu1 %4963 }
0x26e9   : > { %6820 = vrcp.f32 %v4964_v18  ;;  %v5727_v18 = vld [vmem:[%s8585_s16] ss:$0 sm:$0xff]  ;;  %s5744_s16 = sshll.u32 %s7248_s0, 4 }
0x26ec   : > { %v4967_v38 = vpop.xlane.xlu1 %4966 }
0x26ed   : > { %6822 = vrcp.f32 %v4967_v38 }
0x26f0   : > { %v4986_v57 = vpop.permute.xlu1 %4985 }
0x26f1   : > { %6528 = vmatpush3.bf16.msra.mxu1 %v4986_v57 }
0x26f2   : > { %6529 = vmatprep.subr.bf16.mxu1 %v6987_v36 }
0x26f3   : > { %v6821_v61 = vpop.eup %6820 }
0x26f4   : > { %v4970_v58 = vmul.f32 %v6821_v61, %v6817_v26 }
0x26f5   : > { %6530 = vmatpush3.bf16.msra.mxu1 %v4988_v22 }
0x26f6   : > { %6535 = vmatprep.subr.bf16.mxu1 %v6987_v36 }
0x26f7   : > { %v6823_v2 = vpop.eup %6822 }
0x26f8   : > { %v4971_v32 = vmul.f32 %v6823_v2, %v6819_v15  ;;  %v2109_v2 = vsel %vm1772_vm0, %v7469_v45, 0  ;;  %v2118_v45 = vsel %vm1772_vm0, %v7475_v54, 0  ;;  %v2127_v54 = vsel %vm1772_vm0, %v7500_v17, 0 }
0x26fa   : > { %v4972_v39 = vpack.c.bf16 %v4971_v32, %v4970_v58  ;;  %v2115_v58 = vsel %vm1772_vm0, %v7477_v55, 0  ;;  %v2124_v55 = vsel %vm1772_vm0, %v7483_v0, 0  ;;  %v2130_v32 = vsel %vm1772_vm0, %v7498_v16, 0  ;;  %v5728_v0 = vld [vmem:[%s8586_s5] ss:$0 sm:$0xff]  ;;  %s1366_s5 = scalar_lea.vmem [#allocation6], %s1365_s2 }
0x26fb   : > { %v5732_v16 = vld [vmem:[%s8587_s14] ss:$0 sm:$0xff]  ;;  %s5480_s14 = sshll.u32 %s1366_s5, 4  ;;  %s8433_s14 = int_to_ptr.vmem [resolvable:$true] %s5480_s14 }
0x26fc   : > { %6532 = vmatmul.mubr.bf16.vlgmr.msra.gmra.mrb[84].mxu1 %v4972_v39  ;;  %v6737_v39 = vld [vmem:[%s8583_s8 + $0x18] sm:$0xff]  }
0x26fd   : > { %6536 = vmatpush3.bf16.msra.mxu1 %v5043_v60  ;;  %6537 = vmatprep.mubr.msk.bf16.mxu1 %vm6988_vm1, %v6987_v36 }
0x26fe   : > { %6541 = vmatprep.subr.bf16.mxu1 %v6987_v36  ;;  %6556 = vmatpush3.bf16.msra.mxu0 %v6737_v39 }
0x27cf   : > { %v5031_v46 = vpop.f32.mrb[84].mxu1 }
0x27d0   : > { %v6533_v21 = vpop.f32.mrb[85].mxu1 }
0x27d1   : > { %v5034_v47 = vpop.f32.mrb[86].mxu1 }
0x27d2   : > { %v5038_v37 = vpack.c.bf16 %v5034_v47, %v5031_v46  ;;  %v6534_v40 = vpop.f32.mrb[87].mxu1 }
0x27d4   : > { %6538 = vmatmul.mubr.msk.bf16.vlgmr.msra.gmra.mrb[88].mxu1 %vm2243_vm3, %v5038_v37 }
0x27d5   : > { %6545 = vmatprep.mubr.msk.bf16.mxu1 %vm6988_vm1, %v6987_v36  ;;  %6542 = vmatpush3.bf16.msra.mxu1 %v6732_v11 }
0x27d6   : > { %6543 = vmatprep.subr.bf16.mxu1 %v6987_v36 }
0x27d9   : > { %6544 = vmatpush3.bf16.msra.mxu1 %v6733_v33 }
0x27da   : > { %6561 = vmatprep.subr.bf16.mxu1 %v6987_v36 }
0x28a7   : > { %v5079_v49 = vpop.f32.mrb[88].mxu1 }
0x28a8   : > { %v5086_v10 = vadd.f32 %v5079_v49, %v8321_v41  ;;  %v6539_v51 = vpop.f32.mrb[89].mxu1 }
0x28a9   : > { %v5082_v24 = vpop.f32.mrb[90].mxu1 }
0x28aa   : > { %v5094_v34 = vadd.f32 %v5725_v30, %v5086_v10  ;;  %v5087_v52 = vadd.f32 %v5082_v24, %v8324_v4  ;;  %v6540_v53 = vpop.f32.mrb[91].mxu1 }
0x28ac   : > { %v5095_v48 = vadd.f32 %v5725_v30, %v5087_v52  ;;  %v5096_v56 = vadd.f32 %v5094_v34, %v8068_v27 }
0x28ae   : > { %v5100_v43 = vsel %vm1772_vm0, %v5096_v56, 0.0  ;;  %v5097_v3 = vadd.f32 %v5095_v48, %v8070_v28 }
0x28af   : > { %5101 = vadd.xlane.f32.xlu1 %v5100_v43 }
0x28b0   : > { %v5103_v50 = vsel %vm3081_vm5, %v5097_v3, 0.0 }
0x28b1   : > { %5104 = vadd.xlane.f32.xlu0 %v5103_v50 }
0x293c   : > { %v5102_v41 = vpop.xlane.xlu1 %5101 }
0x293d   : > { %v5106_v5 = vmul.f32 0.03125, %v5102_v41 }
0x293e   : > { %v5105_v6 = vpop.xlane.xlu0 %5104 }
0x293f   : > { %v5108_v25 = vsub.f32 %v5096_v56, %v5106_v5  ;;  %v5107_v4 = vmul.f32 0.03125, %v5105_v6 }
0x2941   : > { %v5109_v59 = vsub.f32 %v5097_v3, %v5107_v4  ;;  %v5110_v62 = vmul.f32 %v5108_v25, %v5108_v25 }
0x2943   : > { %v5112_v27 = vsel %vm1772_vm0, %v5110_v62, 0.0  ;;  %v5111_v9 = vmul.f32 %v5109_v59, %v5109_v59 }
0x2944   : > { %5113 = vadd.xlane.f32.xlu0 %v5112_v27 }
0x2945   : > { %v5115_v28 = vsel %vm3081_vm5, %v5111_v9, 0.0 }
0x2946   : > { %5116 = vadd.xlane.f32.xlu1 %v5115_v28 }
0x29d1   : > { %v5114_v12 = vpop.xlane.xlu0 %5113 }
0x29d2   : > { %v5118_v35 = vmul.f32 0.03125, %v5114_v12 }
0x29d3   : > { %v5117_v42 = vpop.xlane.xlu1 %5116 }
0x29d4   : > { %v5120_v14 = vadd.f32 1e-05, %v5118_v35  ;;  %v5119_v31 = vmul.f32 0.03125, %v5117_v42  ;;  %v5738_v35 = vld [vmem:[%s8588_s15] ss:$0 sm:$0xff]  ;;  %s8431_s15 = scalar_lea.hbm %s7225_s6, %s5744_s16 }
0x29d6   : > { %6824 = vrsqrt.f32 %v5120_v14  ;;  %v5121_v29 = vadd.f32 1e-05, %v5119_v31  ;;  %v5739_v31 = vld [vmem:[%s7210_s24] ss:$0 sm:$0xff] }
0x29d8   : > { %6826 = vrsqrt.f32 %v5121_v29 }
0x29e0   : > { %v6825_v26 = vpop.eup %6824 }
0x29e1   : > { %v5124_v15 = vmul.f32 %v6825_v26, %v5108_v25 }
0x29e2   : > { %v6827_v7 = vpop.eup %6826 }
0x29e3   : > { %v5132_v19 = vmul.f32 %v5726_v8, %v5124_v15  ;;  %v5125_v20 = vmul.f32 %v6827_v7, %v5109_v59 }
0x29e5   : > { %v5133_v38 = vmul.f32 %v5726_v8, %v5125_v20  ;;  %v5140_v57 = vadd.f32 %v5727_v18, %v5132_v19 }
0x29e7   : > { %v5141_v22 = vadd.f32 %v5727_v18, %v5133_v38  ;;  %v6842_v18 = vld [vmem:[%s7904_s10] sm:$0x1]  ;;  %s1383_s10 = scalar_lea.vmem %s8589_s3, %s5748_s12  ;;  %s5468_s3 = scalar_lea.sflag [#allocation5], %s1365_s2 }
0x29e8   : > { %v5410_v38 = vsel %vm5409_vm9, %v6842_v18, 0.0  ;;  %v5387_v1 = vld [vmem:[%s1383_s10 + $0x8] sm:$0xf]  ;;  %s6871_s12 = scalar_lea.vmem %s8433_s14, 16 }
0x29e9   : > { %v5142_v61 = vpack.c.bf16 %v5141_v22, %v5140_v57  ;;  %p6872_p5 = scmp.ne.s32.totalorder %s8433_s14, %s6871_s12 }
0x29eb   : > { %6546 = vmatmul.mubr.msk.bf16.vlgmr.msra.gmra.mrb[92].mxu1 %vm1772_vm0, %v5142_v61  ;;  %p6873_p9 = pnand %p6872_p5, %p8590_p6 }
0x29ec   : > { %6562 = vmatpush3.bf16.xpose.msra.mxu1 %v2109_v2  ;;  %6577 = vmatprep.mubr.msk.bf16.mxu1 %vm6988_vm1, %v6987_v36 }
0x29ed   : > { %6563 = vmatprep.subr.bf16.mxu1 %v6987_v36  ;;  %p6874_p10 = pneg %p6873_p9 }
0x29f4   : > { %6564 = vmatpush3.bf16.xpose.msra.mxu1 %v2112_v23 }
0x29f5   : > { %6565 = vmatprep.subr.bf16.mxu1 %v6987_v36 }
0x29fc   : > { %6566 = vmatpush3.bf16.xpose.msra.mxu1 %v2115_v58 }
0x29fd   : > { %6567 = vmatprep.subr.bf16.mxu1 %v6987_v36 }
0x2a04   : > { %6568 = vmatpush3.bf16.xpose.msra.mxu1 %v2118_v45 }
0x2a05   : > { %6569 = vmatprep.subr.bf16.mxu1 %v6987_v36 }
0x2a0c   : > { %6570 = vmatpush3.bf16.xpose.msra.mxu1 %v2121_v44 }
0x2a0d   : > { %6571 = vmatprep.subr.bf16.mxu1 %v6987_v36 }
0x2a14   : > { %6572 = vmatpush3.bf16.xpose.msra.mxu1 %v2124_v55 }
0x2a15   : > { %6573 = vmatprep.subr.bf16.mxu1 %v6987_v36 }
0x2a1c   : > { %6574 = vmatpush3.bf16.xpose.msra.mxu1 %v2127_v54 }
0x2a1d   : > { %6575 = vmatprep.subr.bf16.mxu1 %v6987_v36 }
0x2a24   : > { %6576 = vmatpush3.bf16.xpose.msra.mxu1 %v2130_v32  ;;  %v5386_v32 = vld [vmem:[%s1383_s10] sm:$0xff]  ;;  %s6996_s10 = smov [#allocation6]  }
0x2a25   : > { %s6875_s4 = sshll.u32 %s6996_s10, 4  ;;  %s6876_s4 = int_to_ptr.vmem [resolvable:$false] %s6875_s4 }
0x2a26   : > { %s6877_s0 = scalar_lea.vmem %s6876_s4, 32  ;;  %p6878_p12 = scmp.lt.s32.totalorder %s8433_s14, %s6876_s4 }
0x2a27   : > { %p6879_p3 = scmp.lt.s32.totalorder %s6877_s0, %s6871_s12 }
0x2a29   : > { %p6880_p4 = por %p6879_p3, %p6878_p12 }
0x2a2b   : > { %p6881_p7 = pnand %p6880_p4, %p6874_p10 }
0x2abe   : > { %v5203_v60 = vpop.f32.mrb[92].mxu1 }
0x2abf   : > { %v5204_v46 = vadd.f32 %v5728_v0, %v5203_v60  ;;  %v6547_v21 = vpop.f32.mrb[93].mxu1 }
0x2ac0   : > { %v5206_v47 = vpop.f32.mrb[94].mxu1 }
0x2ac1   : > { %v5207_v17 = vadd.f32 %v5728_v0, %v5206_v47  ;;  %v6548_v37 = vpop.f32.mrb[95].mxu1  ;;  %v5210_v40 = vmax.f32 %v5204_v46, 0.0 }
0x2ac3   : > { %v5211_v30 = vmax.f32 %v5207_v17, 0.0 }
0x2ac5   : > { %v5212_v49 = vpack.c.bf16 %v5211_v30, %v5210_v40  ;;  %v5740_v40 = vld [vmem:[%s7215_s19] ss:$0 sm:$0xff] }
0x2ac7   : > { %6558 = vmatmul.mubr.msk.bf16.vlgmr.msra.gmra.mrb[120].mxu0 %vm1935_vm2, %v5212_v49 }
0x2b9a   : > { %v5289_v10 = vpop.f32.mrb[120].mxu0 }
0x2b9b   : > { %v5290_v51 = vadd.f32 %v5732_v16, %v5289_v10  ;;  %v6559_v24 = vpop.f32.mrb[121].mxu0 }
0x2b9c   : > { %v5292_v34 = vpop.f32.mrb[122].mxu0 }
0x2b9d   : > { %v5296_v36 = vadd.f32 %v5290_v51, %v5140_v57  ;;  %v5293_v52 = vadd.f32 %v5732_v16, %v5292_v34  ;;  %v6560_v53 = vpop.f32.mrb[123].mxu0  ;;  %v5741_v16 = vld [vmem:[#allocation3] ss:$0 sm:$0xff] }
0x2b9f   : > { %v5297_v48 = vadd.f32 %v5293_v52, %v5141_v22  ;;  %v5300_v56 = vsel %vm1772_vm0, %v5296_v36, 0.0 }
0x2ba0   : > { %5301 = vadd.xlane.f32.xlu0 %v5300_v56 }
0x2ba1   : > { %v5303_v43 = vsel %vm3081_vm5, %v5297_v48, 0.0 }
0x2ba2   : > { %5304 = vadd.xlane.f32.xlu1 %v5303_v43 }
0x2c2d   : > { %v5302_v3 = vpop.xlane.xlu0 %5301 }
0x2c2e   : > { %v5306_v50 = vmul.f32 0.03125, %v5302_v3 }
0x2c2f   : > { %v5305_v41 = vpop.xlane.xlu1 %5304 }
0x2c30   : > { %v5308_v5 = vsub.f32 %v5296_v36, %v5306_v50  ;;  %v5307_v6 = vmul.f32 0.03125, %v5305_v41 }
0x2c32   : > { %v5309_v25 = vsub.f32 %v5297_v48, %v5307_v6  ;;  %v5310_v4 = vmul.f32 %v5308_v5, %v5308_v5 }
0x2c34   : > { %v5312_v59 = vsel %vm1772_vm0, %v5310_v4, 0.0  ;;  %v5311_v62 = vmul.f32 %v5309_v25, %v5309_v25 }
0x2c35   : > { %5313 = vadd.xlane.f32.xlu0 %v5312_v59 }
0x2c36   : > { %v5315_v27 = vsel %vm3081_vm5, %v5311_v62, 0.0 }
0x2c37   : > { %5316 = vadd.xlane.f32.xlu1 %v5315_v27 }
0x2cc2   : > { %v5314_v9 = vpop.xlane.xlu0 %5313 }
0x2cc3   : > { %v5318_v28 = vmul.f32 0.03125, %v5314_v9 }
0x2cc4   : > { %v5317_v11 = vpop.xlane.xlu1 %5316 }
0x2cc5   : > { %v5320_v33 = vadd.f32 1e-05, %v5318_v28  ;;  %v5319_v13 = vmul.f32 0.03125, %v5317_v11 }
0x2cc7   : > { %6828 = vrsqrt.f32 %v5320_v33  ;;  %v5321_v63 = vadd.f32 1e-05, %v5319_v13 }
0x2cc9   : > { %6830 = vrsqrt.f32 %v5321_v63 }
0x2cd1   : > { %v6829_v12 = vpop.eup %6828 }
0x2cd2   : > { %v5324_v42 = vmul.f32 %v6829_v12, %v5308_v5 }
0x2cd3   : > { %v6831_v14 = vpop.eup %6830 }
0x2cd4   : > { %v5332_v29 = vmul.f32 %v5738_v35, %v5324_v42  ;;  %v5325_v26 = vmul.f32 %v6831_v14, %v5309_v25 }
0x2cd6   : > { %v5340_v8 = vadd.f32 %v5739_v31, %v5332_v29  ;;  %v5333_v15 = vmul.f32 %v5738_v35, %v5325_v26 }
0x2cd8   : > { %v5344_v7 = vsel %vm1772_vm0, %v5340_v8, 0.0  ;;  %v5341_v19 = vadd.f32 %v5739_v31, %v5333_v15 }
0x2cd9   : > { %5345 = vadd.xlane.f32.xlu0 %v5344_v7 }
0x2cda   : > { %v5347_v20 = vsel %vm3081_vm5, %v5341_v19, 0.0 }
0x2cdb   : > { %5348 = vadd.xlane.f32.xlu1 %v5347_v20 }
0x2cdd   : > { %5411 = vadd.xlane.f32.xlu0 %v5410_v38 }
0x2d66   : > { %v5346_v57 = vpop.xlane.xlu0 %5345 }
0x2d67   : > { %v5350_v22 = vmul.f32 0.03125, %v5346_v57 }
0x2d68   : > { %v5349_v61 = vpop.xlane.xlu1 %5348 }
0x2d69   : > { %v5352_v2 = vsub.f32 %v5340_v8, %v5350_v22  ;;  %v5351_v23 = vmul.f32 0.03125, %v5349_v61 }
0x2d6a   : > { %v5412_v39 = vpop.xlane.xlu0 %5411 }
0x2d6b   : > { %v5353_v58 = vsub.f32 %v5341_v19, %v5351_v23  ;;  %v5354_v45 = vmul.f32 %v5352_v2, %v5352_v2  ;;  %v5413_v43 = vmax.f32 %v5412_v39, 1.0 }
0x2d6d   : > { %v5356_v44 = vsel %vm1772_vm0, %v5354_v45, 0.0  ;;  %v5355_v55 = vmul.f32 %v5353_v58, %v5353_v58 }
0x2d6e   : > { %5357 = vadd.xlane.f32.xlu0 %v5356_v44 }
0x2d6f   : > { %v5359_v54 = vsel %vm3081_vm5, %v5355_v55, 0.0 }
0x2d70   : > { %5360 = vadd.xlane.f32.xlu1 %v5359_v54 }
0x2d81   : > { %5390 = vperm.xlu1 %6712, %v5386_v32  }
0x2d84   : > { %5395 = vperm.xlu0 %6713, %v5387_v1  }
0x2dfb   : > { %v5358_v0 = vpop.xlane.xlu0 %5357 }
0x2dfc   : > { %v5362_v60 = vmul.f32 0.03125, %v5358_v0 }
0x2dfd   : > { %v5361_v46 = vpop.xlane.xlu1 %5360 }
0x2dfe   : > { %v5364_v21 = vadd.f32 1e-05, %v5362_v60  ;;  %v5363_v47 = vmul.f32 0.03125, %v5361_v46 }
0x2e00   : > { %6832 = vrsqrt.f32 %v5364_v21  ;;  %v5365_v17 = vadd.f32 1e-05, %v5363_v47 }
0x2e01   : > { %v5391_v24 = vpop.permute.xlu1 %5390 }
0x2e02   : > { %6834 = vrsqrt.f32 %v5365_v17 }
0x2e03   : > { %v5396_v52 = vpop.permute.xlu0 %5395  ;;  %6836 = vrcp.f32 %v5413_v43 }
0x2e0a   : > { %v6833_v37 = vpop.eup %6832 }
0x2e0b   : > { %v5368_v30 = vmul.f32 %v6833_v37, %v5352_v2 }
0x2e0c   : > { %v6835_v49 = vpop.eup %6834 }
0x2e0d   : > { %v5376_v10 = vmul.f32 %v5740_v40, %v5368_v30  ;;  %v5369_v51 = vmul.f32 %v6835_v49, %v5353_v58  ;;  %v6837_v27 = vpop.eup %6836 }
0x2e0f   : > { %v5384_v34 = vadd.f32 %v5741_v16, %v5376_v10  ;;  %v5377_v36 = vmul.f32 %v5740_v40, %v5369_v51 }
0x2e11   : > { %v5398_v53 = vmul.f32 %v5391_v24, %v5384_v34  ;;  %v5385_v48 = vadd.f32 %v5741_v16, %v5377_v36 }
0x2e13   : > { %v5399_v56 = vmul.f32 %v5396_v52, %v5385_v48  ;;  %v5400_v3 = vsel %vm1772_vm0, %v5398_v53, 0.0 }
0x2e15   : > { %v5401_v50 = vsel %vm3081_vm5, %v5399_v56, 0.0 }
0x2e16   : > { %v5402_v41 = vadd.f32 %v5401_v50, %v5400_v3 }
0x2e18   : > { %v5403_v5 = vrot.slane %v5402_v41, 4 }
0x2e1a   : > { %v5404_v6 = vadd.f32 %v5403_v5, %v5402_v41 }
0x2e1c   : > { %v5405_v25 = vrot.slane %v5404_v6, 2 }
0x2e1e   : > { %v5406_v4 = vadd.f32 %v5405_v25, %v5404_v6 }
0x2e20   : > { %v5407_v59 = vrot.slane %v5406_v4, 1 }
0x2e22   : > { %v5408_v62 = vadd.f32 %v5407_v59, %v5406_v4 }
0x2e24   : > { %v5415_v9 = vmul.f32 %v6837_v27, %v5408_v62 }
0x2e26   : > { %v5416_v28 = vpack.c.bf16 %v5415_v9, %v5415_v9 }
0x2e28   : > { %6578 = vmatmul.mubr.msk.bf16.vlgmr.msra.gmra.mrb[96].mxu1 %vm1772_vm0, %v5416_v28 }
0x2efb   : > { %v5454_v11 = vpop.f32.mrb[96].mxu1 }
0x2efc   : > { %v5743_v33 = vmul.f32 -1.442695, %v5454_v11  ;;  %v6579_v13 = vpop.f32.mrb[97].mxu1 }
0x2efd   : > { %v5457_v63 = vpop.f32.mrb[98].mxu1 }
0x2efe   : > { %6838 = vpow2.f32 %v5743_v33  ;;  %v6580_v12 = vpop.f32.mrb[99].mxu1 }
0x2f08   : > { %v6839_v35 = vpop.eup %6838 }
0x2f09   : > { %v5463_v42 = vadd.f32 1.0, %v6839_v35 }
0x2f0b   : > { %6840 = vrcp.f32 %v5463_v42 }
0x2f15   : > { %v6841_v14 = vpop.eup %6840 }
0x2f16   : > { %5466 = vst [vmem:[%s1366_s5] sm:$0x1] %v6841_v14 }
0x2f17   : > { %6884 = shalt.err (!%p6881_p7)
}
0x2f18   : > { %s6885_s2 = scalar_lea.hbm %s8431_s15, 16  ;;  %s6889_s16 = scalar_lea.hbm %s7225_s6, 32 }
0x2f19   : > { %p6886_p8 = scmp.ne.s32.totalorder %s8431_s15, %s6885_s2  ;;  %p6890_p1 = scmp.lt.u32.totalorder %s8431_s15, %s7225_s6 }
0x2f1a   : > { %p6891_p2 = scmp.lt.u32.totalorder %s6889_s16, %s6885_s2  ;;  %p6893_p5 = scmp.lt.u32.totalorder %s6885_s2, %s8431_s15 }
0x2f1b   : > { %p6887_p11 = pnand %p6886_p8, %p8590_p6 }
0x2f1c   : > { %p6892_p0 = por %p6891_p2, %p6890_p1 }
0x2f1d   : > { %p6888_p13 = pneg %p6887_p11 }
0x2f1e   : > { %p6894_p9 = por %p6893_p5, %p6892_p0 }
0x2f20   : > { %p6895_p10 = pnand %p6894_p9, %p6888_p13 }
0x2f22   : > { %6898 = shalt.err (!%p6895_p10)
}
0x2f23   : > { %6585 = dma.vmem_to_hbm [thread:$0]  (%p8590_p6), %s8433_s14, 16, %s8431_s15, %s5468_s3  }
0x2f24 PF: > { %p6597_p12 = scmp.ge.s32.totalorder %s6937_s7, 2  ;;  %s5492_s4 = sand.u32 1, %s6925_s28  }
0x2f25   : > { %p8591_p3 = scmp.ne.s32.totalorder %s8545_s23, 0  ;;  %s5493_s5 = scalar_lea.sflag [#allocation5], %s5492_s4 }
0x2f27   : > { %p6592_p4 = pnand %p6597_p12, %p8591_p3 }
0x2f29   : > { %6920 = dma.done.wait (!%p6592_p4), %s5493_s5, 16  }
0x2f2a   : > { %6922 = vsyncadd (!%p6592_p4), %s5493_s5, 4294967280  ;;  %s8592_s12 = sld [smem:[#allocation44_spill]]  ;;  %s8593_s2 = sld [smem:[#allocation45_spill]] }
0x2f2b   : > { %p100_p7 = scmp.ge.s32.totalorder %s7252_s11, 4   ;;  %s8594_s28 = smov %s6929_s1 }
0x2f2c   : > { %s8596_s7 = smov %s7252_s11 }
0x2f2d   :  { %102 = sbr.rel (!%p100_p7) target bundleno = 94 (0x5e), region = 289 }
0x2f30   : > { %s8595_s1 = smov %s8592_s12 }
0x2f34   :  { %5497 = vsyncpa [#allocation4], 1 }
0x2f35   :  { %5499 = vsyncpa [#allocation4 + $0x1], 1 }
0x2f36   :  { %5500 = vsyncpa [#allocation5], 1 }
0x2f37   :  { %5502 = vsyncpa [#allocation5 + $0x1], 1 }

</bundles_post_ra>
